<compile_context>
chip_gen: v7x
topology: tpu7x:2x2x1
jax: 0.10.0
libtpu: 0.0.40
codegen_flags: <defaults>
</compile_context>

<pallas_src>
import math

import jax
import jax.numpy as jnp
from jax.experimental import pallas as pl
from jax.experimental.pallas import tpu as pltpu


# ----------------------------------------------------------------------------
# Fused kernel: question bi-GRU -> (last-row) self-attention -> fc_merge/tanh
#               -> classifier, producing logits[:, -1, :] of the module.
# ----------------------------------------------------------------------------
def _reader_fused_kernel(
    x_ref,        # (B*T, E)   embedded question tokens, flattened in wrapper
    upd_ref,      # (B, T)     hidden-update mask (t < len)
    omask_ref,    # (B, T)     output mask (t < len) & (id > 0)
    wih_ref,      # (E, 6H)    [fwd 3H | bwd 3H] input-projection weight
    bih_ref,      # (1, 6H)
    whh_ref,      # (2H, 6H)   block-diag(whh_f.T, whh_b.T)
    bhh_ref,      # (1, 6H)
    wqkv_ref,     # (2H, 6H)   [Wq.T | Wk.T | Wv.T]
    bqkv_ref,     # (1, 6H)
    wm_ref,       # (2H, H)    fc_merge weight (transposed)
    bm_ref,       # (1, H)
    wc_ref,       # (H, C)     classifier weight (transposed)
    bc_ref,       # (1, C)
    logits_ref,   # (B, C)
):
    B, T = upd_ref.shape
    H2 = whh_ref.shape[0]          # 2H
    H = H2 // 2
    H3 = 3 * H
    H6 = 6 * H

    x2 = x_ref[...]                # (B*T, E)
    upd = upd_ref[...]             # (B, T)
    omask = omask_ref[...]         # (B, T)

    # ---- hoisted input projection: ONE matmul for both directions ----------
    gi = (jnp.dot(x2, wih_ref[...], preferred_element_type=jnp.float32)
          + bih_ref[...])                              # (B*T, 6H)
    gi3 = gi.reshape(B, T, H6)                         # value reshape, cheap

    whh = whh_ref[...]                                 # (2H, 6H)
    # Hoisted broadcast (done once, not per unrolled step).
    bhh = jnp.broadcast_to(bhh_ref[...], (B, H6))      # (B, 6H)

    # ---- fully unrolled masked recurrence, outputs kept in registers -------
    of = [None] * T                                    # forward outputs per t
    ob = [None] * T                                    # backward outputs per t
    h = jnp.zeros((B, H2), jnp.float32)                # [h_f | h_b]
    for i in range(T):
        tf, tb = i, T - 1 - i
        # single block-diagonal recurrent matmul on the serial chain
        gh = jnp.dot(h, whh, preferred_element_type=jnp.float32) + bhh  # (B,6H)

        gif = gi3[:, tf, 0:H3]                         # forward gates at tf
        gib = gi3[:, tb, H3:H6]                        # backward gates at tb
        ghf = gh[:, 0:H3]
        ghb = gh[:, H3:H6]
        hf, hb = h[:, :H], h[:, H:]

        # PyTorch GRU gate order within each direction: [reset, update, new]
        rf = jax.nn.sigmoid(gif[:, 0:H] + ghf[:, 0:H])
        zf = jax.nn.sigmoid(gif[:, H:2 * H] + ghf[:, H:2 * H])
        nf = jnp.tanh(gif[:, 2 * H:H3] + rf * ghf[:, 2 * H:H3])
        hf_new = (1.0 - zf) * nf + zf * hf

        rb = jax.nn.sigmoid(gib[:, 0:H] + ghb[:, 0:H])
        zb = jax.nn.sigmoid(gib[:, H:2 * H] + ghb[:, H:2 * H])
        nb = jnp.tanh(gib[:, 2 * H:H3] + rb * ghb[:, 2 * H:H3])
        hb_new = (1.0 - zb) * nb + zb * hb

        vf = upd[:, tf:tf + 1]                         # (B, 1)
        vb = upd[:, tb:tb + 1]
        hf = vf * hf_new + (1.0 - vf) * hf
        hb = vb * hb_new + (1.0 - vb) * hb
        h = jnp.concatenate([hf, hb], axis=-1)         # (B, 2H)

        of[tf] = omask[:, tf:tf + 1] * hf_new          # (B, H)
        ob[tb] = omask[:, tb:tb + 1] * hb_new          # (B, H)

    # ---- stack GRU outputs once: (B, T, 2H) ---------------------------------
    qout = jnp.stack(
        [jnp.concatenate([of[t], ob[t]], axis=-1) for t in range(T)], axis=1)

    # ---- fused Q/K/V projection: ONE lane-dense (B*T, 2H) @ (2H, 6H) -------
    qkv = (jnp.dot(qout.reshape(B * T, H2), wqkv_ref[...],
                   preferred_element_type=jnp.float32) + bqkv_ref[...])
    qkv3 = qkv.reshape(B, T, H6)
    q_last = qkv3[:, T - 1, 0:H2]                      # (B, 2H) — only row used
    k = qkv3[:, :, H2:2 * H2]                          # (B, T, 2H)
    v = qkv3[:, :, 2 * H2:3 * H2]                      # (B, T, 2H)

    # ---- attention for the last query row only, lane-dense softmax ---------
    inv_t = 1.0 / math.sqrt(float(H2))
    scores = jnp.sum(q_last[:, None, :] * k, axis=-1) * inv_t   # (B, T)
    m = jnp.max(scores, axis=-1, keepdims=True)
    e = jnp.exp(scores - m)
    w = e / jnp.sum(e, axis=-1, keepdims=True)                   # exact softmax
    pooled = jnp.sum(w[:, :, None] * v, axis=1)                  # (B, 2H)

    # ---- head: fc_merge -> (dropout = identity) -> tanh -> classifier ------
    merged = jnp.tanh(jnp.dot(pooled, wm_ref[...],
                              preferred_element_type=jnp.float32) + bm_ref[...])
    logits_ref[...] = (jnp.dot(merged, wc_ref[...],
                               preferred_element_type=jnp.float32) + bc_ref[...])


# ----------------------------------------------------------------------------
# Forward pass wrapper: embedding gather, masks and weight layout in XLA
# (free plumbing); everything else inside the single fused Pallas kernel.
# ----------------------------------------------------------------------------
def reader_forward(params, article_ids, question_ids,
                   article_length, question_length):
    # The module returns logits[:, -1, :]; that slice depends only on
    # question_pooled[:, -1, :], so the article branch is dead compute here.
    del article_ids, article_length

    emb = params["embedding"]
    x = emb[question_ids].astype(jnp.float32)          # (B, Tq, E)
    B, Tq, E = x.shape

    gq = params["question_gru"]
    at = params["attn"]
    hd = params["head"]
    H = gq["whh_f"].shape[1]
    C = hd["wc"].shape[0]

    # Masks precomputed once.
    lens = question_length.reshape(B, 1).astype(jnp.int32)
    t_idx = jnp.arange(Tq, dtype=jnp.int32)[None, :]
    valid = (t_idx < lens).astype(jnp.float32)          # (B, Tq)
    omask = valid * (question_ids > 0).astype(jnp.float32)

    # Flatten x in the wrapper so the kernel never reshapes a ref.
    x_flat = x.reshape(B * Tq, E)

    # ---- weight layout (all done once, in XLA) ------------------------------
    # Fused input projection: (E, 6H) = [fwd 3H | bwd 3H].
    wih = jnp.concatenate([gq["wih_f"].T, gq["wih_b"].T], axis=1)
    bih = jnp.concatenate([gq["bih_f"], gq["bih_b"]], axis=1)
    # Block-diagonal recurrent weight: (2H, 6H).
    whh = jnp.zeros((2 * H, 6 * H), jnp.float32)
    whh = whh.at[:H, :3 * H].set(gq["whh_f"].T)
    whh = whh.at[H:, 3 * H:].set(gq["whh_b"].T)
    bhh = jnp.concatenate([gq["bhh_f"], gq["bhh_b"]], axis=1)
    # Fused attention projection: (2H, 6H) = [Wq.T | Wk.T | Wv.T].
    wqkv = jnp.concatenate([at["wq"].T, at["wk"].T, at["wv"].T], axis=1)
    bqkv = jnp.concatenate([at["bq"], at["bk"], at["bv"]], axis=1)
    wm_t, wc_t = hd["wm"].T, hd["wc"].T

    args = (x_flat, valid, omask, wih, bih, whh, bhh, wqkv, bqkv,
            wm_t, hd["bm"], wc_t, hd["bc"])

    def full_spec(a):
        nd = a.ndim
        return pl.BlockSpec(tuple(a.shape), lambda i, _nd=nd: (0,) * _nd)

    # Single grid step: the recurrence is latency-bound, so splitting the
    # (tiny) batch across grid steps only serializes the critical chain twice.
    logits = pl.pallas_call(
        _reader_fused_kernel,
        out_shape=jax.ShapeDtypeStruct((B, C), jnp.float32),
        grid=(1,),
        in_specs=[full_spec(a) for a in args],
        out_specs=pl.BlockSpec((B, C), lambda i: (0, 0)),
        compiler_params=pltpu.CompilerParams(
            dimension_semantics=("arbitrary",)),
    )(*args)
    return logits                                       # (B, C)


# ----------------------------------------------------------------------------
# Pure-JAX reference (question branch of the module, exact softmax) for a
# correctness smoke test.
# ----------------------------------------------------------------------------
def _reference_forward(params, question_ids, question_length):
    gq = params["question_gru"]
    at = params["attn"]
    hd = params["head"]
    x = params["embedding"][question_ids].astype(jnp.float32)
    B, T, _ = x.shape
    H = gq["whh_f"].shape[1]
    lens = question_length.reshape(B, 1).astype(jnp.int32)

    def run_dir(wih, whh, bih, bhh, times):
        h = jnp.zeros((B, H), jnp.float32)
        outs = [None] * T
        for t in times:
            gi = x[:, t, :] @ wih.T + bih
            gh = h @ whh.T + bhh
            r = jax.nn.sigmoid(gi[:, :H] + gh[:, :H])
            z = jax.nn.sigmoid(gi[:, H:2 * H] + gh[:, H:2 * H])
            n = jnp.tanh(gi[:, 2 * H:] + r * gh[:, 2 * H:])
            h_new = (1.0 - z) * n + z * h
            valid = (t < lens).astype(jnp.float32)
            h = valid * h_new + (1.0 - valid) * h
            outs[t] = valid * h_new
        return jnp.stack(outs, axis=1)

    out_f = run_dir(gq["wih_f"], gq["whh_f"], gq["bih_f"], gq["bhh_f"],
                    range(T))
    out_b = run_dir(gq["wih_b"], gq["whh_b"], gq["bih_b"], gq["bhh_b"],
                    range(T - 1, -1, -1))
    q_out = jnp.concatenate([out_f, out_b], axis=-1)
    q_out = q_out * (question_ids > 0).astype(jnp.float32)[..., None]

    q = q_out @ at["wq"].T + at["bq"]
    k = q_out @ at["wk"].T + at["bk"]
    v = q_out @ at["wv"].T + at["bv"]
    scores = jnp.einsum("btd,bsd->bts", q, k) / jnp.sqrt(jnp.float32(2 * H))
    w = jax.nn.softmax(scores, axis=-1)
    pooled = jnp.einsum("bts,bsd->btd", w, v)
    merged = jnp.tanh(pooled @ hd["wm"].T + hd["bm"])
    logits = merged @ hd["wc"].T + hd["bc"]
    return logits[:, -1, :]


# ----------------------------------------------------------------------------
# Deterministic parameter init (shapes match the PyTorch module's __init__)
# ----------------------------------------------------------------------------
def init_params(key, vocab_size, E, H, C):
    ks = jax.random.split(key, 32)

    def n(k, shape, scale=0.1):
        return (scale * jax.random.normal(k, shape)).astype(jnp.float32)

    D = 2 * H

    def gru_params(o):
        return {
            "wih_f": n(ks[o + 0], (3 * H, E)), "whh_f": n(ks[o + 1], (3 * H, H)),
            "bih_f": n(ks[o + 2], (1, 3 * H)), "bhh_f": n(ks[o + 3], (1, 3 * H)),
            "wih_b": n(ks[o + 4], (3 * H, E)), "whh_b": n(ks[o + 5], (3 * H, H)),
            "bih_b": n(ks[o + 6], (1, 3 * H)), "bhh_b": n(ks[o + 7], (1, 3 * H)),
        }

    return {
        "embedding": n(ks[0], (vocab_size, E), scale=1.0),
        "article_gru": gru_params(1),     # kept for interface parity; unused
        "question_gru": gru_params(9),
        "attn": {
            "wq": n(ks[17], (D, D)), "bq": n(ks[18], (1, D)),
            "wk": n(ks[19], (D, D)), "bk": n(ks[20], (1, D)),
            "wv": n(ks[21], (D, D)), "bv": n(ks[22], (1, D)),
        },
        "head": {
            "wm": n(ks[23], (H, D)), "bm": n(ks[24], (1, H)),
            "wc": n(ks[25], (C, H)), "bc": n(ks[26], (1, C)),
        },
    }


if __name__ == "__main__":
    vocab_size, embedding_dim, hidden_dim, num_choices = 50, 16, 32, 4
    B, Ta, Tq = 2, 16, 8

    key = jax.random.PRNGKey(0)
    k_par, k_a, k_q = jax.random.split(key, 3)
    params = init_params(k_par, vocab_size, embedding_dim, hidden_dim, num_choices)

    article_length = jnp.array([16, 10], dtype=jnp.int32)
    question_length = jnp.array([8, 5], dtype=jnp.int32)

    raw_a = jax.random.randint(k_a, (B, Ta), 1, vocab_size)
    raw_q = jax.random.randint(k_q, (B, Tq), 1, vocab_size)
    article_ids = jnp.where(jnp.arange(Ta)[None, :] < article_length[:, None], raw_a, 0)
    question_ids = jnp.where(jnp.arange(Tq)[None, :] < question_length[:, None], raw_q, 0)

    fwd = jax.jit(reader_forward)
    logits = fwd(params, article_ids, question_ids, article_length, question_length)
    logits = jax.block_until_ready(logits)

    assert logits.shape == (B, num_choices)
    assert bool(jnp.all(jnp.isfinite(logits)))

    with jax.default_matmul_precision("float32"):
        ref = _reference_forward(params, question_ids, question_length)
    max_err = float(jnp.max(jnp.abs(logits - ref)))
    assert max_err < 5e-2, f"kernel/reference mismatch: {max_err}"

    print("KERNEL_OK")
</pallas_src>

<mosaic_0001>
module attributes {stable_mosaic.version = 11 : i64} {
  func.func @_reader_fused_kernel(%arg0: i32, %arg1: memref<16x16xf32, #tpu.memory_space<vmem>>, %arg2: memref<2x8xf32, #tpu.memory_space<vmem>>, %arg3: memref<2x8xf32, #tpu.memory_space<vmem>>, %arg4: memref<16x192xf32, #tpu.memory_space<vmem>>, %arg5: memref<1x192xf32, #tpu.memory_space<vmem>>, %arg6: memref<64x192xf32, #tpu.memory_space<vmem>>, %arg7: memref<1x192xf32, #tpu.memory_space<vmem>>, %arg8: memref<64x192xf32, #tpu.memory_space<vmem>>, %arg9: memref<1x192xf32, #tpu.memory_space<vmem>>, %arg10: memref<64x32xf32, #tpu.memory_space<vmem>>, %arg11: memref<1x32xf32, #tpu.memory_space<vmem>>, %arg12: memref<32x4xf32, #tpu.memory_space<vmem>>, %arg13: memref<1x4xf32, #tpu.memory_space<vmem>>, %arg14: memref<2x4xf32, #tpu.memory_space<vmem>>) attributes {dimension_semantics = [#tpu.dimension_semantics<arbitrary>], iteration_bounds = array<i64: 1>, scalar_prefetch = 0 : i64, scratch_operands = 0 : i64, tpu.core_type = #tpu.core_type<tc>, window_params = [{pipeline_mode = #tpu.pipeline_mode<synchronous>, transform_indices = @transform_0, window_bounds = array<i64: 16, 16>}, {pipeline_mode = #tpu.pipeline_mode<synchronous>, transform_indices = @transform_1, window_bounds = array<i64: 2, 8>}, {pipeline_mode = #tpu.pipeline_mode<synchronous>, transform_indices = @transform_2, window_bounds = array<i64: 2, 8>}, {pipeline_mode = #tpu.pipeline_mode<synchronous>, transform_indices = @transform_3, window_bounds = array<i64: 16, 192>}, {pipeline_mode = #tpu.pipeline_mode<synchronous>, transform_indices = @transform_4, window_bounds = array<i64: 1, 192>}, {pipeline_mode = #tpu.pipeline_mode<synchronous>, transform_indices = @transform_5, window_bounds = array<i64: 64, 192>}, {pipeline_mode = #tpu.pipeline_mode<synchronous>, transform_indices = @transform_6, window_bounds = array<i64: 1, 192>}, {pipeline_mode = #tpu.pipeline_mode<synchronous>, transform_indices = @transform_7, window_bounds = array<i64: 64, 192>}, {pipeline_mode = #tpu.pipeline_mode<synchronous>, transform_indices = @transform_8, window_bounds = array<i64: 1, 192>}, {pipeline_mode = #tpu.pipeline_mode<synchronous>, transform_indices = @transform_9, window_bounds = array<i64: 64, 32>}, {pipeline_mode = #tpu.pipeline_mode<synchronous>, transform_indices = @transform_10, window_bounds = array<i64: 1, 32>}, {pipeline_mode = #tpu.pipeline_mode<synchronous>, transform_indices = @transform_11, window_bounds = array<i64: 32, 4>}, {pipeline_mode = #tpu.pipeline_mode<synchronous>, transform_indices = @transform_12, window_bounds = array<i64: 1, 4>}, {pipeline_mode = #tpu.pipeline_mode<synchronous>, transform_indices = @transform_13, window_bounds = array<i64: 2, 4>}]} {
    %c0 = arith.constant 0 : index
    %c0_0 = arith.constant 0 : index
    %0 = vector.load %arg1[%c0, %c0_0] : memref<16x16xf32, #tpu.memory_space<vmem>>, vector<16x16xf32>
    %c0_1 = arith.constant 0 : index
    %c0_2 = arith.constant 0 : index
    %1 = vector.load %arg2[%c0_1, %c0_2] : memref<2x8xf32, #tpu.memory_space<vmem>>, vector<2x8xf32>
    %c0_3 = arith.constant 0 : index
    %c0_4 = arith.constant 0 : index
    %2 = vector.load %arg3[%c0_3, %c0_4] : memref<2x8xf32, #tpu.memory_space<vmem>>, vector<2x8xf32>
    %c0_5 = arith.constant 0 : index
    %c0_6 = arith.constant 0 : index
    %3 = vector.load %arg4[%c0_5, %c0_6] : memref<16x192xf32, #tpu.memory_space<vmem>>, vector<16x192xf32>
    %cst = arith.constant dense<0.000000e+00> : vector<16x192xf32>
    %4 = tpu.matmul %0, %3, %cst {dimension_numbers = #tpu.dot_dimension_numbers<[1], [0], [0], [1], [0, 0, 1, 1], [], []>} : vector<16x16xf32>, vector<16x192xf32>, vector<16x192xf32> -> vector<16x192xf32>
    %c0_7 = arith.constant 0 : index
    %c0_8 = arith.constant 0 : index
    %5 = vector.load %arg5[%c0_7, %c0_8] : memref<1x192xf32, #tpu.memory_space<vmem>>, vector<1x192xf32>
    %6 = vector.broadcast %5 : vector<1x192xf32> to vector<16x192xf32>
    %7 = arith.addf %4, %6 : vector<16x192xf32>
    %8 = vector.shape_cast %7 : vector<16x192xf32> to vector<2x8x192xf32>
    %c0_9 = arith.constant 0 : index
    %c0_10 = arith.constant 0 : index
    %9 = vector.load %arg6[%c0_9, %c0_10] : memref<64x192xf32, #tpu.memory_space<vmem>>, vector<64x192xf32>
    %c0_11 = arith.constant 0 : index
    %c0_12 = arith.constant 0 : index
    %10 = vector.load %arg7[%c0_11, %c0_12] : memref<1x192xf32, #tpu.memory_space<vmem>>, vector<1x192xf32>
    %11 = vector.shape_cast %10 : vector<1x192xf32> to vector<1x192xf32>
    %12 = vector.broadcast %11 : vector<1x192xf32> to vector<2x192xf32>
    %cst_13 = arith.constant 0.000000e+00 : f32
    %13 = vector.broadcast %cst_13 : f32 to vector<2x64xf32>
    %cst_14 = arith.constant dense<0.000000e+00> : vector<2x192xf32>
    %14 = tpu.matmul %13, %9, %cst_14 {dimension_numbers = #tpu.dot_dimension_numbers<[1], [0], [0], [1], [0, 0, 1, 1], [], []>} : vector<2x64xf32>, vector<64x192xf32>, vector<2x192xf32> -> vector<2x192xf32>
    %15 = arith.addf %14, %12 : vector<2x192xf32>
    %16 = vector.extract_strided_slice %8 {offsets = [0, 0, 0], sizes = [2, 1, 96], strides = [1, 1, 1]} : vector<2x8x192xf32> to vector<2x1x96xf32>
    %17 = vector.shape_cast %16 : vector<2x1x96xf32> to vector<2x96xf32>
    %18 = vector.extract_strided_slice %8 {offsets = [0, 7, 96], sizes = [2, 1, 96], strides = [1, 1, 1]} : vector<2x8x192xf32> to vector<2x1x96xf32>
    %19 = vector.shape_cast %18 : vector<2x1x96xf32> to vector<2x96xf32>
    %20 = vector.extract_strided_slice %15 {offsets = [0, 0], sizes = [2, 96], strides = [1, 1]} : vector<2x192xf32> to vector<2x96xf32>
    %21 = vector.extract_strided_slice %15 {offsets = [0, 96], sizes = [2, 96], strides = [1, 1]} : vector<2x192xf32> to vector<2x96xf32>
    %22 = vector.extract_strided_slice %13 {offsets = [0, 0], sizes = [2, 32], strides = [1, 1]} : vector<2x64xf32> to vector<2x32xf32>
    %23 = vector.extract_strided_slice %13 {offsets = [0, 32], sizes = [2, 32], strides = [1, 1]} : vector<2x64xf32> to vector<2x32xf32>
    %24 = vector.extract_strided_slice %17 {offsets = [0, 0], sizes = [2, 32], strides = [1, 1]} : vector<2x96xf32> to vector<2x32xf32>
    %25 = vector.extract_strided_slice %20 {offsets = [0, 0], sizes = [2, 32], strides = [1, 1]} : vector<2x96xf32> to vector<2x32xf32>
    %26 = arith.addf %24, %25 : vector<2x32xf32>
    %27 = arith.negf %26 : vector<2x32xf32>
    %28 = math.exp %27 : vector<2x32xf32>
    %cst_15 = arith.constant 1.000000e+00 : f32
    %29 = vector.broadcast %cst_15 : f32 to vector<2x32xf32>
    %30 = arith.addf %29, %28 : vector<2x32xf32>
    %31 = arith.divf %29, %30 : vector<2x32xf32>
    %32 = vector.extract_strided_slice %17 {offsets = [0, 32], sizes = [2, 32], strides = [1, 1]} : vector<2x96xf32> to vector<2x32xf32>
    %33 = vector.extract_strided_slice %20 {offsets = [0, 32], sizes = [2, 32], strides = [1, 1]} : vector<2x96xf32> to vector<2x32xf32>
    %34 = arith.addf %32, %33 : vector<2x32xf32>
    %35 = arith.negf %34 : vector<2x32xf32>
    %36 = math.exp %35 : vector<2x32xf32>
    %cst_16 = arith.constant 1.000000e+00 : f32
    %37 = vector.broadcast %cst_16 : f32 to vector<2x32xf32>
    %38 = arith.addf %37, %36 : vector<2x32xf32>
    %39 = arith.divf %37, %38 : vector<2x32xf32>
    %40 = vector.extract_strided_slice %17 {offsets = [0, 64], sizes = [2, 32], strides = [1, 1]} : vector<2x96xf32> to vector<2x32xf32>
    %41 = vector.extract_strided_slice %20 {offsets = [0, 64], sizes = [2, 32], strides = [1, 1]} : vector<2x96xf32> to vector<2x32xf32>
    %42 = arith.mulf %31, %41 : vector<2x32xf32>
    %43 = arith.addf %40, %42 : vector<2x32xf32>
    %44 = math.tanh %43 : vector<2x32xf32>
    %cst_17 = arith.constant 1.000000e+00 : f32
    %45 = vector.broadcast %cst_17 : f32 to vector<2x32xf32>
    %46 = arith.subf %45, %39 : vector<2x32xf32>
    %47 = arith.mulf %46, %44 : vector<2x32xf32>
    %48 = arith.mulf %39, %22 : vector<2x32xf32>
    %49 = arith.addf %47, %48 : vector<2x32xf32>
    %50 = vector.extract_strided_slice %19 {offsets = [0, 0], sizes = [2, 32], strides = [1, 1]} : vector<2x96xf32> to vector<2x32xf32>
    %51 = vector.extract_strided_slice %21 {offsets = [0, 0], sizes = [2, 32], strides = [1, 1]} : vector<2x96xf32> to vector<2x32xf32>
    %52 = arith.addf %50, %51 : vector<2x32xf32>
    %53 = arith.negf %52 : vector<2x32xf32>
    %54 = math.exp %53 : vector<2x32xf32>
    %cst_18 = arith.constant 1.000000e+00 : f32
    %55 = vector.broadcast %cst_18 : f32 to vector<2x32xf32>
    %56 = arith.addf %55, %54 : vector<2x32xf32>
    %57 = arith.divf %55, %56 : vector<2x32xf32>
    %58 = vector.extract_strided_slice %19 {offsets = [0, 32], sizes = [2, 32], strides = [1, 1]} : vector<2x96xf32> to vector<2x32xf32>
    %59 = vector.extract_strided_slice %21 {offsets = [0, 32], sizes = [2, 32], strides = [1, 1]} : vector<2x96xf32> to vector<2x32xf32>
    %60 = arith.addf %58, %59 : vector<2x32xf32>
    %61 = arith.negf %60 : vector<2x32xf32>
    %62 = math.exp %61 : vector<2x32xf32>
    %cst_19 = arith.constant 1.000000e+00 : f32
    %63 = vector.broadcast %cst_19 : f32 to vector<2x32xf32>
    %64 = arith.addf %63, %62 : vector<2x32xf32>
    %65 = arith.divf %63, %64 : vector<2x32xf32>
    %66 = vector.extract_strided_slice %19 {offsets = [0, 64], sizes = [2, 32], strides = [1, 1]} : vector<2x96xf32> to vector<2x32xf32>
    %67 = vector.extract_strided_slice %21 {offsets = [0, 64], sizes = [2, 32], strides = [1, 1]} : vector<2x96xf32> to vector<2x32xf32>
    %68 = arith.mulf %57, %67 : vector<2x32xf32>
    %69 = arith.addf %66, %68 : vector<2x32xf32>
    %70 = math.tanh %69 : vector<2x32xf32>
    %cst_20 = arith.constant 1.000000e+00 : f32
    %71 = vector.broadcast %cst_20 : f32 to vector<2x32xf32>
    %72 = arith.subf %71, %65 : vector<2x32xf32>
    %73 = arith.mulf %72, %70 : vector<2x32xf32>
    %74 = arith.mulf %65, %23 : vector<2x32xf32>
    %75 = arith.addf %73, %74 : vector<2x32xf32>
    %76 = vector.extract_strided_slice %1 {offsets = [0, 0], sizes = [2, 1], strides = [1, 1]} : vector<2x8xf32> to vector<2x1xf32>
    %77 = vector.extract_strided_slice %1 {offsets = [0, 7], sizes = [2, 1], strides = [1, 1]} : vector<2x8xf32> to vector<2x1xf32>
    %78 = vector.broadcast %76 : vector<2x1xf32> to vector<2x32xf32>
    %79 = arith.mulf %78, %49 : vector<2x32xf32>
    %cst_21 = arith.constant 1.000000e+00 : f32
    %80 = vector.broadcast %cst_21 : f32 to vector<2x1xf32>
    %81 = arith.subf %80, %76 : vector<2x1xf32>
    %82 = vector.broadcast %81 : vector<2x1xf32> to vector<2x32xf32>
    %83 = arith.mulf %82, %22 : vector<2x32xf32>
    %84 = arith.addf %79, %83 : vector<2x32xf32>
    %85 = vector.broadcast %77 : vector<2x1xf32> to vector<2x32xf32>
    %86 = arith.mulf %85, %75 : vector<2x32xf32>
    %cst_22 = arith.constant 1.000000e+00 : f32
    %87 = vector.broadcast %cst_22 : f32 to vector<2x1xf32>
    %88 = arith.subf %87, %77 : vector<2x1xf32>
    %89 = vector.broadcast %88 : vector<2x1xf32> to vector<2x32xf32>
    %90 = arith.mulf %89, %23 : vector<2x32xf32>
    %91 = arith.addf %86, %90 : vector<2x32xf32>
    %92 = tpu.concatenate %84, %91 in 1 : vector<2x32xf32>, vector<2x32xf32> -> vector<2x64xf32>
    %93 = vector.extract_strided_slice %2 {offsets = [0, 0], sizes = [2, 1], strides = [1, 1]} : vector<2x8xf32> to vector<2x1xf32>
    %94 = vector.broadcast %93 : vector<2x1xf32> to vector<2x32xf32>
    %95 = arith.mulf %94, %49 : vector<2x32xf32>
    %96 = vector.extract_strided_slice %2 {offsets = [0, 7], sizes = [2, 1], strides = [1, 1]} : vector<2x8xf32> to vector<2x1xf32>
    %97 = vector.broadcast %96 : vector<2x1xf32> to vector<2x32xf32>
    %98 = arith.mulf %97, %75 : vector<2x32xf32>
    %cst_23 = arith.constant dense<0.000000e+00> : vector<2x192xf32>
    %99 = tpu.matmul %92, %9, %cst_23 {dimension_numbers = #tpu.dot_dimension_numbers<[1], [0], [0], [1], [0, 0, 1, 1], [], []>} : vector<2x64xf32>, vector<64x192xf32>, vector<2x192xf32> -> vector<2x192xf32>
    %100 = arith.addf %99, %12 : vector<2x192xf32>
    %101 = vector.extract_strided_slice %8 {offsets = [0, 1, 0], sizes = [2, 1, 96], strides = [1, 1, 1]} : vector<2x8x192xf32> to vector<2x1x96xf32>
    %102 = vector.shape_cast %101 : vector<2x1x96xf32> to vector<2x96xf32>
    %103 = vector.extract_strided_slice %8 {offsets = [0, 6, 96], sizes = [2, 1, 96], strides = [1, 1, 1]} : vector<2x8x192xf32> to vector<2x1x96xf32>
    %104 = vector.shape_cast %103 : vector<2x1x96xf32> to vector<2x96xf32>
    %105 = vector.extract_strided_slice %100 {offsets = [0, 0], sizes = [2, 96], strides = [1, 1]} : vector<2x192xf32> to vector<2x96xf32>
    %106 = vector.extract_strided_slice %100 {offsets = [0, 96], sizes = [2, 96], strides = [1, 1]} : vector<2x192xf32> to vector<2x96xf32>
    %107 = vector.extract_strided_slice %92 {offsets = [0, 0], sizes = [2, 32], strides = [1, 1]} : vector<2x64xf32> to vector<2x32xf32>
    %108 = vector.extract_strided_slice %92 {offsets = [0, 32], sizes = [2, 32], strides = [1, 1]} : vector<2x64xf32> to vector<2x32xf32>
    %109 = vector.extract_strided_slice %102 {offsets = [0, 0], sizes = [2, 32], strides = [1, 1]} : vector<2x96xf32> to vector<2x32xf32>
    %110 = vector.extract_strided_slice %105 {offsets = [0, 0], sizes = [2, 32], strides = [1, 1]} : vector<2x96xf32> to vector<2x32xf32>
    %111 = arith.addf %109, %110 : vector<2x32xf32>
    %112 = arith.negf %111 : vector<2x32xf32>
    %113 = math.exp %112 : vector<2x32xf32>
    %cst_24 = arith.constant 1.000000e+00 : f32
    %114 = vector.broadcast %cst_24 : f32 to vector<2x32xf32>
    %115 = arith.addf %114, %113 : vector<2x32xf32>
    %116 = arith.divf %114, %115 : vector<2x32xf32>
    %117 = vector.extract_strided_slice %102 {offsets = [0, 32], sizes = [2, 32], strides = [1, 1]} : vector<2x96xf32> to vector<2x32xf32>
    %118 = vector.extract_strided_slice %105 {offsets = [0, 32], sizes = [2, 32], strides = [1, 1]} : vector<2x96xf32> to vector<2x32xf32>
    %119 = arith.addf %117, %118 : vector<2x32xf32>
    %120 = arith.negf %119 : vector<2x32xf32>
    %121 = math.exp %120 : vector<2x32xf32>
    %cst_25 = arith.constant 1.000000e+00 : f32
    %122 = vector.broadcast %cst_25 : f32 to vector<2x32xf32>
    %123 = arith.addf %122, %121 : vector<2x32xf32>
    %124 = arith.divf %122, %123 : vector<2x32xf32>
    %125 = vector.extract_strided_slice %102 {offsets = [0, 64], sizes = [2, 32], strides = [1, 1]} : vector<2x96xf32> to vector<2x32xf32>
    %126 = vector.extract_strided_slice %105 {offsets = [0, 64], sizes = [2, 32], strides = [1, 1]} : vector<2x96xf32> to vector<2x32xf32>
    %127 = arith.mulf %116, %126 : vector<2x32xf32>
    %128 = arith.addf %125, %127 : vector<2x32xf32>
    %129 = math.tanh %128 : vector<2x32xf32>
    %cst_26 = arith.constant 1.000000e+00 : f32
    %130 = vector.broadcast %cst_26 : f32 to vector<2x32xf32>
    %131 = arith.subf %130, %124 : vector<2x32xf32>
    %132 = arith.mulf %131, %129 : vector<2x32xf32>
    %133 = arith.mulf %124, %107 : vector<2x32xf32>
    %134 = arith.addf %132, %133 : vector<2x32xf32>
    %135 = vector.extract_strided_slice %104 {offsets = [0, 0], sizes = [2, 32], strides = [1, 1]} : vector<2x96xf32> to vector<2x32xf32>
    %136 = vector.extract_strided_slice %106 {offsets = [0, 0], sizes = [2, 32], strides = [1, 1]} : vector<2x96xf32> to vector<2x32xf32>
    %137 = arith.addf %135, %136 : vector<2x32xf32>
    %138 = arith.negf %137 : vector<2x32xf32>
    %139 = math.exp %138 : vector<2x32xf32>
    %cst_27 = arith.constant 1.000000e+00 : f32
    %140 = vector.broadcast %cst_27 : f32 to vector<2x32xf32>
    %141 = arith.addf %140, %139 : vector<2x32xf32>
    %142 = arith.divf %140, %141 : vector<2x32xf32>
    %143 = vector.extract_strided_slice %104 {offsets = [0, 32], sizes = [2, 32], strides = [1, 1]} : vector<2x96xf32> to vector<2x32xf32>
    %144 = vector.extract_strided_slice %106 {offsets = [0, 32], sizes = [2, 32], strides = [1, 1]} : vector<2x96xf32> to vector<2x32xf32>
    %145 = arith.addf %143, %144 : vector<2x32xf32>
    %146 = arith.negf %145 : vector<2x32xf32>
    %147 = math.exp %146 : vector<2x32xf32>
    %cst_28 = arith.constant 1.000000e+00 : f32
    %148 = vector.broadcast %cst_28 : f32 to vector<2x32xf32>
    %149 = arith.addf %148, %147 : vector<2x32xf32>
    %150 = arith.divf %148, %149 : vector<2x32xf32>
    %151 = vector.extract_strided_slice %104 {offsets = [0, 64], sizes = [2, 32], strides = [1, 1]} : vector<2x96xf32> to vector<2x32xf32>
    %152 = vector.extract_strided_slice %106 {offsets = [0, 64], sizes = [2, 32], strides = [1, 1]} : vector<2x96xf32> to vector<2x32xf32>
    %153 = arith.mulf %142, %152 : vector<2x32xf32>
    %154 = arith.addf %151, %153 : vector<2x32xf32>
    %155 = math.tanh %154 : vector<2x32xf32>
    %cst_29 = arith.constant 1.000000e+00 : f32
    %156 = vector.broadcast %cst_29 : f32 to vector<2x32xf32>
    %157 = arith.subf %156, %150 : vector<2x32xf32>
    %158 = arith.mulf %157, %155 : vector<2x32xf32>
    %159 = arith.mulf %150, %108 : vector<2x32xf32>
    %160 = arith.addf %158, %159 : vector<2x32xf32>
    %161 = vector.extract_strided_slice %1 {offsets = [0, 1], sizes = [2, 1], strides = [1, 1]} : vector<2x8xf32> to vector<2x1xf32>
    %162 = vector.extract_strided_slice %1 {offsets = [0, 6], sizes = [2, 1], strides = [1, 1]} : vector<2x8xf32> to vector<2x1xf32>
    %163 = vector.broadcast %161 : vector<2x1xf32> to vector<2x32xf32>
    %164 = arith.mulf %163, %134 : vector<2x32xf32>
    %cst_30 = arith.constant 1.000000e+00 : f32
    %165 = vector.broadcast %cst_30 : f32 to vector<2x1xf32>
    %166 = arith.subf %165, %161 : vector<2x1xf32>
    %167 = vector.broadcast %166 : vector<2x1xf32> to vector<2x32xf32>
    %168 = arith.mulf %167, %107 : vector<2x32xf32>
    %169 = arith.addf %164, %168 : vector<2x32xf32>
    %170 = vector.broadcast %162 : vector<2x1xf32> to vector<2x32xf32>
    %171 = arith.mulf %170, %160 : vector<2x32xf32>
    %cst_31 = arith.constant 1.000000e+00 : f32
    %172 = vector.broadcast %cst_31 : f32 to vector<2x1xf32>
    %173 = arith.subf %172, %162 : vector<2x1xf32>
    %174 = vector.broadcast %173 : vector<2x1xf32> to vector<2x32xf32>
    %175 = arith.mulf %174, %108 : vector<2x32xf32>
    %176 = arith.addf %171, %175 : vector<2x32xf32>
    %177 = tpu.concatenate %169, %176 in 1 : vector<2x32xf32>, vector<2x32xf32> -> vector<2x64xf32>
    %178 = vector.extract_strided_slice %2 {offsets = [0, 1], sizes = [2, 1], strides = [1, 1]} : vector<2x8xf32> to vector<2x1xf32>
    %179 = vector.broadcast %178 : vector<2x1xf32> to vector<2x32xf32>
    %180 = arith.mulf %179, %134 : vector<2x32xf32>
    %181 = vector.extract_strided_slice %2 {offsets = [0, 6], sizes = [2, 1], strides = [1, 1]} : vector<2x8xf32> to vector<2x1xf32>
    %182 = vector.broadcast %181 : vector<2x1xf32> to vector<2x32xf32>
    %183 = arith.mulf %182, %160 : vector<2x32xf32>
    %cst_32 = arith.constant dense<0.000000e+00> : vector<2x192xf32>
    %184 = tpu.matmul %177, %9, %cst_32 {dimension_numbers = #tpu.dot_dimension_numbers<[1], [0], [0], [1], [0, 0, 1, 1], [], []>} : vector<2x64xf32>, vector<64x192xf32>, vector<2x192xf32> -> vector<2x192xf32>
    %185 = arith.addf %184, %12 : vector<2x192xf32>
    %186 = vector.extract_strided_slice %8 {offsets = [0, 2, 0], sizes = [2, 1, 96], strides = [1, 1, 1]} : vector<2x8x192xf32> to vector<2x1x96xf32>
    %187 = vector.shape_cast %186 : vector<2x1x96xf32> to vector<2x96xf32>
    %188 = vector.extract_strided_slice %8 {offsets = [0, 5, 96], sizes = [2, 1, 96], strides = [1, 1, 1]} : vector<2x8x192xf32> to vector<2x1x96xf32>
    %189 = vector.shape_cast %188 : vector<2x1x96xf32> to vector<2x96xf32>
    %190 = vector.extract_strided_slice %185 {offsets = [0, 0], sizes = [2, 96], strides = [1, 1]} : vector<2x192xf32> to vector<2x96xf32>
    %191 = vector.extract_strided_slice %185 {offsets = [0, 96], sizes = [2, 96], strides = [1, 1]} : vector<2x192xf32> to vector<2x96xf32>
    %192 = vector.extract_strided_slice %177 {offsets = [0, 0], sizes = [2, 32], strides = [1, 1]} : vector<2x64xf32> to vector<2x32xf32>
    %193 = vector.extract_strided_slice %177 {offsets = [0, 32], sizes = [2, 32], strides = [1, 1]} : vector<2x64xf32> to vector<2x32xf32>
    %194 = vector.extract_strided_slice %187 {offsets = [0, 0], sizes = [2, 32], strides = [1, 1]} : vector<2x96xf32> to vector<2x32xf32>
    %195 = vector.extract_strided_slice %190 {offsets = [0, 0], sizes = [2, 32], strides = [1, 1]} : vector<2x96xf32> to vector<2x32xf32>
    %196 = arith.addf %194, %195 : vector<2x32xf32>
    %197 = arith.negf %196 : vector<2x32xf32>
    %198 = math.exp %197 : vector<2x32xf32>
    %cst_33 = arith.constant 1.000000e+00 : f32
    %199 = vector.broadcast %cst_33 : f32 to vector<2x32xf32>
    %200 = arith.addf %199, %198 : vector<2x32xf32>
    %201 = arith.divf %199, %200 : vector<2x32xf32>
    %202 = vector.extract_strided_slice %187 {offsets = [0, 32], sizes = [2, 32], strides = [1, 1]} : vector<2x96xf32> to vector<2x32xf32>
    %203 = vector.extract_strided_slice %190 {offsets = [0, 32], sizes = [2, 32], strides = [1, 1]} : vector<2x96xf32> to vector<2x32xf32>
    %204 = arith.addf %202, %203 : vector<2x32xf32>
    %205 = arith.negf %204 : vector<2x32xf32>
    %206 = math.exp %205 : vector<2x32xf32>
    %cst_34 = arith.constant 1.000000e+00 : f32
    %207 = vector.broadcast %cst_34 : f32 to vector<2x32xf32>
    %208 = arith.addf %207, %206 : vector<2x32xf32>
    %209 = arith.divf %207, %208 : vector<2x32xf32>
    %210 = vector.extract_strided_slice %187 {offsets = [0, 64], sizes = [2, 32], strides = [1, 1]} : vector<2x96xf32> to vector<2x32xf32>
    %211 = vector.extract_strided_slice %190 {offsets = [0, 64], sizes = [2, 32], strides = [1, 1]} : vector<2x96xf32> to vector<2x32xf32>
    %212 = arith.mulf %201, %211 : vector<2x32xf32>
    %213 = arith.addf %210, %212 : vector<2x32xf32>
    %214 = math.tanh %213 : vector<2x32xf32>
    %cst_35 = arith.constant 1.000000e+00 : f32
    %215 = vector.broadcast %cst_35 : f32 to vector<2x32xf32>
    %216 = arith.subf %215, %209 : vector<2x32xf32>
    %217 = arith.mulf %216, %214 : vector<2x32xf32>
    %218 = arith.mulf %209, %192 : vector<2x32xf32>
    %219 = arith.addf %217, %218 : vector<2x32xf32>
    %220 = vector.extract_strided_slice %189 {offsets = [0, 0], sizes = [2, 32], strides = [1, 1]} : vector<2x96xf32> to vector<2x32xf32>
    %221 = vector.extract_strided_slice %191 {offsets = [0, 0], sizes = [2, 32], strides = [1, 1]} : vector<2x96xf32> to vector<2x32xf32>
    %222 = arith.addf %220, %221 : vector<2x32xf32>
    %223 = arith.negf %222 : vector<2x32xf32>
    %224 = math.exp %223 : vector<2x32xf32>
    %cst_36 = arith.constant 1.000000e+00 : f32
    %225 = vector.broadcast %cst_36 : f32 to vector<2x32xf32>
    %226 = arith.addf %225, %224 : vector<2x32xf32>
    %227 = arith.divf %225, %226 : vector<2x32xf32>
    %228 = vector.extract_strided_slice %189 {offsets = [0, 32], sizes = [2, 32], strides = [1, 1]} : vector<2x96xf32> to vector<2x32xf32>
    %229 = vector.extract_strided_slice %191 {offsets = [0, 32], sizes = [2, 32], strides = [1, 1]} : vector<2x96xf32> to vector<2x32xf32>
    %230 = arith.addf %228, %229 : vector<2x32xf32>
    %231 = arith.negf %230 : vector<2x32xf32>
    %232 = math.exp %231 : vector<2x32xf32>
    %cst_37 = arith.constant 1.000000e+00 : f32
    %233 = vector.broadcast %cst_37 : f32 to vector<2x32xf32>
    %234 = arith.addf %233, %232 : vector<2x32xf32>
    %235 = arith.divf %233, %234 : vector<2x32xf32>
    %236 = vector.extract_strided_slice %189 {offsets = [0, 64], sizes = [2, 32], strides = [1, 1]} : vector<2x96xf32> to vector<2x32xf32>
    %237 = vector.extract_strided_slice %191 {offsets = [0, 64], sizes = [2, 32], strides = [1, 1]} : vector<2x96xf32> to vector<2x32xf32>
    %238 = arith.mulf %227, %237 : vector<2x32xf32>
    %239 = arith.addf %236, %238 : vector<2x32xf32>
    %240 = math.tanh %239 : vector<2x32xf32>
    %cst_38 = arith.constant 1.000000e+00 : f32
    %241 = vector.broadcast %cst_38 : f32 to vector<2x32xf32>
    %242 = arith.subf %241, %235 : vector<2x32xf32>
    %243 = arith.mulf %242, %240 : vector<2x32xf32>
    %244 = arith.mulf %235, %193 : vector<2x32xf32>
    %245 = arith.addf %243, %244 : vector<2x32xf32>
    %246 = vector.extract_strided_slice %1 {offsets = [0, 2], sizes = [2, 1], strides = [1, 1]} : vector<2x8xf32> to vector<2x1xf32>
    %247 = vector.extract_strided_slice %1 {offsets = [0, 5], sizes = [2, 1], strides = [1, 1]} : vector<2x8xf32> to vector<2x1xf32>
    %248 = vector.broadcast %246 : vector<2x1xf32> to vector<2x32xf32>
    %249 = arith.mulf %248, %219 : vector<2x32xf32>
    %cst_39 = arith.constant 1.000000e+00 : f32
    %250 = vector.broadcast %cst_39 : f32 to vector<2x1xf32>
    %251 = arith.subf %250, %246 : vector<2x1xf32>
    %252 = vector.broadcast %251 : vector<2x1xf32> to vector<2x32xf32>
    %253 = arith.mulf %252, %192 : vector<2x32xf32>
    %254 = arith.addf %249, %253 : vector<2x32xf32>
    %255 = vector.broadcast %247 : vector<2x1xf32> to vector<2x32xf32>
    %256 = arith.mulf %255, %245 : vector<2x32xf32>
    %cst_40 = arith.constant 1.000000e+00 : f32
    %257 = vector.broadcast %cst_40 : f32 to vector<2x1xf32>
    %258 = arith.subf %257, %247 : vector<2x1xf32>
    %259 = vector.broadcast %258 : vector<2x1xf32> to vector<2x32xf32>
    %260 = arith.mulf %259, %193 : vector<2x32xf32>
    %261 = arith.addf %256, %260 : vector<2x32xf32>
    %262 = tpu.concatenate %254, %261 in 1 : vector<2x32xf32>, vector<2x32xf32> -> vector<2x64xf32>
    %263 = vector.extract_strided_slice %2 {offsets = [0, 2], sizes = [2, 1], strides = [1, 1]} : vector<2x8xf32> to vector<2x1xf32>
    %264 = vector.broadcast %263 : vector<2x1xf32> to vector<2x32xf32>
    %265 = arith.mulf %264, %219 : vector<2x32xf32>
    %266 = vector.extract_strided_slice %2 {offsets = [0, 5], sizes = [2, 1], strides = [1, 1]} : vector<2x8xf32> to vector<2x1xf32>
    %267 = vector.broadcast %266 : vector<2x1xf32> to vector<2x32xf32>
    %268 = arith.mulf %267, %245 : vector<2x32xf32>
    %cst_41 = arith.constant dense<0.000000e+00> : vector<2x192xf32>
    %269 = tpu.matmul %262, %9, %cst_41 {dimension_numbers = #tpu.dot_dimension_numbers<[1], [0], [0], [1], [0, 0, 1, 1], [], []>} : vector<2x64xf32>, vector<64x192xf32>, vector<2x192xf32> -> vector<2x192xf32>
    %270 = arith.addf %269, %12 : vector<2x192xf32>
    %271 = vector.extract_strided_slice %8 {offsets = [0, 3, 0], sizes = [2, 1, 96], strides = [1, 1, 1]} : vector<2x8x192xf32> to vector<2x1x96xf32>
    %272 = vector.shape_cast %271 : vector<2x1x96xf32> to vector<2x96xf32>
    %273 = vector.extract_strided_slice %8 {offsets = [0, 4, 96], sizes = [2, 1, 96], strides = [1, 1, 1]} : vector<2x8x192xf32> to vector<2x1x96xf32>
    %274 = vector.shape_cast %273 : vector<2x1x96xf32> to vector<2x96xf32>
    %275 = vector.extract_strided_slice %270 {offsets = [0, 0], sizes = [2, 96], strides = [1, 1]} : vector<2x192xf32> to vector<2x96xf32>
    %276 = vector.extract_strided_slice %270 {offsets = [0, 96], sizes = [2, 96], strides = [1, 1]} : vector<2x192xf32> to vector<2x96xf32>
    %277 = vector.extract_strided_slice %262 {offsets = [0, 0], sizes = [2, 32], strides = [1, 1]} : vector<2x64xf32> to vector<2x32xf32>
    %278 = vector.extract_strided_slice %262 {offsets = [0, 32], sizes = [2, 32], strides = [1, 1]} : vector<2x64xf32> to vector<2x32xf32>
    %279 = vector.extract_strided_slice %272 {offsets = [0, 0], sizes = [2, 32], strides = [1, 1]} : vector<2x96xf32> to vector<2x32xf32>
    %280 = vector.extract_strided_slice %275 {offsets = [0, 0], sizes = [2, 32], strides = [1, 1]} : vector<2x96xf32> to vector<2x32xf32>
    %281 = arith.addf %279, %280 : vector<2x32xf32>
    %282 = arith.negf %281 : vector<2x32xf32>
    %283 = math.exp %282 : vector<2x32xf32>
    %cst_42 = arith.constant 1.000000e+00 : f32
    %284 = vector.broadcast %cst_42 : f32 to vector<2x32xf32>
    %285 = arith.addf %284, %283 : vector<2x32xf32>
    %286 = arith.divf %284, %285 : vector<2x32xf32>
    %287 = vector.extract_strided_slice %272 {offsets = [0, 32], sizes = [2, 32], strides = [1, 1]} : vector<2x96xf32> to vector<2x32xf32>
    %288 = vector.extract_strided_slice %275 {offsets = [0, 32], sizes = [2, 32], strides = [1, 1]} : vector<2x96xf32> to vector<2x32xf32>
    %289 = arith.addf %287, %288 : vector<2x32xf32>
    %290 = arith.negf %289 : vector<2x32xf32>
    %291 = math.exp %290 : vector<2x32xf32>
    %cst_43 = arith.constant 1.000000e+00 : f32
    %292 = vector.broadcast %cst_43 : f32 to vector<2x32xf32>
    %293 = arith.addf %292, %291 : vector<2x32xf32>
    %294 = arith.divf %292, %293 : vector<2x32xf32>
    %295 = vector.extract_strided_slice %272 {offsets = [0, 64], sizes = [2, 32], strides = [1, 1]} : vector<2x96xf32> to vector<2x32xf32>
    %296 = vector.extract_strided_slice %275 {offsets = [0, 64], sizes = [2, 32], strides = [1, 1]} : vector<2x96xf32> to vector<2x32xf32>
    %297 = arith.mulf %286, %296 : vector<2x32xf32>
    %298 = arith.addf %295, %297 : vector<2x32xf32>
    %299 = math.tanh %298 : vector<2x32xf32>
    %cst_44 = arith.constant 1.000000e+00 : f32
    %300 = vector.broadcast %cst_44 : f32 to vector<2x32xf32>
    %301 = arith.subf %300, %294 : vector<2x32xf32>
    %302 = arith.mulf %301, %299 : vector<2x32xf32>
    %303 = arith.mulf %294, %277 : vector<2x32xf32>
    %304 = arith.addf %302, %303 : vector<2x32xf32>
    %305 = vector.extract_strided_slice %274 {offsets = [0, 0], sizes = [2, 32], strides = [1, 1]} : vector<2x96xf32> to vector<2x32xf32>
    %306 = vector.extract_strided_slice %276 {offsets = [0, 0], sizes = [2, 32], strides = [1, 1]} : vector<2x96xf32> to vector<2x32xf32>
    %307 = arith.addf %305, %306 : vector<2x32xf32>
    %308 = arith.negf %307 : vector<2x32xf32>
    %309 = math.exp %308 : vector<2x32xf32>
    %cst_45 = arith.constant 1.000000e+00 : f32
    %310 = vector.broadcast %cst_45 : f32 to vector<2x32xf32>
    %311 = arith.addf %310, %309 : vector<2x32xf32>
    %312 = arith.divf %310, %311 : vector<2x32xf32>
    %313 = vector.extract_strided_slice %274 {offsets = [0, 32], sizes = [2, 32], strides = [1, 1]} : vector<2x96xf32> to vector<2x32xf32>
    %314 = vector.extract_strided_slice %276 {offsets = [0, 32], sizes = [2, 32], strides = [1, 1]} : vector<2x96xf32> to vector<2x32xf32>
    %315 = arith.addf %313, %314 : vector<2x32xf32>
    %316 = arith.negf %315 : vector<2x32xf32>
    %317 = math.exp %316 : vector<2x32xf32>
    %cst_46 = arith.constant 1.000000e+00 : f32
    %318 = vector.broadcast %cst_46 : f32 to vector<2x32xf32>
    %319 = arith.addf %318, %317 : vector<2x32xf32>
    %320 = arith.divf %318, %319 : vector<2x32xf32>
    %321 = vector.extract_strided_slice %274 {offsets = [0, 64], sizes = [2, 32], strides = [1, 1]} : vector<2x96xf32> to vector<2x32xf32>
    %322 = vector.extract_strided_slice %276 {offsets = [0, 64], sizes = [2, 32], strides = [1, 1]} : vector<2x96xf32> to vector<2x32xf32>
    %323 = arith.mulf %312, %322 : vector<2x32xf32>
    %324 = arith.addf %321, %323 : vector<2x32xf32>
    %325 = math.tanh %324 : vector<2x32xf32>
    %cst_47 = arith.constant 1.000000e+00 : f32
    %326 = vector.broadcast %cst_47 : f32 to vector<2x32xf32>
    %327 = arith.subf %326, %320 : vector<2x32xf32>
    %328 = arith.mulf %327, %325 : vector<2x32xf32>
    %329 = arith.mulf %320, %278 : vector<2x32xf32>
    %330 = arith.addf %328, %329 : vector<2x32xf32>
    %331 = vector.extract_strided_slice %1 {offsets = [0, 3], sizes = [2, 1], strides = [1, 1]} : vector<2x8xf32> to vector<2x1xf32>
    %332 = vector.extract_strided_slice %1 {offsets = [0, 4], sizes = [2, 1], strides = [1, 1]} : vector<2x8xf32> to vector<2x1xf32>
    %333 = vector.broadcast %331 : vector<2x1xf32> to vector<2x32xf32>
    %334 = arith.mulf %333, %304 : vector<2x32xf32>
    %cst_48 = arith.constant 1.000000e+00 : f32
    %335 = vector.broadcast %cst_48 : f32 to vector<2x1xf32>
    %336 = arith.subf %335, %331 : vector<2x1xf32>
    %337 = vector.broadcast %336 : vector<2x1xf32> to vector<2x32xf32>
    %338 = arith.mulf %337, %277 : vector<2x32xf32>
    %339 = arith.addf %334, %338 : vector<2x32xf32>
    %340 = vector.broadcast %332 : vector<2x1xf32> to vector<2x32xf32>
    %341 = arith.mulf %340, %330 : vector<2x32xf32>
    %cst_49 = arith.constant 1.000000e+00 : f32
    %342 = vector.broadcast %cst_49 : f32 to vector<2x1xf32>
    %343 = arith.subf %342, %332 : vector<2x1xf32>
    %344 = vector.broadcast %343 : vector<2x1xf32> to vector<2x32xf32>
    %345 = arith.mulf %344, %278 : vector<2x32xf32>
    %346 = arith.addf %341, %345 : vector<2x32xf32>
    %347 = tpu.concatenate %339, %346 in 1 : vector<2x32xf32>, vector<2x32xf32> -> vector<2x64xf32>
    %348 = vector.extract_strided_slice %2 {offsets = [0, 3], sizes = [2, 1], strides = [1, 1]} : vector<2x8xf32> to vector<2x1xf32>
    %349 = vector.broadcast %348 : vector<2x1xf32> to vector<2x32xf32>
    %350 = arith.mulf %349, %304 : vector<2x32xf32>
    %351 = vector.extract_strided_slice %2 {offsets = [0, 4], sizes = [2, 1], strides = [1, 1]} : vector<2x8xf32> to vector<2x1xf32>
    %352 = vector.broadcast %351 : vector<2x1xf32> to vector<2x32xf32>
    %353 = arith.mulf %352, %330 : vector<2x32xf32>
    %cst_50 = arith.constant dense<0.000000e+00> : vector<2x192xf32>
    %354 = tpu.matmul %347, %9, %cst_50 {dimension_numbers = #tpu.dot_dimension_numbers<[1], [0], [0], [1], [0, 0, 1, 1], [], []>} : vector<2x64xf32>, vector<64x192xf32>, vector<2x192xf32> -> vector<2x192xf32>
    %355 = arith.addf %354, %12 : vector<2x192xf32>
    %356 = vector.extract_strided_slice %8 {offsets = [0, 4, 0], sizes = [2, 1, 96], strides = [1, 1, 1]} : vector<2x8x192xf32> to vector<2x1x96xf32>
    %357 = vector.shape_cast %356 : vector<2x1x96xf32> to vector<2x96xf32>
    %358 = vector.extract_strided_slice %8 {offsets = [0, 3, 96], sizes = [2, 1, 96], strides = [1, 1, 1]} : vector<2x8x192xf32> to vector<2x1x96xf32>
    %359 = vector.shape_cast %358 : vector<2x1x96xf32> to vector<2x96xf32>
    %360 = vector.extract_strided_slice %355 {offsets = [0, 0], sizes = [2, 96], strides = [1, 1]} : vector<2x192xf32> to vector<2x96xf32>
    %361 = vector.extract_strided_slice %355 {offsets = [0, 96], sizes = [2, 96], strides = [1, 1]} : vector<2x192xf32> to vector<2x96xf32>
    %362 = vector.extract_strided_slice %347 {offsets = [0, 0], sizes = [2, 32], strides = [1, 1]} : vector<2x64xf32> to vector<2x32xf32>
    %363 = vector.extract_strided_slice %347 {offsets = [0, 32], sizes = [2, 32], strides = [1, 1]} : vector<2x64xf32> to vector<2x32xf32>
    %364 = vector.extract_strided_slice %357 {offsets = [0, 0], sizes = [2, 32], strides = [1, 1]} : vector<2x96xf32> to vector<2x32xf32>
    %365 = vector.extract_strided_slice %360 {offsets = [0, 0], sizes = [2, 32], strides = [1, 1]} : vector<2x96xf32> to vector<2x32xf32>
    %366 = arith.addf %364, %365 : vector<2x32xf32>
    %367 = arith.negf %366 : vector<2x32xf32>
    %368 = math.exp %367 : vector<2x32xf32>
    %cst_51 = arith.constant 1.000000e+00 : f32
    %369 = vector.broadcast %cst_51 : f32 to vector<2x32xf32>
    %370 = arith.addf %369, %368 : vector<2x32xf32>
    %371 = arith.divf %369, %370 : vector<2x32xf32>
    %372 = vector.extract_strided_slice %357 {offsets = [0, 32], sizes = [2, 32], strides = [1, 1]} : vector<2x96xf32> to vector<2x32xf32>
    %373 = vector.extract_strided_slice %360 {offsets = [0, 32], sizes = [2, 32], strides = [1, 1]} : vector<2x96xf32> to vector<2x32xf32>
    %374 = arith.addf %372, %373 : vector<2x32xf32>
    %375 = arith.negf %374 : vector<2x32xf32>
    %376 = math.exp %375 : vector<2x32xf32>
    %cst_52 = arith.constant 1.000000e+00 : f32
    %377 = vector.broadcast %cst_52 : f32 to vector<2x32xf32>
    %378 = arith.addf %377, %376 : vector<2x32xf32>
    %379 = arith.divf %377, %378 : vector<2x32xf32>
    %380 = vector.extract_strided_slice %357 {offsets = [0, 64], sizes = [2, 32], strides = [1, 1]} : vector<2x96xf32> to vector<2x32xf32>
    %381 = vector.extract_strided_slice %360 {offsets = [0, 64], sizes = [2, 32], strides = [1, 1]} : vector<2x96xf32> to vector<2x32xf32>
    %382 = arith.mulf %371, %381 : vector<2x32xf32>
    %383 = arith.addf %380, %382 : vector<2x32xf32>
    %384 = math.tanh %383 : vector<2x32xf32>
    %cst_53 = arith.constant 1.000000e+00 : f32
    %385 = vector.broadcast %cst_53 : f32 to vector<2x32xf32>
    %386 = arith.subf %385, %379 : vector<2x32xf32>
    %387 = arith.mulf %386, %384 : vector<2x32xf32>
    %388 = arith.mulf %379, %362 : vector<2x32xf32>
    %389 = arith.addf %387, %388 : vector<2x32xf32>
    %390 = vector.extract_strided_slice %359 {offsets = [0, 0], sizes = [2, 32], strides = [1, 1]} : vector<2x96xf32> to vector<2x32xf32>
    %391 = vector.extract_strided_slice %361 {offsets = [0, 0], sizes = [2, 32], strides = [1, 1]} : vector<2x96xf32> to vector<2x32xf32>
    %392 = arith.addf %390, %391 : vector<2x32xf32>
    %393 = arith.negf %392 : vector<2x32xf32>
    %394 = math.exp %393 : vector<2x32xf32>
    %cst_54 = arith.constant 1.000000e+00 : f32
    %395 = vector.broadcast %cst_54 : f32 to vector<2x32xf32>
    %396 = arith.addf %395, %394 : vector<2x32xf32>
    %397 = arith.divf %395, %396 : vector<2x32xf32>
    %398 = vector.extract_strided_slice %359 {offsets = [0, 32], sizes = [2, 32], strides = [1, 1]} : vector<2x96xf32> to vector<2x32xf32>
    %399 = vector.extract_strided_slice %361 {offsets = [0, 32], sizes = [2, 32], strides = [1, 1]} : vector<2x96xf32> to vector<2x32xf32>
    %400 = arith.addf %398, %399 : vector<2x32xf32>
    %401 = arith.negf %400 : vector<2x32xf32>
    %402 = math.exp %401 : vector<2x32xf32>
    %cst_55 = arith.constant 1.000000e+00 : f32
    %403 = vector.broadcast %cst_55 : f32 to vector<2x32xf32>
    %404 = arith.addf %403, %402 : vector<2x32xf32>
    %405 = arith.divf %403, %404 : vector<2x32xf32>
    %406 = vector.extract_strided_slice %359 {offsets = [0, 64], sizes = [2, 32], strides = [1, 1]} : vector<2x96xf32> to vector<2x32xf32>
    %407 = vector.extract_strided_slice %361 {offsets = [0, 64], sizes = [2, 32], strides = [1, 1]} : vector<2x96xf32> to vector<2x32xf32>
    %408 = arith.mulf %397, %407 : vector<2x32xf32>
    %409 = arith.addf %406, %408 : vector<2x32xf32>
    %410 = math.tanh %409 : vector<2x32xf32>
    %cst_56 = arith.constant 1.000000e+00 : f32
    %411 = vector.broadcast %cst_56 : f32 to vector<2x32xf32>
    %412 = arith.subf %411, %405 : vector<2x32xf32>
    %413 = arith.mulf %412, %410 : vector<2x32xf32>
    %414 = arith.mulf %405, %363 : vector<2x32xf32>
    %415 = arith.addf %413, %414 : vector<2x32xf32>
    %416 = vector.extract_strided_slice %1 {offsets = [0, 4], sizes = [2, 1], strides = [1, 1]} : vector<2x8xf32> to vector<2x1xf32>
    %417 = vector.extract_strided_slice %1 {offsets = [0, 3], sizes = [2, 1], strides = [1, 1]} : vector<2x8xf32> to vector<2x1xf32>
    %418 = vector.broadcast %416 : vector<2x1xf32> to vector<2x32xf32>
    %419 = arith.mulf %418, %389 : vector<2x32xf32>
    %cst_57 = arith.constant 1.000000e+00 : f32
    %420 = vector.broadcast %cst_57 : f32 to vector<2x1xf32>
    %421 = arith.subf %420, %416 : vector<2x1xf32>
    %422 = vector.broadcast %421 : vector<2x1xf32> to vector<2x32xf32>
    %423 = arith.mulf %422, %362 : vector<2x32xf32>
    %424 = arith.addf %419, %423 : vector<2x32xf32>
    %425 = vector.broadcast %417 : vector<2x1xf32> to vector<2x32xf32>
    %426 = arith.mulf %425, %415 : vector<2x32xf32>
    %cst_58 = arith.constant 1.000000e+00 : f32
    %427 = vector.broadcast %cst_58 : f32 to vector<2x1xf32>
    %428 = arith.subf %427, %417 : vector<2x1xf32>
    %429 = vector.broadcast %428 : vector<2x1xf32> to vector<2x32xf32>
    %430 = arith.mulf %429, %363 : vector<2x32xf32>
    %431 = arith.addf %426, %430 : vector<2x32xf32>
    %432 = tpu.concatenate %424, %431 in 1 : vector<2x32xf32>, vector<2x32xf32> -> vector<2x64xf32>
    %433 = vector.extract_strided_slice %2 {offsets = [0, 4], sizes = [2, 1], strides = [1, 1]} : vector<2x8xf32> to vector<2x1xf32>
    %434 = vector.broadcast %433 : vector<2x1xf32> to vector<2x32xf32>
    %435 = arith.mulf %434, %389 : vector<2x32xf32>
    %436 = vector.extract_strided_slice %2 {offsets = [0, 3], sizes = [2, 1], strides = [1, 1]} : vector<2x8xf32> to vector<2x1xf32>
    %437 = vector.broadcast %436 : vector<2x1xf32> to vector<2x32xf32>
    %438 = arith.mulf %437, %415 : vector<2x32xf32>
    %cst_59 = arith.constant dense<0.000000e+00> : vector<2x192xf32>
    %439 = tpu.matmul %432, %9, %cst_59 {dimension_numbers = #tpu.dot_dimension_numbers<[1], [0], [0], [1], [0, 0, 1, 1], [], []>} : vector<2x64xf32>, vector<64x192xf32>, vector<2x192xf32> -> vector<2x192xf32>
    %440 = arith.addf %439, %12 : vector<2x192xf32>
    %441 = vector.extract_strided_slice %8 {offsets = [0, 5, 0], sizes = [2, 1, 96], strides = [1, 1, 1]} : vector<2x8x192xf32> to vector<2x1x96xf32>
    %442 = vector.shape_cast %441 : vector<2x1x96xf32> to vector<2x96xf32>
    %443 = vector.extract_strided_slice %8 {offsets = [0, 2, 96], sizes = [2, 1, 96], strides = [1, 1, 1]} : vector<2x8x192xf32> to vector<2x1x96xf32>
    %444 = vector.shape_cast %443 : vector<2x1x96xf32> to vector<2x96xf32>
    %445 = vector.extract_strided_slice %440 {offsets = [0, 0], sizes = [2, 96], strides = [1, 1]} : vector<2x192xf32> to vector<2x96xf32>
    %446 = vector.extract_strided_slice %440 {offsets = [0, 96], sizes = [2, 96], strides = [1, 1]} : vector<2x192xf32> to vector<2x96xf32>
    %447 = vector.extract_strided_slice %432 {offsets = [0, 0], sizes = [2, 32], strides = [1, 1]} : vector<2x64xf32> to vector<2x32xf32>
    %448 = vector.extract_strided_slice %432 {offsets = [0, 32], sizes = [2, 32], strides = [1, 1]} : vector<2x64xf32> to vector<2x32xf32>
    %449 = vector.extract_strided_slice %442 {offsets = [0, 0], sizes = [2, 32], strides = [1, 1]} : vector<2x96xf32> to vector<2x32xf32>
    %450 = vector.extract_strided_slice %445 {offsets = [0, 0], sizes = [2, 32], strides = [1, 1]} : vector<2x96xf32> to vector<2x32xf32>
    %451 = arith.addf %449, %450 : vector<2x32xf32>
    %452 = arith.negf %451 : vector<2x32xf32>
    %453 = math.exp %452 : vector<2x32xf32>
    %cst_60 = arith.constant 1.000000e+00 : f32
    %454 = vector.broadcast %cst_60 : f32 to vector<2x32xf32>
    %455 = arith.addf %454, %453 : vector<2x32xf32>
    %456 = arith.divf %454, %455 : vector<2x32xf32>
    %457 = vector.extract_strided_slice %442 {offsets = [0, 32], sizes = [2, 32], strides = [1, 1]} : vector<2x96xf32> to vector<2x32xf32>
    %458 = vector.extract_strided_slice %445 {offsets = [0, 32], sizes = [2, 32], strides = [1, 1]} : vector<2x96xf32> to vector<2x32xf32>
    %459 = arith.addf %457, %458 : vector<2x32xf32>
    %460 = arith.negf %459 : vector<2x32xf32>
    %461 = math.exp %460 : vector<2x32xf32>
    %cst_61 = arith.constant 1.000000e+00 : f32
    %462 = vector.broadcast %cst_61 : f32 to vector<2x32xf32>
    %463 = arith.addf %462, %461 : vector<2x32xf32>
    %464 = arith.divf %462, %463 : vector<2x32xf32>
    %465 = vector.extract_strided_slice %442 {offsets = [0, 64], sizes = [2, 32], strides = [1, 1]} : vector<2x96xf32> to vector<2x32xf32>
    %466 = vector.extract_strided_slice %445 {offsets = [0, 64], sizes = [2, 32], strides = [1, 1]} : vector<2x96xf32> to vector<2x32xf32>
    %467 = arith.mulf %456, %466 : vector<2x32xf32>
    %468 = arith.addf %465, %467 : vector<2x32xf32>
    %469 = math.tanh %468 : vector<2x32xf32>
    %cst_62 = arith.constant 1.000000e+00 : f32
    %470 = vector.broadcast %cst_62 : f32 to vector<2x32xf32>
    %471 = arith.subf %470, %464 : vector<2x32xf32>
    %472 = arith.mulf %471, %469 : vector<2x32xf32>
    %473 = arith.mulf %464, %447 : vector<2x32xf32>
    %474 = arith.addf %472, %473 : vector<2x32xf32>
    %475 = vector.extract_strided_slice %444 {offsets = [0, 0], sizes = [2, 32], strides = [1, 1]} : vector<2x96xf32> to vector<2x32xf32>
    %476 = vector.extract_strided_slice %446 {offsets = [0, 0], sizes = [2, 32], strides = [1, 1]} : vector<2x96xf32> to vector<2x32xf32>
    %477 = arith.addf %475, %476 : vector<2x32xf32>
    %478 = arith.negf %477 : vector<2x32xf32>
    %479 = math.exp %478 : vector<2x32xf32>
    %cst_63 = arith.constant 1.000000e+00 : f32
    %480 = vector.broadcast %cst_63 : f32 to vector<2x32xf32>
    %481 = arith.addf %480, %479 : vector<2x32xf32>
    %482 = arith.divf %480, %481 : vector<2x32xf32>
    %483 = vector.extract_strided_slice %444 {offsets = [0, 32], sizes = [2, 32], strides = [1, 1]} : vector<2x96xf32> to vector<2x32xf32>
    %484 = vector.extract_strided_slice %446 {offsets = [0, 32], sizes = [2, 32], strides = [1, 1]} : vector<2x96xf32> to vector<2x32xf32>
    %485 = arith.addf %483, %484 : vector<2x32xf32>
    %486 = arith.negf %485 : vector<2x32xf32>
    %487 = math.exp %486 : vector<2x32xf32>
    %cst_64 = arith.constant 1.000000e+00 : f32
    %488 = vector.broadcast %cst_64 : f32 to vector<2x32xf32>
    %489 = arith.addf %488, %487 : vector<2x32xf32>
    %490 = arith.divf %488, %489 : vector<2x32xf32>
    %491 = vector.extract_strided_slice %444 {offsets = [0, 64], sizes = [2, 32], strides = [1, 1]} : vector<2x96xf32> to vector<2x32xf32>
    %492 = vector.extract_strided_slice %446 {offsets = [0, 64], sizes = [2, 32], strides = [1, 1]} : vector<2x96xf32> to vector<2x32xf32>
    %493 = arith.mulf %482, %492 : vector<2x32xf32>
    %494 = arith.addf %491, %493 : vector<2x32xf32>
    %495 = math.tanh %494 : vector<2x32xf32>
    %cst_65 = arith.constant 1.000000e+00 : f32
    %496 = vector.broadcast %cst_65 : f32 to vector<2x32xf32>
    %497 = arith.subf %496, %490 : vector<2x32xf32>
    %498 = arith.mulf %497, %495 : vector<2x32xf32>
    %499 = arith.mulf %490, %448 : vector<2x32xf32>
    %500 = arith.addf %498, %499 : vector<2x32xf32>
    %501 = vector.extract_strided_slice %1 {offsets = [0, 5], sizes = [2, 1], strides = [1, 1]} : vector<2x8xf32> to vector<2x1xf32>
    %502 = vector.extract_strided_slice %1 {offsets = [0, 2], sizes = [2, 1], strides = [1, 1]} : vector<2x8xf32> to vector<2x1xf32>
    %503 = vector.broadcast %501 : vector<2x1xf32> to vector<2x32xf32>
    %504 = arith.mulf %503, %474 : vector<2x32xf32>
    %cst_66 = arith.constant 1.000000e+00 : f32
    %505 = vector.broadcast %cst_66 : f32 to vector<2x1xf32>
    %506 = arith.subf %505, %501 : vector<2x1xf32>
    %507 = vector.broadcast %506 : vector<2x1xf32> to vector<2x32xf32>
    %508 = arith.mulf %507, %447 : vector<2x32xf32>
    %509 = arith.addf %504, %508 : vector<2x32xf32>
    %510 = vector.broadcast %502 : vector<2x1xf32> to vector<2x32xf32>
    %511 = arith.mulf %510, %500 : vector<2x32xf32>
    %cst_67 = arith.constant 1.000000e+00 : f32
    %512 = vector.broadcast %cst_67 : f32 to vector<2x1xf32>
    %513 = arith.subf %512, %502 : vector<2x1xf32>
    %514 = vector.broadcast %513 : vector<2x1xf32> to vector<2x32xf32>
    %515 = arith.mulf %514, %448 : vector<2x32xf32>
    %516 = arith.addf %511, %515 : vector<2x32xf32>
    %517 = tpu.concatenate %509, %516 in 1 : vector<2x32xf32>, vector<2x32xf32> -> vector<2x64xf32>
    %518 = vector.extract_strided_slice %2 {offsets = [0, 5], sizes = [2, 1], strides = [1, 1]} : vector<2x8xf32> to vector<2x1xf32>
    %519 = vector.broadcast %518 : vector<2x1xf32> to vector<2x32xf32>
    %520 = arith.mulf %519, %474 : vector<2x32xf32>
    %521 = vector.extract_strided_slice %2 {offsets = [0, 2], sizes = [2, 1], strides = [1, 1]} : vector<2x8xf32> to vector<2x1xf32>
    %522 = vector.broadcast %521 : vector<2x1xf32> to vector<2x32xf32>
    %523 = arith.mulf %522, %500 : vector<2x32xf32>
    %cst_68 = arith.constant dense<0.000000e+00> : vector<2x192xf32>
    %524 = tpu.matmul %517, %9, %cst_68 {dimension_numbers = #tpu.dot_dimension_numbers<[1], [0], [0], [1], [0, 0, 1, 1], [], []>} : vector<2x64xf32>, vector<64x192xf32>, vector<2x192xf32> -> vector<2x192xf32>
    %525 = arith.addf %524, %12 : vector<2x192xf32>
    %526 = vector.extract_strided_slice %8 {offsets = [0, 6, 0], sizes = [2, 1, 96], strides = [1, 1, 1]} : vector<2x8x192xf32> to vector<2x1x96xf32>
    %527 = vector.shape_cast %526 : vector<2x1x96xf32> to vector<2x96xf32>
    %528 = vector.extract_strided_slice %8 {offsets = [0, 1, 96], sizes = [2, 1, 96], strides = [1, 1, 1]} : vector<2x8x192xf32> to vector<2x1x96xf32>
    %529 = vector.shape_cast %528 : vector<2x1x96xf32> to vector<2x96xf32>
    %530 = vector.extract_strided_slice %525 {offsets = [0, 0], sizes = [2, 96], strides = [1, 1]} : vector<2x192xf32> to vector<2x96xf32>
    %531 = vector.extract_strided_slice %525 {offsets = [0, 96], sizes = [2, 96], strides = [1, 1]} : vector<2x192xf32> to vector<2x96xf32>
    %532 = vector.extract_strided_slice %517 {offsets = [0, 0], sizes = [2, 32], strides = [1, 1]} : vector<2x64xf32> to vector<2x32xf32>
    %533 = vector.extract_strided_slice %517 {offsets = [0, 32], sizes = [2, 32], strides = [1, 1]} : vector<2x64xf32> to vector<2x32xf32>
    %534 = vector.extract_strided_slice %527 {offsets = [0, 0], sizes = [2, 32], strides = [1, 1]} : vector<2x96xf32> to vector<2x32xf32>
    %535 = vector.extract_strided_slice %530 {offsets = [0, 0], sizes = [2, 32], strides = [1, 1]} : vector<2x96xf32> to vector<2x32xf32>
    %536 = arith.addf %534, %535 : vector<2x32xf32>
    %537 = arith.negf %536 : vector<2x32xf32>
    %538 = math.exp %537 : vector<2x32xf32>
    %cst_69 = arith.constant 1.000000e+00 : f32
    %539 = vector.broadcast %cst_69 : f32 to vector<2x32xf32>
    %540 = arith.addf %539, %538 : vector<2x32xf32>
    %541 = arith.divf %539, %540 : vector<2x32xf32>
    %542 = vector.extract_strided_slice %527 {offsets = [0, 32], sizes = [2, 32], strides = [1, 1]} : vector<2x96xf32> to vector<2x32xf32>
    %543 = vector.extract_strided_slice %530 {offsets = [0, 32], sizes = [2, 32], strides = [1, 1]} : vector<2x96xf32> to vector<2x32xf32>
    %544 = arith.addf %542, %543 : vector<2x32xf32>
    %545 = arith.negf %544 : vector<2x32xf32>
    %546 = math.exp %545 : vector<2x32xf32>
    %cst_70 = arith.constant 1.000000e+00 : f32
    %547 = vector.broadcast %cst_70 : f32 to vector<2x32xf32>
    %548 = arith.addf %547, %546 : vector<2x32xf32>
    %549 = arith.divf %547, %548 : vector<2x32xf32>
    %550 = vector.extract_strided_slice %527 {offsets = [0, 64], sizes = [2, 32], strides = [1, 1]} : vector<2x96xf32> to vector<2x32xf32>
    %551 = vector.extract_strided_slice %530 {offsets = [0, 64], sizes = [2, 32], strides = [1, 1]} : vector<2x96xf32> to vector<2x32xf32>
    %552 = arith.mulf %541, %551 : vector<2x32xf32>
    %553 = arith.addf %550, %552 : vector<2x32xf32>
    %554 = math.tanh %553 : vector<2x32xf32>
    %cst_71 = arith.constant 1.000000e+00 : f32
    %555 = vector.broadcast %cst_71 : f32 to vector<2x32xf32>
    %556 = arith.subf %555, %549 : vector<2x32xf32>
    %557 = arith.mulf %556, %554 : vector<2x32xf32>
    %558 = arith.mulf %549, %532 : vector<2x32xf32>
    %559 = arith.addf %557, %558 : vector<2x32xf32>
    %560 = vector.extract_strided_slice %529 {offsets = [0, 0], sizes = [2, 32], strides = [1, 1]} : vector<2x96xf32> to vector<2x32xf32>
    %561 = vector.extract_strided_slice %531 {offsets = [0, 0], sizes = [2, 32], strides = [1, 1]} : vector<2x96xf32> to vector<2x32xf32>
    %562 = arith.addf %560, %561 : vector<2x32xf32>
    %563 = arith.negf %562 : vector<2x32xf32>
    %564 = math.exp %563 : vector<2x32xf32>
    %cst_72 = arith.constant 1.000000e+00 : f32
    %565 = vector.broadcast %cst_72 : f32 to vector<2x32xf32>
    %566 = arith.addf %565, %564 : vector<2x32xf32>
    %567 = arith.divf %565, %566 : vector<2x32xf32>
    %568 = vector.extract_strided_slice %529 {offsets = [0, 32], sizes = [2, 32], strides = [1, 1]} : vector<2x96xf32> to vector<2x32xf32>
    %569 = vector.extract_strided_slice %531 {offsets = [0, 32], sizes = [2, 32], strides = [1, 1]} : vector<2x96xf32> to vector<2x32xf32>
    %570 = arith.addf %568, %569 : vector<2x32xf32>
    %571 = arith.negf %570 : vector<2x32xf32>
    %572 = math.exp %571 : vector<2x32xf32>
    %cst_73 = arith.constant 1.000000e+00 : f32
    %573 = vector.broadcast %cst_73 : f32 to vector<2x32xf32>
    %574 = arith.addf %573, %572 : vector<2x32xf32>
    %575 = arith.divf %573, %574 : vector<2x32xf32>
    %576 = vector.extract_strided_slice %529 {offsets = [0, 64], sizes = [2, 32], strides = [1, 1]} : vector<2x96xf32> to vector<2x32xf32>
    %577 = vector.extract_strided_slice %531 {offsets = [0, 64], sizes = [2, 32], strides = [1, 1]} : vector<2x96xf32> to vector<2x32xf32>
    %578 = arith.mulf %567, %577 : vector<2x32xf32>
    %579 = arith.addf %576, %578 : vector<2x32xf32>
    %580 = math.tanh %579 : vector<2x32xf32>
    %cst_74 = arith.constant 1.000000e+00 : f32
    %581 = vector.broadcast %cst_74 : f32 to vector<2x32xf32>
    %582 = arith.subf %581, %575 : vector<2x32xf32>
    %583 = arith.mulf %582, %580 : vector<2x32xf32>
    %584 = arith.mulf %575, %533 : vector<2x32xf32>
    %585 = arith.addf %583, %584 : vector<2x32xf32>
    %586 = vector.extract_strided_slice %1 {offsets = [0, 6], sizes = [2, 1], strides = [1, 1]} : vector<2x8xf32> to vector<2x1xf32>
    %587 = vector.extract_strided_slice %1 {offsets = [0, 1], sizes = [2, 1], strides = [1, 1]} : vector<2x8xf32> to vector<2x1xf32>
    %588 = vector.broadcast %586 : vector<2x1xf32> to vector<2x32xf32>
    %589 = arith.mulf %588, %559 : vector<2x32xf32>
    %cst_75 = arith.constant 1.000000e+00 : f32
    %590 = vector.broadcast %cst_75 : f32 to vector<2x1xf32>
    %591 = arith.subf %590, %586 : vector<2x1xf32>
    %592 = vector.broadcast %591 : vector<2x1xf32> to vector<2x32xf32>
    %593 = arith.mulf %592, %532 : vector<2x32xf32>
    %594 = arith.addf %589, %593 : vector<2x32xf32>
    %595 = vector.broadcast %587 : vector<2x1xf32> to vector<2x32xf32>
    %596 = arith.mulf %595, %585 : vector<2x32xf32>
    %cst_76 = arith.constant 1.000000e+00 : f32
    %597 = vector.broadcast %cst_76 : f32 to vector<2x1xf32>
    %598 = arith.subf %597, %587 : vector<2x1xf32>
    %599 = vector.broadcast %598 : vector<2x1xf32> to vector<2x32xf32>
    %600 = arith.mulf %599, %533 : vector<2x32xf32>
    %601 = arith.addf %596, %600 : vector<2x32xf32>
    %602 = tpu.concatenate %594, %601 in 1 : vector<2x32xf32>, vector<2x32xf32> -> vector<2x64xf32>
    %603 = vector.extract_strided_slice %2 {offsets = [0, 6], sizes = [2, 1], strides = [1, 1]} : vector<2x8xf32> to vector<2x1xf32>
    %604 = vector.broadcast %603 : vector<2x1xf32> to vector<2x32xf32>
    %605 = arith.mulf %604, %559 : vector<2x32xf32>
    %606 = vector.extract_strided_slice %2 {offsets = [0, 1], sizes = [2, 1], strides = [1, 1]} : vector<2x8xf32> to vector<2x1xf32>
    %607 = vector.broadcast %606 : vector<2x1xf32> to vector<2x32xf32>
    %608 = arith.mulf %607, %585 : vector<2x32xf32>
    %cst_77 = arith.constant dense<0.000000e+00> : vector<2x192xf32>
    %609 = tpu.matmul %602, %9, %cst_77 {dimension_numbers = #tpu.dot_dimension_numbers<[1], [0], [0], [1], [0, 0, 1, 1], [], []>} : vector<2x64xf32>, vector<64x192xf32>, vector<2x192xf32> -> vector<2x192xf32>
    %610 = arith.addf %609, %12 : vector<2x192xf32>
    %611 = vector.extract_strided_slice %8 {offsets = [0, 7, 0], sizes = [2, 1, 96], strides = [1, 1, 1]} : vector<2x8x192xf32> to vector<2x1x96xf32>
    %612 = vector.shape_cast %611 : vector<2x1x96xf32> to vector<2x96xf32>
    %613 = vector.extract_strided_slice %8 {offsets = [0, 0, 96], sizes = [2, 1, 96], strides = [1, 1, 1]} : vector<2x8x192xf32> to vector<2x1x96xf32>
    %614 = vector.shape_cast %613 : vector<2x1x96xf32> to vector<2x96xf32>
    %615 = vector.extract_strided_slice %610 {offsets = [0, 0], sizes = [2, 96], strides = [1, 1]} : vector<2x192xf32> to vector<2x96xf32>
    %616 = vector.extract_strided_slice %610 {offsets = [0, 96], sizes = [2, 96], strides = [1, 1]} : vector<2x192xf32> to vector<2x96xf32>
    %617 = vector.extract_strided_slice %602 {offsets = [0, 0], sizes = [2, 32], strides = [1, 1]} : vector<2x64xf32> to vector<2x32xf32>
    %618 = vector.extract_strided_slice %602 {offsets = [0, 32], sizes = [2, 32], strides = [1, 1]} : vector<2x64xf32> to vector<2x32xf32>
    %619 = vector.extract_strided_slice %612 {offsets = [0, 0], sizes = [2, 32], strides = [1, 1]} : vector<2x96xf32> to vector<2x32xf32>
    %620 = vector.extract_strided_slice %615 {offsets = [0, 0], sizes = [2, 32], strides = [1, 1]} : vector<2x96xf32> to vector<2x32xf32>
    %621 = arith.addf %619, %620 : vector<2x32xf32>
    %622 = arith.negf %621 : vector<2x32xf32>
    %623 = math.exp %622 : vector<2x32xf32>
    %cst_78 = arith.constant 1.000000e+00 : f32
    %624 = vector.broadcast %cst_78 : f32 to vector<2x32xf32>
    %625 = arith.addf %624, %623 : vector<2x32xf32>
    %626 = arith.divf %624, %625 : vector<2x32xf32>
    %627 = vector.extract_strided_slice %612 {offsets = [0, 32], sizes = [2, 32], strides = [1, 1]} : vector<2x96xf32> to vector<2x32xf32>
    %628 = vector.extract_strided_slice %615 {offsets = [0, 32], sizes = [2, 32], strides = [1, 1]} : vector<2x96xf32> to vector<2x32xf32>
    %629 = arith.addf %627, %628 : vector<2x32xf32>
    %630 = arith.negf %629 : vector<2x32xf32>
    %631 = math.exp %630 : vector<2x32xf32>
    %cst_79 = arith.constant 1.000000e+00 : f32
    %632 = vector.broadcast %cst_79 : f32 to vector<2x32xf32>
    %633 = arith.addf %632, %631 : vector<2x32xf32>
    %634 = arith.divf %632, %633 : vector<2x32xf32>
    %635 = vector.extract_strided_slice %612 {offsets = [0, 64], sizes = [2, 32], strides = [1, 1]} : vector<2x96xf32> to vector<2x32xf32>
    %636 = vector.extract_strided_slice %615 {offsets = [0, 64], sizes = [2, 32], strides = [1, 1]} : vector<2x96xf32> to vector<2x32xf32>
    %637 = arith.mulf %626, %636 : vector<2x32xf32>
    %638 = arith.addf %635, %637 : vector<2x32xf32>
    %639 = math.tanh %638 : vector<2x32xf32>
    %cst_80 = arith.constant 1.000000e+00 : f32
    %640 = vector.broadcast %cst_80 : f32 to vector<2x32xf32>
    %641 = arith.subf %640, %634 : vector<2x32xf32>
    %642 = arith.mulf %641, %639 : vector<2x32xf32>
    %643 = arith.mulf %634, %617 : vector<2x32xf32>
    %644 = arith.addf %642, %643 : vector<2x32xf32>
    %645 = vector.extract_strided_slice %614 {offsets = [0, 0], sizes = [2, 32], strides = [1, 1]} : vector<2x96xf32> to vector<2x32xf32>
    %646 = vector.extract_strided_slice %616 {offsets = [0, 0], sizes = [2, 32], strides = [1, 1]} : vector<2x96xf32> to vector<2x32xf32>
    %647 = arith.addf %645, %646 : vector<2x32xf32>
    %648 = arith.negf %647 : vector<2x32xf32>
    %649 = math.exp %648 : vector<2x32xf32>
    %cst_81 = arith.constant 1.000000e+00 : f32
    %650 = vector.broadcast %cst_81 : f32 to vector<2x32xf32>
    %651 = arith.addf %650, %649 : vector<2x32xf32>
    %652 = arith.divf %650, %651 : vector<2x32xf32>
    %653 = vector.extract_strided_slice %614 {offsets = [0, 32], sizes = [2, 32], strides = [1, 1]} : vector<2x96xf32> to vector<2x32xf32>
    %654 = vector.extract_strided_slice %616 {offsets = [0, 32], sizes = [2, 32], strides = [1, 1]} : vector<2x96xf32> to vector<2x32xf32>
    %655 = arith.addf %653, %654 : vector<2x32xf32>
    %656 = arith.negf %655 : vector<2x32xf32>
    %657 = math.exp %656 : vector<2x32xf32>
    %cst_82 = arith.constant 1.000000e+00 : f32
    %658 = vector.broadcast %cst_82 : f32 to vector<2x32xf32>
    %659 = arith.addf %658, %657 : vector<2x32xf32>
    %660 = arith.divf %658, %659 : vector<2x32xf32>
    %661 = vector.extract_strided_slice %614 {offsets = [0, 64], sizes = [2, 32], strides = [1, 1]} : vector<2x96xf32> to vector<2x32xf32>
    %662 = vector.extract_strided_slice %616 {offsets = [0, 64], sizes = [2, 32], strides = [1, 1]} : vector<2x96xf32> to vector<2x32xf32>
    %663 = arith.mulf %652, %662 : vector<2x32xf32>
    %664 = arith.addf %661, %663 : vector<2x32xf32>
    %665 = math.tanh %664 : vector<2x32xf32>
    %cst_83 = arith.constant 1.000000e+00 : f32
    %666 = vector.broadcast %cst_83 : f32 to vector<2x32xf32>
    %667 = arith.subf %666, %660 : vector<2x32xf32>
    %668 = arith.mulf %667, %665 : vector<2x32xf32>
    %669 = arith.mulf %660, %618 : vector<2x32xf32>
    %670 = arith.addf %668, %669 : vector<2x32xf32>
    %671 = vector.extract_strided_slice %2 {offsets = [0, 7], sizes = [2, 1], strides = [1, 1]} : vector<2x8xf32> to vector<2x1xf32>
    %672 = vector.broadcast %671 : vector<2x1xf32> to vector<2x32xf32>
    %673 = arith.mulf %672, %644 : vector<2x32xf32>
    %674 = vector.extract_strided_slice %2 {offsets = [0, 0], sizes = [2, 1], strides = [1, 1]} : vector<2x8xf32> to vector<2x1xf32>
    %675 = vector.broadcast %674 : vector<2x1xf32> to vector<2x32xf32>
    %676 = arith.mulf %675, %670 : vector<2x32xf32>
    %677 = tpu.concatenate %95, %676 in 1 : vector<2x32xf32>, vector<2x32xf32> -> vector<2x64xf32>
    %678 = tpu.concatenate %180, %608 in 1 : vector<2x32xf32>, vector<2x32xf32> -> vector<2x64xf32>
    %679 = tpu.concatenate %265, %523 in 1 : vector<2x32xf32>, vector<2x32xf32> -> vector<2x64xf32>
    %680 = tpu.concatenate %350, %438 in 1 : vector<2x32xf32>, vector<2x32xf32> -> vector<2x64xf32>
    %681 = tpu.concatenate %435, %353 in 1 : vector<2x32xf32>, vector<2x32xf32> -> vector<2x64xf32>
    %682 = tpu.concatenate %520, %268 in 1 : vector<2x32xf32>, vector<2x32xf32> -> vector<2x64xf32>
    %683 = tpu.concatenate %605, %183 in 1 : vector<2x32xf32>, vector<2x32xf32> -> vector<2x64xf32>
    %684 = tpu.concatenate %673, %98 in 1 : vector<2x32xf32>, vector<2x32xf32> -> vector<2x64xf32>
    %685 = vector.shape_cast %677 : vector<2x64xf32> to vector<2x1x64xf32>
    %686 = vector.shape_cast %678 : vector<2x64xf32> to vector<2x1x64xf32>
    %687 = vector.shape_cast %679 : vector<2x64xf32> to vector<2x1x64xf32>
    %688 = vector.shape_cast %680 : vector<2x64xf32> to vector<2x1x64xf32>
    %689 = vector.shape_cast %681 : vector<2x64xf32> to vector<2x1x64xf32>
    %690 = vector.shape_cast %682 : vector<2x64xf32> to vector<2x1x64xf32>
    %691 = vector.shape_cast %683 : vector<2x64xf32> to vector<2x1x64xf32>
    %692 = vector.shape_cast %684 : vector<2x64xf32> to vector<2x1x64xf32>
    %693 = tpu.concatenate %685, %686, %687, %688, %689, %690, %691, %692 in 1 : vector<2x1x64xf32>, vector<2x1x64xf32>, vector<2x1x64xf32>, vector<2x1x64xf32>, vector<2x1x64xf32>, vector<2x1x64xf32>, vector<2x1x64xf32>, vector<2x1x64xf32> -> vector<2x8x64xf32>
    %694 = vector.shape_cast %693 : vector<2x8x64xf32> to vector<16x64xf32>
    %c0_84 = arith.constant 0 : index
    %c0_85 = arith.constant 0 : index
    %695 = vector.load %arg8[%c0_84, %c0_85] : memref<64x192xf32, #tpu.memory_space<vmem>>, vector<64x192xf32>
    %cst_86 = arith.constant dense<0.000000e+00> : vector<16x192xf32>
    %696 = tpu.matmul %694, %695, %cst_86 {dimension_numbers = #tpu.dot_dimension_numbers<[1], [0], [0], [1], [0, 0, 1, 1], [], []>} : vector<16x64xf32>, vector<64x192xf32>, vector<16x192xf32> -> vector<16x192xf32>
    %c0_87 = arith.constant 0 : index
    %c0_88 = arith.constant 0 : index
    %697 = vector.load %arg9[%c0_87, %c0_88] : memref<1x192xf32, #tpu.memory_space<vmem>>, vector<1x192xf32>
    %698 = vector.broadcast %697 : vector<1x192xf32> to vector<16x192xf32>
    %699 = arith.addf %696, %698 : vector<16x192xf32>
    %700 = vector.shape_cast %699 : vector<16x192xf32> to vector<2x8x192xf32>
    %701 = vector.extract_strided_slice %700 {offsets = [0, 7, 0], sizes = [2, 1, 64], strides = [1, 1, 1]} : vector<2x8x192xf32> to vector<2x1x64xf32>
    %702 = vector.shape_cast %701 : vector<2x1x64xf32> to vector<2x64xf32>
    %703 = vector.extract_strided_slice %700 {offsets = [0, 0, 64], sizes = [2, 8, 64], strides = [1, 1, 1]} : vector<2x8x192xf32> to vector<2x8x64xf32>
    %704 = vector.extract_strided_slice %700 {offsets = [0, 0, 128], sizes = [2, 8, 64], strides = [1, 1, 1]} : vector<2x8x192xf32> to vector<2x8x64xf32>
    %705 = vector.shape_cast %702 : vector<2x64xf32> to vector<2x1x64xf32>
    %706 = vector.broadcast %705 : vector<2x1x64xf32> to vector<2x8x64xf32>
    %707 = arith.mulf %706, %703 : vector<2x8x64xf32>
    %cst_89 = arith.constant dense<0.000000e+00> : vector<2x8xf32>
    %708 = vector.multi_reduction <add>, %707, %cst_89 [2] : vector<2x8x64xf32> to vector<2x8xf32>
    %cst_90 = arith.constant 1.250000e-01 : f32
    %709 = vector.broadcast %cst_90 : f32 to vector<2x8xf32>
    %710 = arith.mulf %708, %709 : vector<2x8xf32>
    %cst_91 = arith.constant dense<0xFF800000> : vector<2xf32>
    %711 = vector.multi_reduction <maximumf>, %710, %cst_91 [1] : vector<2x8xf32> to vector<2xf32>
    %712 = vector.shape_cast %711 : vector<2xf32> to vector<2x1xf32>
    %713 = vector.broadcast %712 : vector<2x1xf32> to vector<2x8xf32>
    %714 = arith.subf %710, %713 : vector<2x8xf32>
    %715 = math.exp %714 : vector<2x8xf32>
    %cst_92 = arith.constant dense<0.000000e+00> : vector<2xf32>
    %716 = vector.multi_reduction <add>, %715, %cst_92 [1] : vector<2x8xf32> to vector<2xf32>
    %717 = vector.shape_cast %716 : vector<2xf32> to vector<2x1xf32>
    %718 = vector.broadcast %717 : vector<2x1xf32> to vector<2x8xf32>
    %719 = arith.divf %715, %718 : vector<2x8xf32>
    %720 = vector.shape_cast %719 : vector<2x8xf32> to vector<2x8x1xf32>
    %721 = vector.broadcast %720 : vector<2x8x1xf32> to vector<2x8x64xf32>
    %722 = arith.mulf %721, %704 : vector<2x8x64xf32>
    %cst_93 = arith.constant dense<0.000000e+00> : vector<2x64xf32>
    %723 = vector.multi_reduction <add>, %722, %cst_93 [1] : vector<2x8x64xf32> to vector<2x64xf32>
    %c0_94 = arith.constant 0 : index
    %c0_95 = arith.constant 0 : index
    %724 = vector.load %arg10[%c0_94, %c0_95] : memref<64x32xf32, #tpu.memory_space<vmem>>, vector<64x32xf32>
    %cst_96 = arith.constant dense<0.000000e+00> : vector<2x32xf32>
    %725 = tpu.matmul %723, %724, %cst_96 {dimension_numbers = #tpu.dot_dimension_numbers<[1], [0], [0], [1], [0, 0, 1, 1], [], []>} : vector<2x64xf32>, vector<64x32xf32>, vector<2x32xf32> -> vector<2x32xf32>
    %c0_97 = arith.constant 0 : index
    %c0_98 = arith.constant 0 : index
    %726 = vector.load %arg11[%c0_97, %c0_98] : memref<1x32xf32, #tpu.memory_space<vmem>>, vector<1x32xf32>
    %727 = vector.broadcast %726 : vector<1x32xf32> to vector<2x32xf32>
    %728 = arith.addf %725, %727 : vector<2x32xf32>
    %729 = math.tanh %728 : vector<2x32xf32>
    %c0_99 = arith.constant 0 : index
    %c0_100 = arith.constant 0 : index
    %730 = vector.load %arg12[%c0_99, %c0_100] : memref<32x4xf32, #tpu.memory_space<vmem>>, vector<32x4xf32>
    %cst_101 = arith.constant dense<0.000000e+00> : vector<2x4xf32>
    %731 = tpu.matmul %729, %730, %cst_101 {dimension_numbers = #tpu.dot_dimension_numbers<[1], [0], [0], [1], [0, 0, 1, 1], [], []>} : vector<2x32xf32>, vector<32x4xf32>, vector<2x4xf32> -> vector<2x4xf32>
    %c0_102 = arith.constant 0 : index
    %c0_103 = arith.constant 0 : index
    %732 = vector.load %arg13[%c0_102, %c0_103] : memref<1x4xf32, #tpu.memory_space<vmem>>, vector<1x4xf32>
    %733 = vector.broadcast %732 : vector<1x4xf32> to vector<2x4xf32>
    %734 = arith.addf %731, %733 : vector<2x4xf32>
    %c0_104 = arith.constant 0 : index
    %c0_105 = arith.constant 0 : index
    %735 = vector.load %arg14[%c0_104, %c0_105] : memref<2x4xf32, #tpu.memory_space<vmem>>, vector<2x4xf32>
    tpu.vector_store %arg14[%c0_104, %c0_105], %734 {strides = array<i32>} : memref<2x4xf32, #tpu.memory_space<vmem>>, vector<2x4xf32>,
    return
  }
  func.func @transform_0(%arg0: i32) -> (i32, i32) {
    %c0_i32 = arith.constant 0 : i32
    %c0_i32_0 = arith.constant 0 : i32
    %c0_i32_1 = arith.constant 0 : i32
    return %c0_i32, %c0_i32_0 : i32, i32
  }
  func.func @transform_1(%arg0: i32) -> (i32, i32) {
    %c0_i32 = arith.constant 0 : i32
    %c0_i32_0 = arith.constant 0 : i32
    %c0_i32_1 = arith.constant 0 : i32
    return %c0_i32, %c0_i32_0 : i32, i32
  }
  func.func @transform_2(%arg0: i32) -> (i32, i32) {
    %c0_i32 = arith.constant 0 : i32
    %c0_i32_0 = arith.constant 0 : i32
    %c0_i32_1 = arith.constant 0 : i32
    return %c0_i32, %c0_i32_0 : i32, i32
  }
  func.func @transform_3(%arg0: i32) -> (i32, i32) {
    %c0_i32 = arith.constant 0 : i32
    %c0_i32_0 = arith.constant 0 : i32
    %c0_i32_1 = arith.constant 0 : i32
    return %c0_i32, %c0_i32_0 : i32, i32
  }
  func.func @transform_4(%arg0: i32) -> (i32, i32) {
    %c0_i32 = arith.constant 0 : i32
    %c0_i32_0 = arith.constant 0 : i32
    %c0_i32_1 = arith.constant 0 : i32
    return %c0_i32, %c0_i32_0 : i32, i32
  }
  func.func @transform_5(%arg0: i32) -> (i32, i32) {
    %c0_i32 = arith.constant 0 : i32
    %c0_i32_0 = arith.constant 0 : i32
    %c0_i32_1 = arith.constant 0 : i32
    return %c0_i32, %c0_i32_0 : i32, i32
  }
  func.func @transform_6(%arg0: i32) -> (i32, i32) {
    %c0_i32 = arith.constant 0 : i32
    %c0_i32_0 = arith.constant 0 : i32
    %c0_i32_1 = arith.constant 0 : i32
    return %c0_i32, %c0_i32_0 : i32, i32
  }
  func.func @transform_7(%arg0: i32) -> (i32, i32) {
    %c0_i32 = arith.constant 0 : i32
    %c0_i32_0 = arith.constant 0 : i32
    %c0_i32_1 = arith.constant 0 : i32
    return %c0_i32, %c0_i32_0 : i32, i32
  }
  func.func @transform_8(%arg0: i32) -> (i32, i32) {
    %c0_i32 = arith.constant 0 : i32
    %c0_i32_0 = arith.constant 0 : i32
    %c0_i32_1 = arith.constant 0 : i32
    return %c0_i32, %c0_i32_0 : i32, i32
  }
  func.func @transform_9(%arg0: i32) -> (i32, i32) {
    %c0_i32 = arith.constant 0 : i32
    %c0_i32_0 = arith.constant 0 : i32
    %c0_i32_1 = arith.constant 0 : i32
    return %c0_i32, %c0_i32_0 : i32, i32
  }
  func.func @transform_10(%arg0: i32) -> (i32, i32) {
    %c0_i32 = arith.constant 0 : i32
    %c0_i32_0 = arith.constant 0 : i32
    %c0_i32_1 = arith.constant 0 : i32
    return %c0_i32, %c0_i32_0 : i32, i32
  }
  func.func @transform_11(%arg0: i32) -> (i32, i32) {
    %c0_i32 = arith.constant 0 : i32
    %c0_i32_0 = arith.constant 0 : i32
    %c0_i32_1 = arith.constant 0 : i32
    return %c0_i32, %c0_i32_0 : i32, i32
  }
  func.func @transform_12(%arg0: i32) -> (i32, i32) {
    %c0_i32 = arith.constant 0 : i32
    %c0_i32_0 = arith.constant 0 : i32
    %c0_i32_1 = arith.constant 0 : i32
    return %c0_i32, %c0_i32_0 : i32, i32
  }
  func.func @transform_13(%arg0: i32) -> (i32, i32) {
    %c0_i32 = arith.constant 0 : i32
    %c0_i32_0 = arith.constant 0 : i32
    %c0_i32_1 = arith.constant 0 : i32
    return %c0_i32, %c0_i32_0 : i32, i32
  }
}

</mosaic_0001>

<bundles_post_ra>
// kernel: reader_forward.1
= control target key start
LH: loop header
LB: loop body
LE: loop exit
PB: predicated region body
PF: predicated region fallthrough
CT: control target
= control target key end

     0   :  { %v3558_v7 = vmov 0.0   ;;  %s4734_s0 = inlined_call_operand.vmem [shape: f32[16,16], index: 0, kind: input, shape index: {}]   ;;  %s4735_s1 = inlined_call_operand.vmem [shape: f32[2,8], index: 1, kind: input, shape index: {}]   ;;  %s4736_s2 = inlined_call_operand.vmem [shape: f32[2,8], index: 2, kind: input, shape index: {}]   ;;  %s4737_s3 = inlined_call_operand.vmem [shape: f32[16,192], index: 3, kind: input, shape index: {}]   ;;  %s4738_s4 = inlined_call_operand.vmem [shape: f32[1,192], index: 4, kind: input, shape index: {}]   ;;  %s4739_s5 = inlined_call_operand.vmem [shape: f32[64,192], index: 5, kind: input, shape index: {}]   ;;  %s4740_s6 = inlined_call_operand.vmem [shape: f32[1,192], index: 6, kind: input, shape index: {}]   ;;  %s4741_s7 = inlined_call_operand.vmem [shape: f32[64,192], index: 7, kind: input, shape index: {}]   ;;  %s4742_s8 = inlined_call_operand.vmem [shape: f32[1,192], index: 8, kind: input, shape index: {}]   ;;  %s4743_s9 = inlined_call_operand.vmem [shape: f32[64,32], index: 9, kind: input, shape index: {}]   ;;  %s4744_s10 = inlined_call_operand.vmem [shape: f32[1,32], index: 10, kind: input, shape index: {}]   ;;  %s4745_s11 = inlined_call_operand.vmem [shape: f32[32,4], index: 11, kind: input, shape index: {}]   ;;  %s4746_s12 = inlined_call_operand.vmem [shape: f32[1,4], index: 12, kind: input, shape index: {}]   ;;  %s4747_s13 = inlined_call_operand.hbm [shape: f32[2,4], index: 13, kind: output, shape index: {}]  }
   0x1   :  { %v150_v0 = vld [vmem:[%s4739_s5 + $0x8] sm:$0xff]  ;;  %v152_v1 = vld [vmem:[%s4739_s5 + $0x18] sm:$0xff]  ;;  %v149_v2 = vld [vmem:[%s4739_s5] sm:$0xff]  ;;  %136 = vmatprep.mubr.f32.mxu0 %v3558_v7  ;;  %245 = vmatprep.mubr.f32.mxu1 %v3558_v7 }
   0x2   :  { %v3653_v3 = vpack.c.bf16 %v152_v1, %v150_v0  ;;  %v151_v4 = vld [vmem:[%s4739_s5 + $0x10] sm:$0xff]  ;;  %v154_v5 = vld [vmem:[%s4739_s5 + $0x28] sm:$0xff]  ;;  %v156_v6 = vld [vmem:[%s4739_s5 + $0x38] sm:$0xff] }
   0x3   :  { %v3666_v8 = vpack.c.bf16 %v151_v4, %v149_v2  ;;  %v3668_v9 = vpack.c.bf16 %v156_v6, %v154_v5  ;;  %v153_v10 = vld [vmem:[%s4739_s5 + $0x20] sm:$0xff]  ;;  %v155_v11 = vld [vmem:[%s4739_s5 + $0x30] sm:$0xff]  ;;  %v158_v12 = vld [vmem:[%s4739_s5 + $0x48] sm:$0xff] }
   0x4   :  { %3067 = vmatprep.subr.bf16.mxu1 %v3653_v3  ;;  %v160_v13 = vld [vmem:[%s4739_s5 + $0x58] sm:$0xff]  ;;  %v3684_v14 = vpack.c.bf16 %v155_v11, %v153_v10  ;;  %v50_v15 = vld [vmem:[%s4737_s3 + $0x8] sm:$0xff]  ;;  %v49_v17 = vld [vmem:[%s4737_s3] sm:$0xff] }
   0x5   :  { %3069 = vmatpush1.bf16.msra.mxu1 %v3666_v8  ;;  %v52_v16 = vld [vmem:[%s4737_s3 + $0x18] sm:$0xff]  ;;  %v3696_v18 = vpack.c.bf16 %v160_v13, %v158_v12  ;;  %v157_v19 = vld [vmem:[%s4739_s5 + $0x40] sm:$0xff]  ;;  %v159_v20 = vld [vmem:[%s4739_s5 + $0x50] sm:$0xff] }
   0x6   :  { %3071 = vmatprep.subr.bf16.mxu1 %v3668_v9  ;;  %v3062_v21 = vpack.c.bf16 %v52_v16, %v50_v15  ;;  %v51_v22 = vld [vmem:[%s4737_s3 + $0x10] sm:$0xff]  ;;  %v162_v24 = vld [vmem:[%s4739_s5 + $0x68] sm:$0xff]  ;;  %v164_v25 = vld [vmem:[%s4739_s5 + $0x78] sm:$0xff] }
   0x7   :  { %v3064_v23 = vpack.c.bf16 %v51_v22, %v49_v17 }
   0x8   :  { %3063 = vmatprep.subr.bf16.mxu0 %v3062_v21 }
   0x9   :  { %18 = vsyncpa [#allocation3], 0  ;;  %3073 = vmatpush1.bf16.msra.mxu1 %v3684_v14  ;;  %v3714_v26 = vpack.c.bf16 %v159_v20, %v157_v19  ;;  %3065 = vmatpush1.bf16.msra.mxu0 %v3064_v23  ;;  %v45_v27 = vld [vmem:[%s4734_s0] sm:$0xff]  ;;  %vm65_vm0 = vcmask 130048   ;;  %v3720_v28 = vpack.c.bf16 %v164_v25, %v162_v24  ;;  %v163_v30 = vld [vmem:[%s4739_s5 + $0x70] sm:$0xff]  ;;  %v4748_v33 = vlaneseq  ;;  %s3563_s20 = smov 32  }
   0xa   :  { %3075 = vmatprep.subr.bf16.mxu1 %v3696_v18  ;;  %v161_v29 = vld [vmem:[%s4739_s5 + $0x60] sm:$0xff]  ;;  %3083 = vmatprep.subr.bf16.mxu0 %v3653_v3  ;;  %v46_v32 = vld [vmem:[%s4734_s0 + $0x8] sm:$0xff]  ;;  %v4749_v49 = vmov 7   ;;  %vm385_vm1 = vcmask 1041409   ;;  %vm420_vm2 = vcmask 261120   ;;  %vm177_vm3 = vcmask 523264  }
   0xb   :  { %v3730_v31 = vpack.c.bf16 %v163_v30, %v161_v29  ;;  %v3759_v34 = vshrl.u32 %v4748_v33, 7  ;;  %v165_v38 = vld [vmem:[%s4740_s6] sm:$0x3]  ;;  %3244 = vset.pattern.permute.xlu1 %v4749_v49  ;;  %3245 = vset.pattern.permute.xlu0 %v4749_v49  ;;  %s3560_s6 = smov 64   ;;  %v3561_v30 = vmov 0   ;;  %vm2509_vm4 = vcmask 1040384  }
   0xc   :  { %2955 = vmatmul.mubr.msk.f32.vlgmr.msra.gmra.mrb[0].mxu0 %vm65_vm0, %v45_v27  ;;  %v53_v52 = vld [vmem:[%s4738_s4] sm:$0x3]  ;;  %vm2512_vm5 = vcmask 1041408   ;;  %vm2515_vm6 = vcmask 1042432   ;;  %vm2518_vm7 = vcmask 1043456   ;;  %vm2521_vm8 = vcmask 1044480  }
   0xd   :  { %3077 = vmatpush1.bf16.msra.mxu1 %v3714_v26  ;;  %142 = vmatprep.mubr.f32.mxu0 %v3558_v7  ;;  %v3762_v36 = vsub.s32 0, %v3759_v34  ;;  %v3770_v39 = vsub.s32 1, %v3759_v34  ;;  %v3821_v29 = vld [vmem:[%s4735_s1] sm:$0x3]  ;;  %s3562_s1 = smov 96   ;;  %vm2524_vm9 = vcmask 1045504  }
   0xe   :  { %3079 = vmatprep.subr.bf16.mxu1 %v3720_v28  ;;  %3085 = vmatpush1.bf16.msra.mxu0 %v3666_v8  ;;  %vm2527_vm10 = vcmask 1046528   ;;  %vm2681_vm11 = vcmask 58368   ;;  %vm3572_vm12 = vmmov 0   ;;  %vm2939_vm13 = vcmask 25600  }
   0xf   :  { %3087 = vmatprep.subr.bf16.mxu0 %v3668_v9  ;;  %v3773_v41 = vrot.slane %v165_v38, %v3762_v36  ;;  %v3778_v43 = vrot.slane %v165_v38, %v3770_v39  ;;  %v58_v53 = vrot.slane %v53_v52, %v3762_v36 }
  0x10   :  { %2956 = vmatmul.mubr.msk.f32.gmra.mrb[2].mxu0 %vm65_vm0, %v46_v32  ;;  %v62_v32 = vrot.slane %v53_v52, %v3770_v39 }
  0x11   :  { %3081 = vmatpush1.bf16.msra.mxu1 %v3730_v31  ;;  %500 = vmatprep.mubr.f32.mxu0 %v3558_v7 }
  0x12   :  { %3089 = vmatpush1.bf16.msra.mxu0 %v3684_v14  ;;  %3099 = vmatprep.subr.bf16.mxu1 %v3653_v3 }
  0x13   :  { %3091 = vmatprep.subr.bf16.mxu0 %v3696_v18 }
  0x14   :  { %246 = vmatmul.mubr.f32.vlgmr.msra.gmra.mrb[0].mxu1 %v3558_v7 }
  0x15   :  { %3101 = vmatpush1.bf16.msra.mxu1 %v3666_v8  ;;  %770 = vmatprep.mubr.f32.mxu1 %v3558_v7 }
  0x16   :  { %3093 = vmatpush1.bf16.msra.mxu0 %v3714_v26  ;;  %3103 = vmatprep.subr.bf16.mxu1 %v3668_v9 }
  0x17   :  { %3095 = vmatprep.subr.bf16.mxu0 %v3720_v28 }
  0x19   :  { %3105 = vmatpush1.bf16.msra.mxu1 %v3684_v14 }
  0x1a   :  { %3097 = vmatpush1.bf16.msra.mxu0 %v3730_v31  ;;  %3107 = vmatprep.subr.bf16.mxu1 %v3696_v18 }
  0x1b   :  { %3115 = vmatprep.subr.bf16.mxu0 %v3653_v3 }
  0x1d   :  { %3109 = vmatpush1.bf16.msra.mxu1 %v3714_v26 }
  0x1e   :  { %3111 = vmatprep.subr.bf16.mxu1 %v3720_v28 }
  0x21   :  { %3113 = vmatpush1.bf16.msra.mxu1 %v3730_v31 }
  0x22   :  { %3131 = vmatprep.subr.bf16.mxu1 %v3653_v3 }
  0xdf   :  { %v138_v35 = vpop.f32.mrb[0].mxu0 }
  0xe0   :  { %v3764_v37 = vpop.f32.mrb[1].mxu0  ;;  %v3803_v57 = vadd.f32 %v138_v35, %v58_v53 }
  0xe3   :  { %v144_v40 = vpop.f32.mrb[2].mxu0 }
  0xe4   :  { %v3775_v42 = vpop.f32.mrb[3].mxu0  ;;  %v3800_v54 = vadd.f32 %v144_v40, %v58_v53  ;;  %v3828_v40 = vadd.f32 %v3764_v37, %v62_v32 }
  0xe7   :  { %v247_v44 = vpop.f32.mrb[0].mxu1 }
  0xe8   :  { %v248_v45 = vadd.f32 %v247_v44, %v3773_v41  ;;  %v249_v46 = vpop.f32.mrb[1].mxu1  ;;  %v3831_v44 = vadd.f32 %v3775_v42, %v62_v32 }
  0xe9   :  { %v3782_v47 = vadd.f32 %v249_v46, %v3778_v43 }
  0xea   :  { %v253_v48 = vrot.slane %v248_v45, 1  ;;  %v306_v55 = vrot.slane %v248_v45, 2  ;;  %v256_v62 = vadd.f32 %v248_v45, %v3803_v57 }
  0xeb   :  { %v324_v50 = vrot.slane %v3782_v47, 2  ;;  %v323_v51 = vrot.slane %v3782_v47, 1 }
  0xec   :  { %272 = vrot.lane.b32.xlu0 %v253_v48, %s3560_s6  ;;  %v257_v56 = vadd.f32 %v253_v48, %v3800_v54  ;;  %v308_v58 = vadd.f32 %v253_v48, %v3803_v57  ;;  %v309_v60 = vadd.f32 %v306_v55, %v3800_v54  ;;  %v2957_v0 = vmul.f32 -1.442695, %v256_v62 }
  0xed   :  { %343 = vrot.lane.b32.xlu1 %v324_v50, %s3560_s6 }
  0xee   :  { %v2958_v59 = vmul.f32 -1.442695, %v257_v56  ;;  %v2959_v61 = vmul.f32 -1.442695, %v308_v58  ;;  %v2960_v63 = vmul.f32 -1.442695, %v309_v60  ;;  %v328_v60 = vadd.f32 %v324_v50, %v3831_v44 }
  0xef   :  { %v3839_v58 = vsub.f32 1.0, %v3821_v29 }
  0xf0   :  { %341 = vrot.lane.b32.xlu0 %v323_v51, %s3560_s6  ;;  %3268 = vpow2.f32 %v2958_v59  ;;  %v2962_v62 = vmul.f32 -1.442695, %v328_v60 }
  0xf1   :  { %270 = vrot.lane.b32.xlu1 %v248_v45, %s3560_s6  ;;  %3270 = vpow2.f32 %v2959_v61  ;;  %v327_v61 = vadd.f32 %v323_v51, %v3828_v40 }
  0xf2   :  { %3272 = vpow2.f32 %v2960_v63 }
  0xf3   :  { %3274 = vpow2.f32 %v2957_v0  ;;  %v2961_v63 = vmul.f32 -1.442695, %v327_v61 }
  0xfa   :  { %v3269_v1 = vpop.eup %3268 }
  0xfb   :  { %v3271_v2 = vpop.eup %3270  ;;  %v265_v4 = vadd.f32 1.0, %v3269_v1 }
  0xfc   :  { %v3273_v5 = vpop.eup %3272  ;;  %v316_v6 = vadd.f32 1.0, %v3271_v2 }
  0xfd   :  { %3276 = vrcp.f32 %v265_v4  ;;  %v317_v10 = vadd.f32 1.0, %v3273_v5  ;;  %v3275_v11 = vpop.eup %3274 }
  0xfe   :  { %3278 = vrcp.f32 %v316_v6  ;;  %v264_v12 = vadd.f32 1.0, %v3275_v11 }
  0xff   :  { %3280 = vrcp.f32 %v317_v10 }
 0x100   :  { %3282 = vrcp.f32 %v264_v12 }
 0x107   :  { %v3808_v13 = vpop.eup %3276 }
 0x108   :  { %v3279_v19 = vpop.eup %3278  ;;  %v291_v50 = vsub.f32 1.0, %v3808_v13 }
 0x109   :  { %v3281_v20 = vpop.eup %3280 }
 0x10a   :  { %v3814_v25 = vpop.eup %3282 }
 0x10b   :  { %v290_v32 = vsub.f32 1.0, %v3814_v25 }
 0x15e   :  { %v273_v15 = vpop.permute.xlu0 %272 }
 0x15f   :  { %v277_v16 = vmul.f32 %v3808_v13, %v273_v15  ;;  %v344_v17 = vpop.permute.xlu1 %343 }
 0x160   :  { %v348_v22 = vmul.f32 %v3281_v20, %v344_v17  ;;  %v303_v20 = vmul.f32 0.0, %v3808_v13 }
 0x161   :  { %282 = vrot.lane.b32.xlu0 %v277_v16, %s3560_s6 }
 0x162   :  { %v342_v21 = vpop.permute.xlu0 %341 }
 0x163   :  { %v347_v23 = vmul.f32 %v3279_v19, %v342_v21  ;;  %v271_v24 = vpop.permute.xlu1 %270 }
 0x164   :  { %v276_v27 = vmul.f32 %v3814_v25, %v271_v24 }
 0x165   :  { %353 = vrot.lane.b32.xlu0 %v348_v22, %s3560_s6  ;;  %351 = vrot.lane.b32.xlu1 %v347_v23, %s3560_s6 }
 0x169   :  { %280 = vrot.lane.b32.xlu1 %v276_v27, %s3560_s6 }
 0x16d   :  { %400 = vperm.xlu1 %3244, %v3821_v29  }
 0x171   :  { %3246 = vset.pattern.permute.xlu1 %v3561_v30 }
 0x1d3   :  { %v283_v35 = vpop.permute.xlu0 %282 }
 0x1d4   :  { %v287_v38 = vadd.f32 %v283_v35, %v3800_v54 }
 0x1d6   :  { %3284 = vtanh.f32 %v287_v38 }
 0x1d7   :  { %v354_v45 = vpop.permute.xlu0 %353  ;;  %v352_v46 = vpop.permute.xlu1 %351 }
 0x1d8   :  { %v358_v48 = vadd.f32 %v354_v45, %v3831_v44  ;;  %v357_v53 = vadd.f32 %v352_v46, %v3828_v40  ;;  %v302_v46 = vmul.f32 0.0, %v3814_v25 }
 0x1da   :  { %3286 = vtanh.f32 %v358_v48 }
 0x1db   :  { %3288 = vtanh.f32 %v357_v53  ;;  %v281_v55 = vpop.permute.xlu1 %280 }
 0x1dc   :  { %v286_v52 = vadd.f32 %v281_v55, %v3803_v57 }
 0x1de   :  { %3290 = vtanh.f32 %v286_v52 }
 0x1df   :  { %3292 = vpow2.f32 %v2962_v62 }
 0x1e0   :  { %v3285_v56 = vpop.eup %3284  ;;  %3294 = vpow2.f32 %v2961_v63 }
 0x1e1   :  { %296 = vrot.lane.b32.xlu0 %v3285_v56, %s3562_s1 }
 0x1e4   :  { %v3287_v37 = vpop.eup %3286 }
 0x1e5   :  { %v3289_v42 = vpop.eup %3288  ;;  %367 = vrot.lane.b32.xlu0 %v3287_v37, %s3562_s1 }
 0x1e6   :  { %365 = vrot.lane.b32.xlu1 %v3289_v42, %s3562_s1 }
 0x1e8   :  { %v3291_v59 = vpop.eup %3290 }
 0x1e9   :  { %411 = vperm.xlu0 %3245, %v3839_v58   ;;  %v3293_v0 = vpop.eup %3292 }
 0x1ea   :  { %294 = vrot.lane.b32.xlu1 %v3291_v59, %s3562_s1  ;;  %v3295_v1 = vpop.eup %3294  ;;  %v336_v2 = vadd.f32 1.0, %v3293_v0 }
 0x1eb   :  { %v335_v4 = vadd.f32 1.0, %v3295_v1 }
 0x1ec   :  { %3296 = vrcp.f32 %v336_v2  ;;  %v401_v5 = vpop.permute.xlu1 %400 }
 0x1ed   :  { %3247 = vset.pattern.permute.xlu0 %v3561_v30  ;;  %3298 = vrcp.f32 %v335_v4 }
 0x1ee   :  { %379 = vperm.xlu1 %3246, %v3821_v29   ;;  %394 = vperm.xlu0 %3247, %v3839_v58  }
 0x1f6   :  { %v3297_v6 = vpop.eup %3296 }
 0x1f7   :  { %v3299_v11 = vpop.eup %3298  ;;  %v362_v12 = vsub.f32 1.0, %v3297_v6  ;;  %v374_v16 = vmul.f32 0.0, %v3297_v6 }
 0x1f8   :  { %v361_v51 = vsub.f32 1.0, %v3299_v11  ;;  %v373_v21 = vmul.f32 0.0, %v3299_v11 }
 0x253   :  { %v297_v10 = vpop.permute.xlu0 %296 }
 0x254   :  { %v301_v15 = vmul.f32 %v297_v10, %v291_v50 }
 0x256   :  { %v305_v24 = vadd.f32 %v303_v20, %v301_v15 }
 0x257   :  { %v368_v47 = vpop.permute.xlu0 %367 }
 0x258   :  { %v372_v17 = vmul.f32 %v368_v47, %v362_v12  ;;  %v366_v19 = vpop.permute.xlu1 %365  ;;  %v384_v53 = vrot.slane %v305_v24, 7 }
 0x259   :  { %v371_v22 = vmul.f32 %v366_v19, %v361_v51 }
 0x25a   :  { %v376_v23 = vadd.f32 %v374_v16, %v372_v17 }
 0x25b   :  { %v375_v27 = vadd.f32 %v373_v21, %v371_v22 }
 0x25c   :  { %v406_v35 = vrot.slane %v376_v23, 6  ;;  %v295_v38 = vpop.permute.xlu1 %294 }
 0x25d   :  { %v405_v45 = vrot.slane %v375_v27, 7  ;;  %v300_v48 = vmul.f32 %v295_v38, %v290_v32 }
 0x25f   :  { %v304_v55 = vadd.f32 %v302_v46, %v300_v48  ;;  %v3858_v52 = vsel %vm385_vm1, %v406_v35, %v405_v45 }
 0x260   :  { %v409_v37 = vmul.f32 %v3858_v52, %v401_v5  ;;  %v4750_v5 = vmov 6  }
 0x261   :  { %v386_v13 = vsel %vm385_vm1, %v384_v53, %v304_v55  ;;  %3248 = vset.pattern.permute.xlu0 %v4750_v5 }
 0x262   :  { %387 = vrot.lane.b32.xlu1 %v386_v13, %s3562_s1 }
 0x268   :  { %v412_v56 = vpop.permute.xlu0 %411 }
 0x269   :  { %v414_v42 = vmul.f32 0.0, %v412_v56 }
 0x26b   :  { %v415_v59 = vadd.f32 %v414_v42, %v409_v37 }
 0x26d   :  { %417 = vrot.lane.b32.xlu1 %v415_v59, %s3563_s20  ;;  %v380_v60 = vpop.permute.xlu1 %379  ;;  %v395_v25 = vpop.permute.xlu0 %394 }
 0x26e   :  { %v397_v62 = vmul.f32 0.0, %v395_v25 }
 0x2d4   :  { %v3864_v61 = vpop.permute.xlu1 %387 }
 0x2d5   :  { %v390_v63 = vmul.f32 %v3864_v61, %v380_v60 }
 0x2d7   :  { %v398_v0 = vadd.f32 %v397_v62, %v390_v63 }
 0x2df   :  { %v418_v1 = vpop.permute.xlu1 %417 }
 0x2e0   :  { %v3868_v2 = vsel %vm420_vm2, %v398_v0, %v418_v1 }
 0x2e1   :  { %2963 = vmatmul.mubr.msk.f32.vlgmr.msra.gmra.mrb[4].mxu0 %vm177_vm3, %v3868_v2 }
 0x2e2   :  { %3117 = vmatpush1.bf16.msra.mxu0 %v3666_v8  ;;  %1043 = vmatprep.mubr.f32.mxu0 %v3558_v7 }
 0x2e3   :  { %3119 = vmatprep.subr.bf16.mxu0 %v3668_v9 }
 0x2e6   :  { %3121 = vmatpush1.bf16.msra.mxu0 %v3684_v14 }
 0x2e7   :  { %3123 = vmatprep.subr.bf16.mxu0 %v3696_v18 }
 0x2ea   :  { %3125 = vmatpush1.bf16.msra.mxu0 %v3714_v26 }
 0x2eb   :  { %3127 = vmatprep.subr.bf16.mxu0 %v3720_v28 }
 0x2ee   :  { %3129 = vmatpush1.bf16.msra.mxu0 %v3730_v31 }
 0x2ef   :  { %3147 = vmatprep.subr.bf16.mxu0 %v3653_v3 }
 0x3b4   :  { %v502_v4 = vpop.f32.mrb[4].mxu0 }
 0x3b5   :  { %v503_v6 = vadd.f32 %v502_v4, %v3773_v41  ;;  %v504_v10 = vpop.f32.mrb[5].mxu0  ;;  %v557_v4 = vrot.slane %v3868_v2, 7 }
 0x3b6   :  { %v3884_v11 = vadd.f32 %v504_v10, %v3778_v43  ;;  %v638_v10 = vrot.slane %v3868_v2, 3 }
 0x3b7   :  { %v508_v50 = vrot.slane %v503_v6, 7  ;;  %v568_v47 = vrot.slane %v503_v6, 2  ;;  %v569_v51 = vrot.slane %v503_v6, 3  ;;  %v512_v21 = vadd.f32 %v503_v6, %v3800_v54 }
 0x3b8   :  { %v587_v12 = vrot.slane %v3884_v11, 2  ;;  %v588_v15 = vrot.slane %v3884_v11, 3 }
 0x3b9   :  { %525 = vrot.lane.b32.xlu0 %v508_v50, %s3560_s6  ;;  %v511_v16 = vadd.f32 %v508_v50, %v3803_v57  ;;  %v572_v17 = vadd.f32 %v568_v47, %v3803_v57  ;;  %v573_v19 = vadd.f32 %v569_v51, %v3800_v54  ;;  %v2965_v24 = vmul.f32 -1.442695, %v512_v21 }
 0x3ba   :  { %605 = vrot.lane.b32.xlu1 %v587_v12, %s3560_s6  ;;  %v3565_v50 = vmov 1  }
 0x3bb   :  { %v2964_v20 = vmul.f32 -1.442695, %v511_v16  ;;  %v2966_v22 = vmul.f32 -1.442695, %v572_v17  ;;  %v2967_v23 = vmul.f32 -1.442695, %v573_v19  ;;  %3250 = vset.pattern.permute.xlu1 %v3565_v50 }
 0x3bd   :  { %607 = vrot.lane.b32.xlu0 %v588_v15, %s3560_s6  ;;  %3300 = vpow2.f32 %v2964_v20 }
 0x3be   :  { %527 = vrot.lane.b32.xlu1 %v503_v6, %s3560_s6  ;;  %3302 = vpow2.f32 %v2966_v22  ;;  %v637_v6 = vrot.slane %v3868_v2, 2 }
 0x3bf   :  { %3304 = vpow2.f32 %v2967_v23 }
 0x3c0   :  { %3306 = vpow2.f32 %v2965_v24 }
 0x3c7   :  { %v3301_v27 = vpop.eup %3300 }
 0x3c8   :  { %v3303_v32 = vpop.eup %3302  ;;  %v519_v35 = vadd.f32 1.0, %v3301_v27 }
 0x3c9   :  { %v3305_v38 = vpop.eup %3304  ;;  %v580_v45 = vadd.f32 1.0, %v3303_v32 }
 0x3ca   :  { %v3307_v46 = vpop.eup %3306  ;;  %3308 = vrcp.f32 %v519_v35  ;;  %v581_v48 = vadd.f32 1.0, %v3305_v38 }
 0x3cb   :  { %v520_v53 = vadd.f32 1.0, %v3307_v46  ;;  %3310 = vrcp.f32 %v580_v45  ;;  %v591_v45 = vadd.f32 %v587_v12, %v3828_v40  ;;  %v592_v46 = vadd.f32 %v588_v15, %v3831_v44 }
 0x3cc   :  { %3312 = vrcp.f32 %v581_v48 }
 0x3cd   :  { %3314 = vrcp.f32 %v520_v53  ;;  %v2968_v48 = vmul.f32 -1.442695, %v591_v45  ;;  %v2969_v53 = vmul.f32 -1.442695, %v592_v46 }
 0x3d4   :  { %v3900_v55 = vpop.eup %3308 }
 0x3d5   :  { %v3311_v56 = vpop.eup %3310  ;;  %v545_v15 = vsub.f32 1.0, %v3900_v55 }
 0x3d6   :  { %v3313_v60 = vpop.eup %3312 }
 0x3d7   :  { %v3905_v62 = vpop.eup %3314 }
 0x42b   :  { %v526_v13 = vpop.permute.xlu0 %525 }
 0x42c   :  { %v531_v37 = vmul.f32 %v3900_v55, %v526_v13  ;;  %v606_v42 = vpop.permute.xlu1 %605 }
 0x42d   :  { %v611_v59 = vmul.f32 %v3311_v56, %v606_v42 }
 0x42e   :  { %535 = vrot.lane.b32.xlu0 %v531_v37, %s3560_s6 }
 0x42f   :  { %615 = vrot.lane.b32.xlu1 %v611_v59, %s3560_s6  ;;  %v608_v25 = vpop.permute.xlu0 %607 }
 0x430   :  { %v612_v63 = vmul.f32 %v3313_v60, %v608_v25  ;;  %v528_v0 = vpop.permute.xlu1 %527 }
 0x431   :  { %v532_v1 = vmul.f32 %v3905_v62, %v528_v0 }
 0x432   :  { %617 = vrot.lane.b32.xlu0 %v612_v63, %s3560_s6 }
 0x433   :  { %537 = vrot.lane.b32.xlu1 %v532_v1, %s3560_s6 }
 0x436   :  { %679 = vperm.xlu0 %3248, %v3839_v58  }
 0x437   :  { %558 = vrot.lane.b32.xlu1 %v557_v4, %s3563_s20 }
 0x43a   :  { %639 = vrot.lane.b32.xlu0 %v637_v6, %s3562_s1 }
 0x43b   :  { %641 = vrot.lane.b32.xlu1 %v638_v10, %s3562_s1 }
 0x43e   :  { %668 = vperm.xlu0 %3248, %v3821_v29  }
 0x442   :  { %3249 = vset.pattern.permute.xlu0 %v3565_v50 }
 0x4a0   :  { %v536_v47 = vpop.permute.xlu0 %535 }
 0x4a1   :  { %v541_v51 = vadd.f32 %v536_v47, %v3803_v57  ;;  %v616_v16 = vpop.permute.xlu1 %615 }
 0x4a2   :  { %v621_v17 = vadd.f32 %v616_v16, %v3828_v40 }
 0x4a3   :  { %3316 = vtanh.f32 %v541_v51 }
 0x4a4   :  { %3318 = vtanh.f32 %v621_v17  ;;  %v618_v19 = vpop.permute.xlu0 %617 }
 0x4a5   :  { %v622_v20 = vadd.f32 %v618_v19, %v3831_v44  ;;  %v538_v21 = vpop.permute.xlu1 %537 }
 0x4a6   :  { %v542_v22 = vadd.f32 %v538_v21, %v3800_v54 }
 0x4a7   :  { %3320 = vtanh.f32 %v622_v20 }
 0x4a8   :  { %3322 = vtanh.f32 %v542_v22 }
 0x4a9   :  { %3324 = vpow2.f32 %v2968_v48  ;;  %v559_v59 = vpop.permute.xlu1 %558 }
 0x4aa   :  { %3326 = vpow2.f32 %v2969_v53  ;;  %v564_v17 = vmul.f32 %v3900_v55, %v559_v59 }
 0x4ad   :  { %v3317_v23 = vpop.eup %3316  ;;  %v642_v25 = vpop.permute.xlu1 %641 }
 0x4ae   :  { %v3319_v24 = vpop.eup %3318  ;;  %549 = vrot.lane.b32.xlu1 %v3317_v23, %s3562_s1 }
 0x4af   :  { %629 = vrot.lane.b32.xlu0 %v3319_v24, %s3562_s1 }
 0x4b1   :  { %v3321_v27 = vpop.eup %3320 }
 0x4b2   :  { %631 = vrot.lane.b32.xlu1 %v3321_v27, %s3562_s1  ;;  %v3323_v32 = vpop.eup %3322  ;;  %v546_v27 = vsub.f32 1.0, %v3905_v62 }
 0x4b3   :  { %560 = vrot.lane.b32.xlu0 %v3868_v2, %s3563_s20  ;;  %v3325_v13 = vpop.eup %3324 }
 0x4b4   :  { %v3327_v56 = vpop.eup %3326  ;;  %v599_v37 = vadd.f32 1.0, %v3325_v13 }
 0x4b5   :  { %v3929_v35 = vpop.permute.xlu0 %679  ;;  %v600_v42 = vadd.f32 1.0, %v3327_v56 }
 0x4b6   :  { %551 = vrot.lane.b32.xlu1 %v3323_v32, %s3562_s1  ;;  %v682_v38 = vmul.f32 %v3929_v35, %v3868_v2  ;;  %3328 = vrcp.f32 %v599_v37 }
 0x4b7   :  { %650 = vperm.xlu0 %3249, %v3821_v29   ;;  %3330 = vrcp.f32 %v600_v42 }
 0x4b9   :  { %v640_v60 = vpop.permute.xlu0 %639 }
 0x4ba   :  { %684 = vrot.lane.b32.xlu1 %v682_v38, %s3562_s1 }
 0x4bd   :  { %v3943_v0 = vpop.permute.xlu0 %668 }
 0x4be   :  { %662 = vperm.xlu1 %3250, %v3839_v58  }
 0x4c0   :  { %v3329_v63 = vpop.eup %3328 }
 0x4c1   :  { %v3331_v12 = vpop.eup %3330  ;;  %v625_v11 = vsub.f32 1.0, %v3329_v63  ;;  %v645_v10 = vmul.f32 %v3329_v63, %v640_v60 }
 0x4c2   :  { %v626_v51 = vsub.f32 1.0, %v3331_v12  ;;  %v646_v19 = vmul.f32 %v3331_v12, %v642_v25 }
 0x520   :  { %v550_v1 = vpop.permute.xlu1 %549 }
 0x521   :  { %v630_v4 = vpop.permute.xlu0 %629  ;;  %v555_v47 = vmul.f32 %v550_v1, %v545_v15 }
 0x522   :  { %v635_v6 = vmul.f32 %v630_v4, %v625_v11 }
 0x523   :  { %v566_v23 = vadd.f32 %v564_v17, %v555_v47 }
 0x524   :  { %v632_v16 = vpop.permute.xlu1 %631  ;;  %v647_v20 = vadd.f32 %v645_v10, %v635_v6 }
 0x525   :  { %v636_v21 = vmul.f32 %v632_v16, %v626_v51  ;;  %v561_v22 = vpop.permute.xlu0 %560  ;;  %v655_v53 = vrot.slane %v566_v23, 1 }
 0x526   :  { %v673_v38 = vrot.slane %v647_v20, 6  ;;  %v565_v46 = vmul.f32 %v3905_v62, %v561_v22 }
 0x527   :  { %v648_v24 = vadd.f32 %v646_v19, %v636_v21 }
 0x528   :  { %v552_v32 = vpop.permute.xlu1 %551 }
 0x529   :  { %v674_v45 = vrot.slane %v648_v24, 5  ;;  %v556_v48 = vmul.f32 %v552_v32, %v546_v27 }
 0x52b   :  { %v567_v13 = vadd.f32 %v565_v46, %v556_v48  ;;  %v3950_v56 = vsel %vm385_vm1, %v674_v45, %v673_v38 }
 0x52c   :  { %v685_v55 = vpop.permute.xlu1 %684  ;;  %v677_v37 = vmul.f32 %v3950_v56, %v3943_v0 }
 0x52d   :  { %v656_v42 = vsel %vm385_vm1, %v567_v13, %v655_v53 }
 0x52e   :  { %v687_v59 = vadd.f32 %v685_v55, %v677_v37  ;;  %657 = vrot.lane.b32.xlu1 %v656_v42, %s3562_s1 }
 0x530   :  { %689 = vrot.lane.b32.xlu0 %v687_v59, %s3563_s20 }
 0x536   :  { %v3959_v62 = vpop.permute.xlu0 %650 }
 0x53d   :  { %v3957_v60 = vpop.permute.xlu1 %662 }
 0x53e   :  { %v665_v63 = vmul.f32 %v3957_v60, %v3868_v2  ;;  %v4752_v2 = vmov 5  }
 0x53f   :  { %3251 = vset.pattern.permute.xlu1 %v4752_v2  ;;  %3252 = vset.pattern.permute.xlu0 %v4752_v2 }
 0x5a0   :  { %v3961_v25 = vpop.permute.xlu1 %657 }
 0x5a1   :  { %v660_v12 = vmul.f32 %v3961_v25, %v3959_v62 }
 0x5a2   :  { %v690_v11 = vpop.permute.xlu0 %689 }
 0x5a3   :  { %v666_v1 = vadd.f32 %v665_v63, %v660_v12 }
 0x5a5   :  { %v3968_v15 = vsel %vm420_vm2, %v666_v1, %v690_v11 }
 0x5a6   :  { %2970 = vmatmul.mubr.msk.f32.vlgmr.msra.gmra.mrb[2].mxu1 %vm177_vm3, %v3968_v15 }
 0x5a7   :  { %3133 = vmatpush1.bf16.msra.mxu1 %v3666_v8  ;;  %1313 = vmatprep.mubr.f32.mxu1 %v3558_v7 }
 0x5a8   :  { %3135 = vmatprep.subr.bf16.mxu1 %v3668_v9 }
 0x5ab   :  { %3137 = vmatpush1.bf16.msra.mxu1 %v3684_v14 }
 0x5ac   :  { %3139 = vmatprep.subr.bf16.mxu1 %v3696_v18 }
 0x5af   :  { %3141 = vmatpush1.bf16.msra.mxu1 %v3714_v26 }
 0x5b0   :  { %3143 = vmatprep.subr.bf16.mxu1 %v3720_v28 }
 0x5b3   :  { %3145 = vmatpush1.bf16.msra.mxu1 %v3730_v31 }
 0x5b4   :  { %3163 = vmatprep.subr.bf16.mxu1 %v3653_v3 }
 0x679   :  { %v772_v4 = vpop.f32.mrb[2].mxu1 }
 0x67a   :  { %v773_v6 = vadd.f32 %v772_v4, %v3773_v41  ;;  %v774_v10 = vpop.f32.mrb[3].mxu1 }
 0x67b   :  { %v3985_v47 = vadd.f32 %v774_v10, %v3778_v43 }
 0x67c   :  { %v779_v51 = vrot.slane %v773_v6, 7  ;;  %v778_v16 = vrot.slane %v773_v6, 6  ;;  %v840_v20 = vrot.slane %v773_v6, 3  ;;  %v841_v22 = vrot.slane %v773_v6, 4 }
 0x67d   :  { %v859_v17 = vrot.slane %v3985_v47, 3  ;;  %v860_v19 = vrot.slane %v3985_v47, 4 }
 0x67e   :  { %798 = vrot.lane.b32.xlu0 %v779_v51, %s3560_s6  ;;  %796 = vrot.lane.b32.xlu1 %v778_v16, %s3560_s6  ;;  %v783_v21 = vadd.f32 %v779_v51, %v3800_v54  ;;  %v782_v23 = vadd.f32 %v778_v16, %v3803_v57  ;;  %v844_v24 = vadd.f32 %v840_v20, %v3803_v57 }
 0x67f   :  { %v845_v32 = vadd.f32 %v841_v22, %v3800_v54 }
 0x680   :  { %v2972_v27 = vmul.f32 -1.442695, %v783_v21  ;;  %v2971_v38 = vmul.f32 -1.442695, %v782_v23  ;;  %v2973_v45 = vmul.f32 -1.442695, %v844_v24 }
 0x681   :  { %v2974_v46 = vmul.f32 -1.442695, %v845_v32  ;;  %v828_v24 = vrot.slane %v3968_v15, 6  ;;  %v829_v32 = vrot.slane %v3968_v15, 7 }
 0x682   :  { %879 = vrot.lane.b32.xlu0 %v860_v19, %s3560_s6  ;;  %877 = vrot.lane.b32.xlu1 %v859_v17, %s3560_s6  ;;  %3332 = vpow2.f32 %v2972_v27  ;;  %v909_v27 = vrot.slane %v3968_v15, 3 }
 0x683   :  { %3334 = vpow2.f32 %v2971_v38  ;;  %v3567_v38 = vmov 2  }
 0x684   :  { %3336 = vpow2.f32 %v2973_v45 }
 0x685   :  { %3338 = vpow2.f32 %v2974_v46 }
 0x68c   :  { %v3333_v48 = vpop.eup %3332 }
 0x68d   :  { %v3335_v53 = vpop.eup %3334  ;;  %v791_v13 = vadd.f32 1.0, %v3333_v48 }
 0x68e   :  { %v3337_v55 = vpop.eup %3336  ;;  %v790_v37 = vadd.f32 1.0, %v3335_v53 }
 0x68f   :  { %v3339_v42 = vpop.eup %3338  ;;  %3340 = vrcp.f32 %v791_v13  ;;  %v852_v59 = vadd.f32 1.0, %v3337_v55 }
 0x690   :  { %3342 = vrcp.f32 %v790_v37  ;;  %v853_v63 = vadd.f32 1.0, %v3339_v42 }
 0x691   :  { %3344 = vrcp.f32 %v852_v59 }
 0x692   :  { %3346 = vrcp.f32 %v853_v63 }
 0x699   :  { %v4001_v12 = vpop.eup %3340 }
 0x69a   :  { %v4003_v1 = vpop.eup %3342 }
 0x69b   :  { %v3345_v51 = vpop.eup %3344 }
 0x69c   :  { %v3347_v16 = vpop.eup %3346 }
 0x6f0   :  { %v799_v11 = vpop.permute.xlu0 %798  ;;  %v797_v4 = vpop.permute.xlu1 %796 }
 0x6f1   :  { %v803_v6 = vmul.f32 %v4001_v12, %v799_v11  ;;  %v802_v10 = vmul.f32 %v4003_v1, %v797_v4 }
 0x6f3   :  { %808 = vrot.lane.b32.xlu0 %v803_v6, %s3560_s6  ;;  %806 = vrot.lane.b32.xlu1 %v802_v10, %s3560_s6  ;;  %v910_v6 = vrot.slane %v3968_v15, 4 }
 0x6f4   :  { %v880_v20 = vpop.permute.xlu0 %879  ;;  %v878_v21 = vpop.permute.xlu1 %877 }
 0x6f5   :  { %v884_v22 = vmul.f32 %v3347_v16, %v880_v20  ;;  %v883_v23 = vmul.f32 %v3345_v51, %v878_v21  ;;  %v863_v16 = vadd.f32 %v859_v17, %v3828_v40  ;;  %v864_v20 = vadd.f32 %v860_v19, %v3831_v44 }
 0x6f6   :  { %v816_v17 = vsub.f32 1.0, %v4003_v1 }
 0x6f7   :  { %889 = vrot.lane.b32.xlu0 %v884_v22, %s3560_s6  ;;  %887 = vrot.lane.b32.xlu1 %v883_v23, %s3560_s6  ;;  %v2975_v21 = vmul.f32 -1.442695, %v863_v16  ;;  %v2976_v22 = vmul.f32 -1.442695, %v864_v20 }
 0x6fb   :  { %830 = vrot.lane.b32.xlu0 %v828_v24, %s3563_s20  ;;  %952 = vperm.xlu1 %3251, %v3839_v58  }
 0x6ff   :  { %911 = vrot.lane.b32.xlu0 %v909_v27, %s3562_s1  ;;  %832 = vrot.lane.b32.xlu1 %v829_v32, %s3563_s20 }
 0x700   :  { %3253 = vset.pattern.permute.xlu1 %v3567_v38 }
 0x765   :  { %v809_v45 = vpop.permute.xlu0 %808  ;;  %v807_v46 = vpop.permute.xlu1 %806 }
 0x766   :  { %v813_v48 = vadd.f32 %v809_v45, %v3800_v54  ;;  %v812_v53 = vadd.f32 %v807_v46, %v3803_v57 }
 0x768   :  { %3348 = vtanh.f32 %v813_v48 }
 0x769   :  { %3350 = vtanh.f32 %v812_v53  ;;  %v890_v13 = vpop.permute.xlu0 %889  ;;  %v888_v55 = vpop.permute.xlu1 %887  ;;  %v817_v53 = vsub.f32 1.0, %v4001_v12 }
 0x76a   :  { %v894_v37 = vadd.f32 %v890_v13, %v3831_v44  ;;  %v893_v42 = vadd.f32 %v888_v55, %v3828_v40 }
 0x76c   :  { %3352 = vtanh.f32 %v894_v37 }
 0x76d   :  { %3354 = vtanh.f32 %v893_v42  ;;  %v831_v45 = vpop.permute.xlu0 %830 }
 0x76e   :  { %3356 = vpow2.f32 %v2975_v21  ;;  %v836_v42 = vmul.f32 %v4003_v1, %v831_v45 }
 0x76f   :  { %3358 = vpow2.f32 %v2976_v22 }
 0x771   :  { %v912_v48 = vpop.permute.xlu0 %911 }
 0x772   :  { %v3349_v59 = vpop.eup %3348 }
 0x773   :  { %v3351_v63 = vpop.eup %3350  ;;  %822 = vrot.lane.b32.xlu1 %v3349_v59, %s3562_s1 }
 0x774   :  { %820 = vrot.lane.b32.xlu0 %v3351_v63, %s3562_s1 }
 0x776   :  { %v3353_v11 = vpop.eup %3352 }
 0x777   :  { %v3355_v4 = vpop.eup %3354  ;;  %903 = vrot.lane.b32.xlu1 %v3353_v11, %s3562_s1 }
 0x778   :  { %901 = vrot.lane.b32.xlu0 %v3355_v4, %s3562_s1  ;;  %v3357_v23 = vpop.eup %3356 }
 0x779   :  { %v3359_v24 = vpop.eup %3358  ;;  %v871_v27 = vadd.f32 1.0, %v3357_v23 }
 0x77a   :  { %v4028_v10 = vpop.permute.xlu1 %952  ;;  %v872_v32 = vadd.f32 1.0, %v3359_v24 }
 0x77b   :  { %913 = vrot.lane.b32.xlu1 %v910_v6, %s3562_s1  ;;  %v955_v51 = vmul.f32 %v4028_v10, %v3968_v15  ;;  %3360 = vrcp.f32 %v871_v27 }
 0x77c   :  { %941 = vperm.xlu0 %3252, %v3821_v29   ;;  %3362 = vrcp.f32 %v872_v32 }
 0x77e   :  { %v833_v46 = vpop.permute.xlu1 %832 }
 0x77f   :  { %957 = vrot.lane.b32.xlu1 %v955_v51, %s3562_s1  ;;  %v837_v19 = vmul.f32 %v4001_v12, %v833_v46 }
 0x780   :  { %3254 = vset.pattern.permute.xlu0 %v3567_v38 }
 0x781   :  { %935 = vperm.xlu0 %3254, %v3839_v58  }
 0x783   :  { %922 = vperm.xlu1 %3253, %v3821_v29  }
 0x785   :  { %v3361_v47 = vpop.eup %3360 }
 0x786   :  { %v3363_v11 = vpop.eup %3362  ;;  %v897_v6 = vsub.f32 1.0, %v3361_v47  ;;  %v917_v23 = vmul.f32 %v3361_v47, %v912_v48 }
 0x787   :  { %v898_v24 = vsub.f32 1.0, %v3363_v11 }
 0x7e5   :  { %v823_v13 = vpop.permute.xlu1 %822 }
 0x7e6   :  { %v821_v55 = vpop.permute.xlu0 %820  ;;  %v827_v37 = vmul.f32 %v823_v13, %v817_v53 }
 0x7e7   :  { %v826_v59 = vmul.f32 %v821_v55, %v816_v17 }
 0x7e8   :  { %v839_v63 = vadd.f32 %v837_v19, %v827_v37 }
 0x7e9   :  { %v838_v4 = vadd.f32 %v836_v42, %v826_v59  ;;  %v904_v51 = vpop.permute.xlu1 %903 }
 0x7ea   :  { %v928_v16 = vrot.slane %v839_v63, 1  ;;  %v902_v20 = vpop.permute.xlu0 %901  ;;  %v908_v46 = vmul.f32 %v904_v51, %v898_v24 }
 0x7eb   :  { %v927_v21 = vrot.slane %v838_v4, 2  ;;  %v907_v22 = vmul.f32 %v902_v20, %v897_v6 }
 0x7ed   :  { %v929_v27 = vsel %vm385_vm1, %v928_v16, %v927_v21  ;;  %v914_v32 = vpop.permute.xlu1 %913  ;;  %v919_v12 = vadd.f32 %v917_v23, %v907_v22 }
 0x7ee   :  { %930 = vrot.lane.b32.xlu1 %v929_v27, %s3562_s1  ;;  %v918_v1 = vmul.f32 %v3363_v11, %v914_v32 }
 0x7ef   :  { %v946_v53 = vrot.slane %v919_v12, 5 }
 0x7f0   :  { %v920_v45 = vadd.f32 %v918_v1, %v908_v46 }
 0x7f1   :  { %v958_v47 = vpop.permute.xlu1 %957 }
 0x7f2   :  { %v947_v17 = vrot.slane %v920_v45, 4 }
 0x7f4   :  { %v4051_v13 = vsel %vm385_vm1, %v947_v17, %v946_v53 }
 0x7fb   :  { %v4053_v19 = vpop.permute.xlu0 %941 }
 0x7fc   :  { %v950_v48 = vmul.f32 %v4051_v13, %v4053_v19 }
 0x7fe   :  { %v960_v55 = vadd.f32 %v958_v47, %v950_v48 }
 0x800   :  { %962 = vrot.lane.b32.xlu1 %v960_v55, %s3563_s20  ;;  %v4062_v59 = vpop.permute.xlu0 %935 }
 0x801   :  { %v938_v11 = vmul.f32 %v4062_v59, %v3968_v15  ;;  %v4751_v15 = vmov 4  }
 0x802   :  { %v4058_v37 = vpop.permute.xlu1 %922  ;;  %3255 = vset.pattern.permute.xlu0 %v4751_v15 }
 0x860   :  { %v4060_v42 = vpop.permute.xlu1 %930 }
 0x861   :  { %v933_v63 = vmul.f32 %v4060_v42, %v4058_v37 }
 0x863   :  { %v939_v4 = vadd.f32 %v938_v11, %v933_v63 }
 0x872   :  { %v963_v6 = vpop.permute.xlu1 %962 }
 0x873   :  { %v4069_v51 = vsel %vm420_vm2, %v939_v4, %v963_v6 }
 0x874   :  { %2977 = vmatmul.mubr.msk.f32.vlgmr.msra.gmra.mrb[6].mxu0 %vm177_vm3, %v4069_v51 }
 0x875   :  { %3149 = vmatpush1.bf16.msra.mxu0 %v3666_v8  ;;  %1559 = vmatprep.mubr.f32.mxu0 %v3558_v7 }
 0x876   :  { %3151 = vmatprep.subr.bf16.mxu0 %v3668_v9 }
 0x879   :  { %3153 = vmatpush1.bf16.msra.mxu0 %v3684_v14 }
 0x87a   :  { %3155 = vmatprep.subr.bf16.mxu0 %v3696_v18 }
 0x87d   :  { %3157 = vmatpush1.bf16.msra.mxu0 %v3714_v26 }
 0x87e   :  { %3159 = vmatprep.subr.bf16.mxu0 %v3720_v28 }
 0x881   :  { %3161 = vmatpush1.bf16.msra.mxu0 %v3730_v31 }
 0x882   :  { %3179 = vmatprep.subr.bf16.mxu0 %v3653_v3 }
 0x947   :  { %v1045_v16 = vpop.f32.mrb[6].mxu0 }
 0x948   :  { %v1046_v20 = vadd.f32 %v1045_v16, %v3773_v41  ;;  %v1047_v21 = vpop.f32.mrb[7].mxu0 }
 0x949   :  { %v4085_v22 = vadd.f32 %v1047_v21, %v3778_v43 }
 0x94a   :  { %v1052_v23 = vrot.slane %v1046_v20, 6  ;;  %v1051_v24 = vrot.slane %v1046_v20, 5  ;;  %v1113_v32 = vrot.slane %v1046_v20, 4 }
 0x94b   :  { %v1130_v27 = vrot.slane %v4085_v22, 4  ;;  %v1131_v3 = vrot.slane %v4085_v22, 5 }
 0x94c   :  { %1071 = vrot.lane.b32.xlu1 %v1052_v23, %s3560_s6  ;;  %1069 = vrot.lane.b32.xlu0 %v1051_v24, %s3560_s6  ;;  %v1056_v12 = vadd.f32 %v1052_v23, %v3800_v54  ;;  %v1055_v46 = vadd.f32 %v1051_v24, %v3803_v57  ;;  %v1115_v1 = vadd.f32 %v1113_v32, %v3803_v57 }
 0x94d   :  { %v1116_v17 = vadd.f32 %v1051_v24, %v3800_v54 }
 0x94e   :  { %v2979_v45 = vmul.f32 -1.442695, %v1056_v12  ;;  %v2978_v53 = vmul.f32 -1.442695, %v1055_v46  ;;  %v2980_v48 = vmul.f32 -1.442695, %v1115_v1 }
 0x94f   :  { %v2981_v47 = vmul.f32 -1.442695, %v1116_v17 }
 0x950   :  { %1150 = vrot.lane.b32.xlu1 %v1131_v3, %s3560_s6  ;;  %1148 = vrot.lane.b32.xlu0 %v1130_v27, %s3560_s6  ;;  %3364 = vpow2.f32 %v2979_v45 }
 0x951   :  { %3366 = vpow2.f32 %v2978_v53 }
 0x952   :  { %3368 = vpow2.f32 %v2980_v48 }
 0x953   :  { %3370 = vpow2.f32 %v2981_v47 }
 0x95a   :  { %v3365_v55 = vpop.eup %3364 }
 0x95b   :  { %v3367_v63 = vpop.eup %3366  ;;  %v1064_v11 = vadd.f32 1.0, %v3365_v55 }
 0x95c   :  { %v3369_v4 = vpop.eup %3368  ;;  %v1063_v6 = vadd.f32 1.0, %v3367_v63  ;;  %v1102_v63 = vrot.slane %v4069_v51, 6 }
 0x95d   :  { %v3371_v16 = vpop.eup %3370  ;;  %v1123_v20 = vadd.f32 1.0, %v3369_v4  ;;  %3372 = vrcp.f32 %v1064_v11  ;;  %v1101_v11 = vrot.slane %v4069_v51, 5  ;;  %v1180_v4 = vrot.slane %v4069_v51, 4 }
 0x95e   :  { %3374 = vrcp.f32 %v1063_v6  ;;  %v1124_v21 = vadd.f32 1.0, %v3371_v16  ;;  %v3569_v6 = vmov 3  }
 0x95f   :  { %3376 = vrcp.f32 %v1123_v20  ;;  %3257 = vset.pattern.permute.xlu1 %v3569_v6 }
 0x960   :  { %3378 = vrcp.f32 %v1124_v21 }
 0x967   :  { %v4101_v23 = vpop.eup %3372 }
 0x968   :  { %v4103_v24 = vpop.eup %3374 }
 0x969   :  { %v3377_v45 = vpop.eup %3376 }
 0x96a   :  { %v3379_v53 = vpop.eup %3378 }
 0x9be   :  { %v1072_v32 = vpop.permute.xlu1 %1071  ;;  %v1070_v12 = vpop.permute.xlu0 %1069 }
 0x9bf   :  { %v1076_v46 = vmul.f32 %v4101_v23, %v1072_v32  ;;  %v1075_v1 = vmul.f32 %v4103_v24, %v1070_v12 }
 0x9c1   :  { %1081 = vrot.lane.b32.xlu1 %v1076_v46, %s3560_s6  ;;  %1079 = vrot.lane.b32.xlu0 %v1075_v1, %s3560_s6 }
 0x9c2   :  { %v1151_v17 = vpop.permute.xlu1 %1150  ;;  %v1149_v48 = vpop.permute.xlu0 %1148 }
 0x9c3   :  { %v1155_v47 = vmul.f32 %v3379_v53, %v1151_v17  ;;  %v1154_v55 = vmul.f32 %v3377_v45, %v1149_v48 }
 0x9c5   :  { %1160 = vrot.lane.b32.xlu1 %v1155_v47, %s3560_s6  ;;  %1158 = vrot.lane.b32.xlu0 %v1154_v55, %s3560_s6 }
 0x9c9   :  { %1105 = vrot.lane.b32.xlu1 %v1102_v63, %s3563_s20  ;;  %1222 = vperm.xlu0 %3255, %v3839_v58  }
 0x9cd   :  { %1103 = vrot.lane.b32.xlu0 %v1101_v11, %s3563_s20 }
 0x9d1   :  { %1181 = vrot.lane.b32.xlu0 %v1180_v4, %s3562_s1  ;;  %v1134_v4 = vadd.f32 %v1130_v27, %v3828_v40 }
 0xa33   :  { %v1082_v16 = vpop.permute.xlu1 %1081  ;;  %v1080_v20 = vpop.permute.xlu0 %1079 }
 0xa34   :  { %v1085_v21 = vadd.f32 %v1080_v20, %v3803_v57  ;;  %v1086_v32 = vadd.f32 %v1082_v16, %v3800_v54 }
 0xa36   :  { %3380 = vtanh.f32 %v1085_v21 }
 0xa37   :  { %v1159_v12 = vpop.permute.xlu0 %1158  ;;  %v1161_v46 = vpop.permute.xlu1 %1160  ;;  %3382 = vtanh.f32 %v1086_v32 }
 0xa38   :  { %v1164_v1 = vadd.f32 %v1159_v12, %v3828_v40  ;;  %v1165_v45 = vadd.f32 %v1161_v46, %v3831_v44 }
 0xa3a   :  { %3384 = vtanh.f32 %v1164_v1 }
 0xa3b   :  { %3386 = vtanh.f32 %v1165_v45 }
 0xa40   :  { %v3381_v53 = vpop.eup %3380 }
 0xa41   :  { %1093 = vrot.lane.b32.xlu1 %v3381_v53, %s3562_s1  ;;  %v3383_v17 = vpop.eup %3382 }
 0xa44   :  { %v3385_v48 = vpop.eup %3384 }
 0xa45   :  { %1095 = vrot.lane.b32.xlu1 %v3383_v17, %s3562_s1  ;;  %1172 = vrot.lane.b32.xlu0 %v3385_v48, %s3562_s1  ;;  %v3387_v47 = vpop.eup %3386 }
 0xa48   :  { %v4128_v55 = vpop.permute.xlu0 %1222 }
 0xa49   :  { %1174 = vrot.lane.b32.xlu1 %v3387_v47, %s3562_s1  ;;  %1211 = vperm.xlu0 %3255, %v3821_v29   ;;  %v1225_v63 = vmul.f32 %v4128_v55, %v4069_v51 }
 0xa4c   :  { %v1104_v12 = vpop.permute.xlu0 %1103 }
 0xa4d   :  { %1183 = vrot.lane.b32.xlu1 %v1101_v11, %s3562_s1  ;;  %3256 = vset.pattern.permute.xlu0 %v3569_v6  ;;  %v1135_v11 = vadd.f32 %v1131_v3, %v3831_v44  ;;  %v1109_v22 = vmul.f32 %v4103_v24, %v1104_v12  ;;  %v1090_v3 = vsub.f32 1.0, %v4101_v23 }
 0xa4e   :  { %1192 = vperm.xlu0 %3256, %v3821_v29   ;;  %v2982_v29 = vmul.f32 -1.442695, %v1134_v4 }
 0xa4f   :  { %v2983_v16 = vmul.f32 -1.442695, %v1135_v11 }
 0xa50   :  { %3388 = vpow2.f32 %v2982_v29  ;;  %v1182_v1 = vpop.permute.xlu0 %1181 }
 0xa51   :  { %1227 = vrot.lane.b32.xlu1 %v1225_v63, %s3562_s1  ;;  %3390 = vpow2.f32 %v2983_v16 }
 0xa52   :  { %3258 = vset.pattern.permute.xlu0 %v3565_v50 }
 0xa55   :  { %1205 = vperm.xlu1 %3257, %v3839_v58   ;;  %v1106_v58 = vpop.permute.xlu1 %1105 }
 0xa56   :  { %v1110_v17 = vmul.f32 %v4101_v23, %v1106_v58 }
 0xa59   :  { %3259 = vset.pattern.permute.xlu1 %v3567_v38  ;;  %v1089_v38 = vsub.f32 1.0, %v4103_v24 }
 0xa5a   :  { %v3389_v20 = vpop.eup %3388 }
 0xa5b   :  { %v1142_v21 = vadd.f32 1.0, %v3389_v20  ;;  %v3391_v32 = vpop.eup %3390 }
 0xa5c   :  { %v1143_v50 = vadd.f32 1.0, %v3391_v32 }
 0xa5d   :  { %3392 = vrcp.f32 %v1142_v21 }
 0xa5e   :  { %3394 = vrcp.f32 %v1143_v50 }
 0xa67   :  { %v3393_v45 = vpop.eup %3392 }
 0xa68   :  { %v1168_v11 = vsub.f32 1.0, %v3393_v45  ;;  %v3395_v29 = vpop.eup %3394  ;;  %v1187_v50 = vmul.f32 %v3393_v45, %v1182_v1 }
 0xab3   :  { %v1094_v46 = vpop.permute.xlu1 %1093 }
 0xab4   :  { %v1099_v27 = vmul.f32 %v1094_v46, %v1089_v38  ;;  %v1169_v38 = vsub.f32 1.0, %v3395_v29 }
 0xab6   :  { %v1111_v48 = vadd.f32 %v1109_v22, %v1099_v27 }
 0xab7   :  { %v1096_v53 = vpop.permute.xlu1 %1095  ;;  %v1173_v63 = vpop.permute.xlu0 %1172 }
 0xab8   :  { %v1100_v47 = vmul.f32 %v1096_v53, %v1090_v3  ;;  %v1197_v20 = vrot.slane %v1111_v48, 3  ;;  %v1178_v32 = vmul.f32 %v1173_v63, %v1168_v11 }
 0xaba   :  { %v1112_v4 = vadd.f32 %v1110_v17, %v1100_v47  ;;  %v1189_v46 = vadd.f32 %v1187_v50, %v1178_v32 }
 0xabb   :  { %v1175_v16 = vpop.permute.xlu1 %1174 }
 0xabc   :  { %v1198_v21 = vrot.slane %v1112_v4, 2  ;;  %v1179_v33 = vmul.f32 %v1175_v16, %v1169_v38  ;;  %v1216_v27 = vrot.slane %v1189_v46, 4 }
 0xabe   :  { %v1199_v24 = vsel %vm385_vm1, %v1198_v21, %v1197_v20 }
 0xabf   :  { %v1184_v12 = vpop.permute.xlu1 %1183  ;;  %1200 = vrot.lane.b32.xlu1 %v1199_v24, %s3562_s1 }
 0xac0   :  { %v1188_v23 = vmul.f32 %v3395_v29, %v1184_v12 }
 0xac2   :  { %v1190_v58 = vadd.f32 %v1188_v23, %v1179_v33 }
 0xac3   :  { %v1228_v45 = vpop.permute.xlu1 %1227 }
 0xac4   :  { %v1217_v22 = vrot.slane %v1190_v58, 3 }
 0xac6   :  { %v4152_v3 = vsel %vm385_vm1, %v1217_v22, %v1216_v27 }
 0xac8   :  { %v4154_v53 = vpop.permute.xlu0 %1211 }
 0xac9   :  { %v1220_v1 = vmul.f32 %v4152_v3, %v4154_v53 }
 0xacb   :  { %v1230_v17 = vadd.f32 %v1228_v45, %v1220_v1 }
 0xacd   :  { %1232 = vrot.lane.b32.xlu0 %v1230_v17, %s3563_s20  ;;  %v4163_v63 = vpop.permute.xlu0 %1192 }
 0xad4   :  { %v4159_v48 = vpop.permute.xlu1 %1205 }
 0xad5   :  { %v1208_v4 = vmul.f32 %v4159_v48, %v4069_v51 }
 0xb31   :  { %v4161_v47 = vpop.permute.xlu1 %1200 }
 0xb32   :  { %v1203_v33 = vmul.f32 %v4161_v47, %v4163_v63 }
 0xb34   :  { %v1209_v11 = vadd.f32 %v1208_v4, %v1203_v33 }
 0xb3f   :  { %v1233_v29 = vpop.permute.xlu0 %1232 }
 0xb40   :  { %v4170_v16 = vsel %vm420_vm2, %v1209_v11, %v1233_v29 }
 0xb41   :  { %2984 = vmatmul.mubr.msk.f32.vlgmr.msra.gmra.mrb[4].mxu1 %vm177_vm3, %v4170_v16 }
 0xb42   :  { %3165 = vmatpush1.bf16.msra.mxu1 %v3666_v8  ;;  %1808 = vmatprep.mubr.f32.mxu1 %v3558_v7 }
 0xb43   :  { %3167 = vmatprep.subr.bf16.mxu1 %v3668_v9 }
 0xb46   :  { %3169 = vmatpush1.bf16.msra.mxu1 %v3684_v14 }
 0xb47   :  { %3171 = vmatprep.subr.bf16.mxu1 %v3696_v18 }
 0xb4a   :  { %3173 = vmatpush1.bf16.msra.mxu1 %v3714_v26 }
 0xb4b   :  { %3175 = vmatprep.subr.bf16.mxu1 %v3720_v28 }
 0xb4e   :  { %3177 = vmatpush1.bf16.msra.mxu1 %v3730_v31 }
 0xc14   :  { %v1315_v51 = vpop.f32.mrb[4].mxu1 }
 0xc15   :  { %v1316_v20 = vadd.f32 %v1315_v51, %v3773_v41  ;;  %v1317_v21 = vpop.f32.mrb[5].mxu1 }
 0xc16   :  { %v4184_v32 = vadd.f32 %v1317_v21, %v3778_v43 }
 0xc17   :  { %v1322_v50 = vrot.slane %v1316_v20, 5  ;;  %v1321_v38 = vrot.slane %v1316_v20, 4  ;;  %v1383_v46 = vrot.slane %v1316_v20, 6 }
 0xc18   :  { %v1400_v24 = vrot.slane %v4184_v32, 5  ;;  %v1401_v12 = vrot.slane %v4184_v32, 6 }
 0xc19   :  { %1341 = vrot.lane.b32.xlu0 %v1322_v50, %s3560_s6  ;;  %1339 = vrot.lane.b32.xlu1 %v1321_v38, %s3560_s6  ;;  %v1326_v23 = vadd.f32 %v1322_v50, %v3800_v54  ;;  %v1325_v58 = vadd.f32 %v1321_v38, %v3803_v57  ;;  %v1386_v27 = vadd.f32 %v1383_v46, %v3800_v54 }
 0xc1a   :  { %v1385_v1 = vadd.f32 %v1322_v50, %v3803_v57 }
 0xc1b   :  { %v2986_v22 = vmul.f32 -1.442695, %v1326_v23  ;;  %v2985_v45 = vmul.f32 -1.442695, %v1325_v58  ;;  %v2988_v17 = vmul.f32 -1.442695, %v1386_v27 }
 0xc1c   :  { %v2987_v33 = vmul.f32 -1.442695, %v1385_v1 }
 0xc1d   :  { %1420 = vrot.lane.b32.xlu0 %v1401_v12, %s3560_s6  ;;  %1418 = vrot.lane.b32.xlu1 %v1400_v24, %s3560_s6  ;;  %3396 = vpow2.f32 %v2986_v22 }
 0xc1e   :  { %3398 = vpow2.f32 %v2985_v45 }
 0xc1f   :  { %3400 = vpow2.f32 %v2988_v17 }
 0xc20   :  { %3402 = vpow2.f32 %v2987_v33 }
 0xc27   :  { %v3397_v4 = vpop.eup %3396 }
 0xc28   :  { %v3399_v11 = vpop.eup %3398  ;;  %v1334_v29 = vadd.f32 1.0, %v3397_v4 }
 0xc29   :  { %v3401_v51 = vpop.eup %3400  ;;  %v1333_v20 = vadd.f32 1.0, %v3399_v11  ;;  %v1372_v11 = vrot.slane %v4170_v16, 5 }
 0xc2a   :  { %v3403_v21 = vpop.eup %3402  ;;  %v1394_v49 = vadd.f32 1.0, %v3401_v51  ;;  %3404 = vrcp.f32 %v1334_v29  ;;  %v1371_v29 = vrot.slane %v4170_v16, 4 }
 0xc2b   :  { %v1393_v38 = vadd.f32 1.0, %v3403_v21  ;;  %3406 = vrcp.f32 %v1333_v20 }
 0xc2c   :  { %3408 = vrcp.f32 %v1394_v49 }
 0xc2d   :  { %3410 = vrcp.f32 %v1393_v38 }
 0xc34   :  { %v4200_v50 = vpop.eup %3404 }
 0xc35   :  { %v4202_v46 = vpop.eup %3406 }
 0xc36   :  { %v3409_v1 = vpop.eup %3408 }
 0xc37   :  { %v3411_v45 = vpop.eup %3410 }
 0xc8b   :  { %v1342_v23 = vpop.permute.xlu0 %1341  ;;  %v1340_v58 = vpop.permute.xlu1 %1339 }
 0xc8c   :  { %v1346_v27 = vmul.f32 %v4200_v50, %v1342_v23  ;;  %v1345_v22 = vmul.f32 %v4202_v46, %v1340_v58 }
 0xc8e   :  { %1351 = vrot.lane.b32.xlu0 %v1346_v27, %s3560_s6  ;;  %1349 = vrot.lane.b32.xlu1 %v1345_v22, %s3560_s6 }
 0xc8f   :  { %v1421_v17 = vpop.permute.xlu0 %1420  ;;  %v1419_v33 = vpop.permute.xlu1 %1418 }
 0xc90   :  { %v1425_v49 = vmul.f32 %v3409_v1, %v1421_v17  ;;  %v1424_v4 = vmul.f32 %v3411_v45, %v1419_v33 }
 0xc92   :  { %1430 = vrot.lane.b32.xlu0 %v1425_v49, %s3560_s6  ;;  %1428 = vrot.lane.b32.xlu1 %v1424_v4, %s3560_s6  ;;  %v1450_v49 = vrot.slane %v4170_v16, 6  ;;  %v1479_v4 = vmul.f32 %v4170_v16, %v4159_v48 }
 0xc96   :  { %1375 = vrot.lane.b32.xlu0 %v1372_v11, %s3563_s20  ;;  %1373 = vrot.lane.b32.xlu1 %v1371_v29, %s3563_s20  ;;  %v1405_v29 = vadd.f32 %v1401_v12, %v3831_v44  ;;  %v1359_v12 = vsub.f32 1.0, %v4202_v46 }
 0xd00   :  { %v1352_v51 = vpop.permute.xlu0 %1351  ;;  %v1350_v20 = vpop.permute.xlu1 %1349 }
 0xd01   :  { %v1356_v21 = vadd.f32 %v1352_v51, %v3800_v54  ;;  %v1355_v38 = vadd.f32 %v1350_v20, %v3803_v57  ;;  %v1404_v51 = vadd.f32 %v1400_v24, %v3828_v40  ;;  %v2990_v20 = vmul.f32 -1.442695, %v1405_v29 }
 0xd03   :  { %3412 = vtanh.f32 %v1356_v21  ;;  %v2989_v21 = vmul.f32 -1.442695, %v1404_v51 }
 0xd04   :  { %3414 = vtanh.f32 %v1355_v38  ;;  %v1431_v23 = vpop.permute.xlu0 %1430  ;;  %v1429_v58 = vpop.permute.xlu1 %1428 }
 0xd05   :  { %v1435_v27 = vadd.f32 %v1431_v23, %v3831_v44  ;;  %v1434_v22 = vadd.f32 %v1429_v58, %v3828_v40 }
 0xd07   :  { %3416 = vtanh.f32 %v1435_v27 }
 0xd08   :  { %3418 = vtanh.f32 %v1434_v22  ;;  %v1376_v48 = vpop.permute.xlu0 %1375  ;;  %v1374_v27 = vpop.permute.xlu1 %1373  ;;  %v1360_v22 = vsub.f32 1.0, %v4200_v50 }
 0xd09   :  { %3420 = vpow2.f32 %v2990_v20  ;;  %v1380_v32 = vmul.f32 %v4200_v50, %v1376_v48 }
 0xd0a   :  { %3422 = vpow2.f32 %v2989_v21 }
 0xd0d   :  { %v3413_v1 = vpop.eup %3412 }
 0xd0e   :  { %v3415_v45 = vpop.eup %3414  ;;  %1365 = vrot.lane.b32.xlu0 %v3413_v1, %s3562_s1 }
 0xd0f   :  { %1363 = vrot.lane.b32.xlu1 %v3415_v45, %s3562_s1 }
 0xd11   :  { %v3417_v17 = vpop.eup %3416 }
 0xd12   :  { %v3419_v33 = vpop.eup %3418  ;;  %1444 = vrot.lane.b32.xlu0 %v3417_v17, %s3562_s1  ;;  %v1379_v17 = vmul.f32 %v4202_v46, %v1374_v27 }
 0xd13   :  { %1442 = vrot.lane.b32.xlu1 %v3419_v33, %s3562_s1  ;;  %v3421_v38 = vpop.eup %3420 }
 0xd14   :  { %v3423_v23 = vpop.eup %3422 }
 0xd15   :  { %v1412_v58 = vadd.f32 1.0, %v3423_v23 }
 0xd16   :  { %1453 = vrot.lane.b32.xlu0 %v1450_v49, %s3562_s1 }
 0xd17   :  { %1451 = vrot.lane.b32.xlu1 %v1372_v11, %s3562_s1  ;;  %v1413_v11 = vadd.f32 1.0, %v3421_v38 }
 0xd19   :  { %3424 = vrcp.f32 %v1413_v11 }
 0xd1a   :  { %3426 = vrcp.f32 %v1412_v58 }
 0xd1b   :  { %1481 = vrot.lane.b32.xlu1 %v1479_v4, %s3562_s1 }
 0xd23   :  { %v3425_v4 = vpop.eup %3424 }
 0xd24   :  { %v3427_v20 = vpop.eup %3426  ;;  %v1439_v11 = vsub.f32 1.0, %v3425_v4 }
 0xd25   :  { %v1438_v58 = vsub.f32 1.0, %v3427_v20 }
 0xd80   :  { %v1366_v1 = vpop.permute.xlu0 %1365 }
 0xd81   :  { %v1370_v24 = vmul.f32 %v1366_v1, %v1360_v22  ;;  %v1364_v45 = vpop.permute.xlu1 %1363 }
 0xd82   :  { %v1369_v33 = vmul.f32 %v1364_v45, %v1359_v12 }
 0xd83   :  { %v1382_v49 = vadd.f32 %v1380_v32, %v1370_v24 }
 0xd84   :  { %v1381_v29 = vadd.f32 %v1379_v17, %v1369_v33  ;;  %v1445_v51 = vpop.permute.xlu0 %1444 }
 0xd85   :  { %v1464_v21 = vrot.slane %v1382_v49, 3  ;;  %v1443_v38 = vpop.permute.xlu1 %1442  ;;  %v1449_v2 = vmul.f32 %v1445_v51, %v1439_v11 }
 0xd86   :  { %v1463_v23 = vrot.slane %v1381_v29, 4  ;;  %v1448_v46 = vmul.f32 %v1443_v38, %v1438_v58 }
 0xd88   :  { %v1454_v5 = vpop.permute.xlu0 %1453  ;;  %v1465_v15 = vsel %vm385_vm1, %v1464_v21, %v1463_v23 }
 0xd89   :  { %v1458_v50 = vmul.f32 %v3425_v4, %v1454_v5  ;;  %1466 = vrot.lane.b32.xlu0 %v1465_v15, %s3562_s1  ;;  %v1452_v48 = vpop.permute.xlu1 %1451 }
 0xd8a   :  { %v1457_v27 = vmul.f32 %v3427_v20, %v1452_v48 }
 0xd8b   :  { %v1460_v22 = vadd.f32 %v1458_v50, %v1449_v2  ;;  %v1470_v2 = vmul.f32 %v4170_v16, %v4128_v55 }
 0xd8c   :  { %v1459_v1 = vadd.f32 %v1457_v27, %v1448_v46 }
 0xd8d   :  { %v1475_v12 = vrot.slane %v1460_v22, 2  ;;  %v1482_v17 = vpop.permute.xlu1 %1481 }
 0xd8e   :  { %v1474_v32 = vrot.slane %v1459_v1, 3 }
 0xd90   :  { %v4241_v24 = vsel %vm385_vm1, %v1475_v12, %v1474_v32 }
 0xd91   :  { %v1478_v45 = vmul.f32 %v4241_v24, %v4163_v63 }
 0xd93   :  { %v1484_v33 = vadd.f32 %v1482_v17, %v1478_v45 }
 0xd95   :  { %1486 = vrot.lane.b32.xlu1 %v1484_v33, %s3563_s20 }
 0xdfb   :  { %v4246_v5 = vpop.permute.xlu0 %1466 }
 0xdfc   :  { %v1469_v15 = vmul.f32 %v4246_v5, %v4154_v53 }
 0xdfe   :  { %v1471_v49 = vadd.f32 %v1470_v2, %v1469_v15 }
 0xe07   :  { %v1487_v4 = vpop.permute.xlu1 %1486 }
 0xe08   :  { %v4253_v29 = vsel %vm420_vm2, %v1471_v49, %v1487_v4 }
 0xe09   :  { %2991 = vmatmul.mubr.msk.f32.vlgmr.msra.gmra.mrb[8].mxu0 %vm177_vm3, %v4253_v29 }
 0xe0a   :  { %3181 = vmatpush1.bf16.msra.mxu0 %v3666_v8  ;;  %2053 = vmatprep.mubr.f32.mxu0 %v3558_v7 }
 0xe0b   :  { %3183 = vmatprep.subr.bf16.mxu0 %v3668_v9 }
 0xe0e   :  { %3185 = vmatpush1.bf16.msra.mxu0 %v3684_v14 }
 0xe0f   :  { %3187 = vmatprep.subr.bf16.mxu0 %v3696_v18 }
 0xe12   :  { %3189 = vmatpush1.bf16.msra.mxu0 %v3714_v26 }
 0xe13   :  { %3191 = vmatprep.subr.bf16.mxu0 %v3720_v28 }
 0xe16   :  { %3193 = vmatpush1.bf16.msra.mxu0 %v3730_v31 }
 0xedc   :  { %v1561_v55 = vpop.f32.mrb[8].mxu0 }
 0xedd   :  { %v1562_v53 = vadd.f32 %v1561_v55, %v3773_v41  ;;  %v1563_v63 = vpop.f32.mrb[9].mxu0 }
 0xede   :  { %v4267_v8 = vadd.f32 %v1563_v63, %v3778_v43 }
 0xedf   :  { %v1568_v16 = vrot.slane %v1562_v53, 4  ;;  %v1567_v51 = vrot.slane %v1562_v53, 3  ;;  %v1629_v18 = vrot.slane %v1562_v53, 6  ;;  %v1630_v28 = vrot.slane %v1562_v53, 7 }
 0xee0   :  { %v1648_v9 = vrot.slane %v4267_v8, 6  ;;  %v1649_v14 = vrot.slane %v4267_v8, 7 }
 0xee1   :  { %1587 = vrot.lane.b32.xlu1 %v1568_v16, %s3560_s6  ;;  %1585 = vrot.lane.b32.xlu0 %v1567_v51, %s3560_s6  ;;  %v1572_v26 = vadd.f32 %v1568_v16, %v3800_v54  ;;  %v1571_v31 = vadd.f32 %v1567_v51, %v3803_v57  ;;  %v1633_v20 = vadd.f32 %v1629_v18, %v3803_v57  ;;  %v1618_v18 = vrot.slane %v4253_v29, 4 }
 0xee2   :  { %v1634_v38 = vadd.f32 %v1630_v28, %v3800_v54 }
 0xee3   :  { %v2993_v21 = vmul.f32 -1.442695, %v1572_v26  ;;  %v2992_v23 = vmul.f32 -1.442695, %v1571_v31  ;;  %v2994_v11 = vmul.f32 -1.442695, %v1633_v20 }
 0xee4   :  { %v2995_v58 = vmul.f32 -1.442695, %v1634_v38  ;;  %v1617_v26 = vrot.slane %v4253_v29, 3 }
 0xee5   :  { %1668 = vrot.lane.b32.xlu1 %v1649_v14, %s3560_s6  ;;  %1666 = vrot.lane.b32.xlu0 %v1648_v9, %s3560_s6  ;;  %3428 = vpow2.f32 %v2993_v21 }
 0xee6   :  { %3430 = vpow2.f32 %v2992_v23 }
 0xee7   :  { %3432 = vpow2.f32 %v2994_v11 }
 0xee8   :  { %3434 = vpow2.f32 %v2995_v58 }
 0xeef   :  { %v3429_v50 = vpop.eup %3428 }
 0xef0   :  { %v3431_v48 = vpop.eup %3430  ;;  %v1580_v46 = vadd.f32 1.0, %v3429_v50 }
 0xef1   :  { %v3433_v27 = vpop.eup %3432  ;;  %v1579_v22 = vadd.f32 1.0, %v3431_v48 }
 0xef2   :  { %v3435_v1 = vpop.eup %3434  ;;  %3436 = vrcp.f32 %v1580_v46  ;;  %v1641_v12 = vadd.f32 1.0, %v3433_v27 }
 0xef3   :  { %3438 = vrcp.f32 %v1579_v22  ;;  %v1642_v32 = vadd.f32 1.0, %v3435_v1  ;;  %v1699_v22 = vrot.slane %v4253_v29, 7  ;;  %v1698_v1 = vrot.slane %v4253_v29, 6 }
 0xef4   :  { %3440 = vrcp.f32 %v1641_v12  ;;  %v1728_v12 = vmul.f32 %v4253_v29, %v4062_v59 }
 0xef5   :  { %3442 = vrcp.f32 %v1642_v32  ;;  %v1653_v32 = vadd.f32 %v1649_v14, %v3831_v44 }
 0xefc   :  { %v4283_v45 = vpop.eup %3436 }
 0xefd   :  { %v4285_v17 = vpop.eup %3438 }
 0xefe   :  { %v3441_v4 = vpop.eup %3440  ;;  %v1605_v14 = vsub.f32 1.0, %v4285_v17 }
 0xeff   :  { %v3443_v55 = vpop.eup %3442 }
 0xf53   :  { %v1588_v33 = vpop.permute.xlu1 %1587  ;;  %v1586_v15 = vpop.permute.xlu0 %1585 }
 0xf54   :  { %v1592_v2 = vmul.f32 %v4283_v45, %v1588_v33  ;;  %v1591_v49 = vmul.f32 %v4285_v17, %v1586_v15  ;;  %v1652_v33 = vadd.f32 %v1648_v9, %v3828_v40  ;;  %v2997_v15 = vmul.f32 -1.442695, %v1653_v32 }
 0xf56   :  { %1597 = vrot.lane.b32.xlu1 %v1592_v2, %s3560_s6  ;;  %1595 = vrot.lane.b32.xlu0 %v1591_v49, %s3560_s6  ;;  %v2996_v2 = vmul.f32 -1.442695, %v1652_v33 }
 0xf57   :  { %v1669_v53 = vpop.permute.xlu1 %1668  ;;  %v1667_v63 = vpop.permute.xlu0 %1666 }
 0xf58   :  { %v1673_v16 = vmul.f32 %v3443_v55, %v1669_v53  ;;  %v1672_v51 = vmul.f32 %v3441_v4, %v1667_v63 }
 0xf5a   :  { %1678 = vrot.lane.b32.xlu1 %v1673_v16, %s3560_s6  ;;  %1676 = vrot.lane.b32.xlu0 %v1672_v51, %s3560_s6  ;;  %v1606_v16 = vsub.f32 1.0, %v4283_v45 }
 0xf5e   :  { %1621 = vrot.lane.b32.xlu1 %v1618_v18, %s3563_s20  ;;  %1619 = vrot.lane.b32.xlu0 %v1617_v26, %s3563_s20 }
 0xfc8   :  { %v1598_v28 = vpop.permute.xlu1 %1597  ;;  %v1596_v31 = vpop.permute.xlu0 %1595 }
 0xfc9   :  { %v1602_v20 = vadd.f32 %v1598_v28, %v3800_v54  ;;  %v1601_v21 = vadd.f32 %v1596_v31, %v3803_v57 }
 0xfcb   :  { %3444 = vtanh.f32 %v1602_v20 }
 0xfcc   :  { %3446 = vtanh.f32 %v1601_v21  ;;  %v1679_v38 = vpop.permute.xlu1 %1678  ;;  %v1677_v23 = vpop.permute.xlu0 %1676 }
 0xfcd   :  { %v1683_v11 = vadd.f32 %v1679_v38, %v3831_v44  ;;  %v1682_v58 = vadd.f32 %v1677_v23, %v3828_v40 }
 0xfcf   :  { %3448 = vtanh.f32 %v1683_v11 }
 0xfd0   :  { %3450 = vtanh.f32 %v1682_v58  ;;  %v1622_v59 = vpop.permute.xlu1 %1621  ;;  %v1620_v63 = vpop.permute.xlu0 %1619 }
 0xfd1   :  { %3452 = vpow2.f32 %v2997_v15  ;;  %v1626_v8 = vmul.f32 %v4283_v45, %v1622_v59  ;;  %v1625_v26 = vmul.f32 %v4285_v17, %v1620_v63 }
 0xfd2   :  { %3454 = vpow2.f32 %v2996_v2 }
 0xfd5   :  { %v3445_v50 = vpop.eup %3444 }
 0xfd6   :  { %v3447_v48 = vpop.eup %3446  ;;  %1611 = vrot.lane.b32.xlu1 %v3445_v50, %s3562_s1 }
 0xfd7   :  { %1609 = vrot.lane.b32.xlu0 %v3447_v48, %s3562_s1 }
 0xfd9   :  { %v3449_v46 = vpop.eup %3448 }
 0xfda   :  { %v3451_v27 = vpop.eup %3450  ;;  %1692 = vrot.lane.b32.xlu1 %v3449_v46, %s3562_s1 }
 0xfdb   :  { %1690 = vrot.lane.b32.xlu0 %v3451_v27, %s3562_s1  ;;  %v3453_v49 = vpop.eup %3452 }
 0xfdc   :  { %v3455_v4 = vpop.eup %3454  ;;  %v1661_v55 = vadd.f32 1.0, %v3453_v49 }
 0xfdd   :  { %v1660_v53 = vadd.f32 1.0, %v3455_v4 }
 0xfde   :  { %1702 = vrot.lane.b32.xlu1 %v1699_v22, %s3562_s1  ;;  %3456 = vrcp.f32 %v1661_v55 }
 0xfdf   :  { %1700 = vrot.lane.b32.xlu0 %v1698_v1, %s3562_s1  ;;  %3458 = vrcp.f32 %v1660_v53 }
 0xfe3   :  { %1730 = vrot.lane.b32.xlu0 %v1728_v12, %s3562_s1 }
 0xfe8   :  { %v3457_v20 = vpop.eup %3456 }
 0xfe9   :  { %v3459_v23 = vpop.eup %3458  ;;  %v1687_v48 = vsub.f32 1.0, %v3457_v20 }
 0xfea   :  { %v1686_v46 = vsub.f32 1.0, %v3459_v23 }
0x1048   :  { %v1612_v51 = vpop.permute.xlu1 %1611 }
0x1049   :  { %v1616_v9 = vmul.f32 %v1612_v51, %v1606_v16  ;;  %v1610_v18 = vpop.permute.xlu0 %1609  ;;  %v1719_v51 = vmul.f32 %v4253_v29, %v4028_v10 }
0x104a   :  { %v1615_v28 = vmul.f32 %v1610_v18, %v1605_v14 }
0x104b   :  { %v1628_v31 = vadd.f32 %v1626_v8, %v1616_v9 }
0x104c   :  { %v1627_v21 = vadd.f32 %v1625_v26, %v1615_v28  ;;  %v1693_v38 = vpop.permute.xlu1 %1692 }
0x104d   :  { %v1713_v11 = vrot.slane %v1628_v31, 4  ;;  %v1691_v58 = vpop.permute.xlu0 %1690  ;;  %v1697_v1 = vmul.f32 %v1693_v38, %v1687_v48 }
0x104e   :  { %v1712_v50 = vrot.slane %v1627_v21, 5  ;;  %v1696_v17 = vmul.f32 %v1691_v58, %v1686_v46 }
0x1050   :  { %v1703_v27 = vpop.permute.xlu1 %1702  ;;  %v1714_v22 = vsel %vm385_vm1, %v1713_v11, %v1712_v50 }
0x1051   :  { %v1707_v45 = vmul.f32 %v3457_v20, %v1703_v27  ;;  %1715 = vrot.lane.b32.xlu1 %v1714_v22, %s3562_s1  ;;  %v1701_v12 = vpop.permute.xlu0 %1700 }
0x1052   :  { %v1706_v32 = vmul.f32 %v3459_v23, %v1701_v12 }
0x1053   :  { %v1709_v33 = vadd.f32 %v1707_v45, %v1697_v1 }
0x1054   :  { %v1708_v15 = vadd.f32 %v1706_v32, %v1696_v17 }
0x1055   :  { %v1724_v2 = vrot.slane %v1709_v33, 1  ;;  %v1731_v53 = vpop.permute.xlu0 %1730 }
0x1056   :  { %v1723_v49 = vrot.slane %v1708_v15, 2 }
0x1058   :  { %v4325_v4 = vsel %vm385_vm1, %v1724_v2, %v1723_v49 }
0x1059   :  { %v1727_v55 = vmul.f32 %v4325_v4, %v4058_v37 }
0x105b   :  { %v1733_v59 = vadd.f32 %v1731_v53, %v1727_v55 }
0x105d   :  { %1735 = vrot.lane.b32.xlu0 %v1733_v59, %s3563_s20 }
0x10c3   :  { %v4330_v63 = vpop.permute.xlu1 %1715 }
0x10c4   :  { %v1718_v16 = vmul.f32 %v4330_v63, %v4053_v19 }
0x10c6   :  { %v1720_v14 = vadd.f32 %v1719_v51, %v1718_v16 }
0x10cf   :  { %v1736_v8 = vpop.permute.xlu0 %1735 }
0x10d0   :  { %v4337_v9 = vsel %vm420_vm2, %v1720_v14, %v1736_v8 }
0x10d1   :  { %2998 = vmatmul.mubr.msk.f32.vlgmr.msra.gmra.mrb[6].mxu1 %vm177_vm3, %v4337_v9 }
0x10d2   :  { %2628 = vmatprep.mubr.f32.mxu1 %v3558_v7 }
0x11a4   :  { %v1810_v37 = vpop.f32.mrb[6].mxu1 }
0x11a5   :  { %v1811_v18 = vadd.f32 %v1810_v37, %v3773_v41  ;;  %v1812_v26 = vpop.f32.mrb[7].mxu1 }
0x11a6   :  { %v4344_v28 = vadd.f32 %v1812_v26, %v3778_v43  ;;  %v1866_v26 = vrot.slane %v4337_v9, 2 }
0x11a7   :  { %v1817_v19 = vrot.slane %v1811_v18, 3  ;;  %v1816_v31 = vrot.slane %v1811_v18, 2  ;;  %v1878_v20 = vrot.slane %v1811_v18, 7  ;;  %v1882_v38 = vadd.f32 %v1811_v18, %v3800_v54 }
0x11a8   :  { %v1896_v10 = vrot.slane %v4344_v28, 7  ;;  %v1867_v18 = vrot.slane %v4337_v9, 3 }
0x11a9   :  { %1836 = vrot.lane.b32.xlu0 %v1817_v19, %s3560_s6  ;;  %1834 = vrot.lane.b32.xlu1 %v1816_v31, %s3560_s6  ;;  %v1821_v29 = vadd.f32 %v1817_v19, %v3800_v54  ;;  %v1820_v21 = vadd.f32 %v1816_v31, %v3803_v57  ;;  %v1881_v11 = vadd.f32 %v1878_v20, %v3803_v57  ;;  %v3002_v50 = vmul.f32 -1.442695, %v1882_v38 }
0x11aa   :  { %v1945_v19 = vrot.slane %v4337_v9, 7 }
0x11ab   :  { %v3000_v23 = vmul.f32 -1.442695, %v1821_v29  ;;  %v2999_v58 = vmul.f32 -1.442695, %v1820_v21  ;;  %v3001_v48 = vmul.f32 -1.442695, %v1881_v11 }
0x11ad   :  { %1915 = vrot.lane.b32.xlu0 %v4344_v28, %s3560_s6  ;;  %1913 = vrot.lane.b32.xlu1 %v1896_v10, %s3560_s6  ;;  %3460 = vpow2.f32 %v3000_v23 }
0x11ae   :  { %3462 = vpow2.f32 %v2999_v58 }
0x11af   :  { %3464 = vpow2.f32 %v3002_v50 }
0x11b0   :  { %3466 = vpow2.f32 %v3001_v48 }
0x11b7   :  { %v3461_v46 = vpop.eup %3460 }
0x11b8   :  { %v3463_v27 = vpop.eup %3462  ;;  %v1829_v22 = vadd.f32 1.0, %v3461_v46 }
0x11b9   :  { %v3465_v1 = vpop.eup %3464  ;;  %v1828_v45 = vadd.f32 1.0, %v3463_v27 }
0x11ba   :  { %v3467_v12 = vpop.eup %3466  ;;  %3468 = vrcp.f32 %v1829_v22  ;;  %v1890_v17 = vadd.f32 1.0, %v3465_v1  ;;  %v1973_v22 = vmul.f32 %v4337_v9, %v3957_v60  ;;  %v1899_v1 = vadd.f32 %v1896_v10, %v3828_v40 }
0x11bb   :  { %3470 = vrcp.f32 %v1828_v45  ;;  %v1889_v32 = vadd.f32 1.0, %v3467_v12  ;;  %v1900_v45 = vadd.f32 %v4344_v28, %v3831_v44 }
0x11bc   :  { %3472 = vrcp.f32 %v1890_v17  ;;  %v3003_v12 = vmul.f32 -1.442695, %v1899_v1 }
0x11bd   :  { %3474 = vrcp.f32 %v1889_v32  ;;  %v3004_v17 = vmul.f32 -1.442695, %v1900_v45 }
0x11c4   :  { %v4358_v33 = vpop.eup %3468 }
0x11c5   :  { %v4360_v15 = vpop.eup %3470 }
0x11c6   :  { %v3473_v59 = vpop.eup %3472  ;;  %v1854_v10 = vsub.f32 1.0, %v4360_v15 }
0x11c7   :  { %v3475_v16 = vpop.eup %3474 }
0x121b   :  { %v1837_v2 = vpop.permute.xlu0 %1836  ;;  %v1835_v49 = vpop.permute.xlu1 %1834 }
0x121c   :  { %v1841_v55 = vmul.f32 %v4358_v33, %v1837_v2  ;;  %v1840_v53 = vmul.f32 %v4360_v15, %v1835_v49 }
0x121e   :  { %1846 = vrot.lane.b32.xlu0 %v1841_v55, %s3560_s6  ;;  %1844 = vrot.lane.b32.xlu1 %v1840_v53, %s3560_s6 }
0x121f   :  { %v1916_v51 = vpop.permute.xlu0 %1915  ;;  %v1914_v14 = vpop.permute.xlu1 %1913 }
0x1220   :  { %v1920_v8 = vmul.f32 %v3473_v59, %v1916_v51  ;;  %v1919_v37 = vmul.f32 %v3475_v16, %v1914_v14  ;;  %v1855_v16 = vsub.f32 1.0, %v4358_v33 }
0x1222   :  { %1925 = vrot.lane.b32.xlu0 %v1920_v8, %s3560_s6  ;;  %1923 = vrot.lane.b32.xlu1 %v1919_v37, %s3560_s6 }
0x1226   :  { %1870 = vrot.lane.b32.xlu0 %v1867_v18, %s3563_s20  ;;  %1868 = vrot.lane.b32.xlu1 %v1866_v26, %s3563_s20 }
0x122a   :  { %1946 = vrot.lane.b32.xlu0 %v1945_v19, %s3562_s1 }
0x1290   :  { %v1847_v31 = vpop.permute.xlu0 %1846  ;;  %v1845_v29 = vpop.permute.xlu1 %1844 }
0x1291   :  { %v1851_v20 = vadd.f32 %v1847_v31, %v3800_v54  ;;  %v1850_v21 = vadd.f32 %v1845_v29, %v3803_v57 }
0x1293   :  { %3476 = vtanh.f32 %v1851_v20 }
0x1294   :  { %3478 = vtanh.f32 %v1850_v21  ;;  %v1924_v38 = vpop.permute.xlu1 %1923  ;;  %v1926_v23 = vpop.permute.xlu0 %1925 }
0x1295   :  { %v1929_v11 = vadd.f32 %v1924_v38, %v3828_v40  ;;  %v1930_v58 = vadd.f32 %v1926_v23, %v3831_v44 }
0x1297   :  { %3480 = vtanh.f32 %v1929_v11 }
0x1298   :  { %3482 = vtanh.f32 %v1930_v58  ;;  %v1871_v55 = vpop.permute.xlu0 %1870  ;;  %v1869_v59 = vpop.permute.xlu1 %1868 }
0x1299   :  { %3484 = vpow2.f32 %v3003_v12  ;;  %v1875_v28 = vmul.f32 %v4358_v33, %v1871_v55  ;;  %v1874_v18 = vmul.f32 %v4360_v15, %v1869_v59 }
0x129a   :  { %3486 = vpow2.f32 %v3004_v17 }
0x129c   :  { %v1947_v60 = vpop.permute.xlu0 %1946 }
0x129d   :  { %v3477_v50 = vpop.eup %3476 }
0x129e   :  { %v3479_v48 = vpop.eup %3478  ;;  %1860 = vrot.lane.b32.xlu0 %v3477_v50, %s3562_s1 }
0x129f   :  { %1858 = vrot.lane.b32.xlu1 %v3479_v48, %s3562_s1 }
0x12a1   :  { %v3481_v46 = vpop.eup %3480 }
0x12a2   :  { %1948 = vrot.lane.b32.xlu0 %v4337_v9, %s3562_s1  ;;  %v3483_v27 = vpop.eup %3482 }
0x12a3   :  { %1937 = vrot.lane.b32.xlu1 %v3481_v46, %s3562_s1  ;;  %v3485_v32 = vpop.eup %3484 }
0x12a4   :  { %v1907_v2 = vadd.f32 1.0, %v3485_v32  ;;  %v3487_v49 = vpop.eup %3486 }
0x12a5   :  { %v1908_v53 = vadd.f32 1.0, %v3487_v49 }
0x12a6   :  { %3488 = vrcp.f32 %v1907_v2 }
0x12a7   :  { %1939 = vrot.lane.b32.xlu1 %v3483_v27, %s3562_s1  ;;  %3490 = vrcp.f32 %v1908_v53  ;;  %v1965_v53 = vmul.f32 %v4337_v9, %v3929_v35 }
0x12ab   :  { %1975 = vrot.lane.b32.xlu1 %v1973_v22, %s3562_s1 }
0x12b0   :  { %v3489_v14 = vpop.eup %3488 }
0x12b1   :  { %v1933_v29 = vsub.f32 1.0, %v3489_v14  ;;  %v3491_v20 = vpop.eup %3490  ;;  %v1952_v23 = vmul.f32 %v3489_v14, %v1947_v60 }
0x12b2   :  { %v1934_v27 = vsub.f32 1.0, %v3491_v20 }
0x1310   :  { %v1861_v51 = vpop.permute.xlu0 %1860 }
0x1311   :  { %v1865_v8 = vmul.f32 %v1861_v51, %v1855_v16  ;;  %v1859_v37 = vpop.permute.xlu1 %1858 }
0x1312   :  { %v1864_v26 = vmul.f32 %v1859_v37, %v1854_v10 }
0x1313   :  { %v1877_v19 = vadd.f32 %v1875_v28, %v1865_v8 }
0x1314   :  { %v1876_v31 = vadd.f32 %v1874_v18, %v1864_v26  ;;  %v1949_v50 = vpop.permute.xlu0 %1948 }
0x1315   :  { %v1959_v21 = vrot.slane %v1877_v19, 5  ;;  %v1938_v38 = vpop.permute.xlu1 %1937  ;;  %v1953_v22 = vmul.f32 %v3491_v20, %v1949_v50 }
0x1316   :  { %v1958_v11 = vrot.slane %v1876_v31, 6  ;;  %v1943_v58 = vmul.f32 %v1938_v38, %v1933_v29 }
0x1318   :  { %v1954_v48 = vadd.f32 %v1952_v23, %v1943_v58  ;;  %v1960_v46 = vsel %vm385_vm1, %v1959_v21, %v1958_v11 }
0x1319   :  { %1961 = vrot.lane.b32.xlu0 %v1960_v46, %s3562_s1  ;;  %v1940_v33 = vpop.permute.xlu1 %1939 }
0x131a   :  { %v1944_v15 = vmul.f32 %v1940_v33, %v1934_v27  ;;  %v1969_v1 = vrot.slane %v1954_v48, 1 }
0x131c   :  { %v1955_v45 = vadd.f32 %v1953_v22, %v1944_v15 }
0x131d   :  { %v1976_v32 = vpop.permute.xlu1 %1975 }
0x131e   :  { %v4399_v12 = vsel %vm385_vm1, %v1955_v45, %v1969_v1 }
0x131f   :  { %v1972_v17 = vmul.f32 %v4399_v12, %v3959_v62 }
0x1321   :  { %v1978_v2 = vadd.f32 %v1976_v32, %v1972_v17 }
0x1323   :  { %1980 = vrot.lane.b32.xlu1 %v1978_v2, %s3563_s20 }
0x138b   :  { %v4404_v49 = vpop.permute.xlu0 %1961 }
0x138c   :  { %v1964_v55 = vmul.f32 %v4404_v49, %v3943_v0 }
0x138e   :  { %v1966_v60 = vadd.f32 %v1965_v53, %v1964_v55  ;;  %v48_v55 = vld [vmem:[%s4736_s2] sm:$0x3] }
0x1395   :  { %v1981_v59 = vpop.permute.xlu1 %1980 }
0x1396   :  { %v4411_v16 = vsel %vm420_vm2, %v1966_v60, %v1981_v59  ;;  %v4753_v60 = vmov 5   ;;  %v4754_v59 = vmov 4  }
0x1397   :  { %3005 = vmatmul.mubr.msk.f32.vlgmr.msra.gmra.mrb[10].mxu0 %vm177_vm3, %v4411_v16  ;;  %v2111_v53 = vrot.slane %v4411_v16, 1 }
0x1398   :  { %3048 = vmatprep.mubr.msk.f32.mxu0 %vm3572_vm12, %v3558_v7 }
0x146a   :  { %v2055_v62 = vpop.f32.mrb[10].mxu0 }
0x146b   :  { %v2057_v51 = vpop.f32.mrb[11].mxu0  ;;  %v2056_v10 = vadd.f32 %v2055_v62, %v3773_v41  ;;  %v4755_v62 = vmov 6  }
0x146c   :  { %v4417_v14 = vadd.f32 %v2057_v51, %v3778_v43  ;;  %v4756_v51 = vmov 7  }
0x146d   :  { %v2062_v35 = vrot.slane %v2056_v10, 2  ;;  %v2061_v9 = vrot.slane %v2056_v10, 1  ;;  %v2124_v41 = vadd.f32 %v2056_v10, %v3803_v57 }
0x146e   :  { %v2139_v0 = vrot.slane %v4417_v14, 1  ;;  %2156 = vrot.lane.b32.xlu1 %v4417_v14, %s3560_s6 }
0x146f   :  { %v2125_v43 = vadd.f32 %v2061_v9, %v3800_v54  ;;  %v2066_v28 = vadd.f32 %v2062_v35, %v3800_v54  ;;  %v3008_v8 = vmul.f32 -1.442695, %v2124_v41  ;;  %v2065_v37 = vadd.f32 %v2061_v9, %v3803_v57 }
0x1470   :  { %2158 = vrot.lane.b32.xlu0 %v2139_v0, %s3560_s6 }
0x1471   :  { %v3009_v18 = vmul.f32 -1.442695, %v2125_v43  ;;  %v3007_v26 = vmul.f32 -1.442695, %v2066_v28  ;;  %3492 = vpow2.f32 %v3008_v8  ;;  %v3006_v19 = vmul.f32 -1.442695, %v2065_v37 }
0x1472   :  { %2081 = vrot.lane.b32.xlu1 %v2062_v35, %s3560_s6 }
0x1473   :  { %3494 = vpow2.f32 %v3009_v18 }
0x1474   :  { %2079 = vrot.lane.b32.xlu0 %v2061_v9, %s3560_s6  ;;  %3496 = vpow2.f32 %v3007_v26 }
0x1475   :  { %3498 = vpow2.f32 %v3006_v19 }
0x147b   :  { %v3493_v31 = vpop.eup %3492 }
0x147c   :  { %v2132_v20 = vadd.f32 1.0, %v3493_v31 }
0x147d   :  { %v3495_v29 = vpop.eup %3494 }
0x147e   :  { %v3497_v21 = vpop.eup %3496  ;;  %v2133_v38 = vadd.f32 1.0, %v3495_v29  ;;  %3500 = vrcp.f32 %v2132_v20 }
0x147f   :  { %v3499_v23 = vpop.eup %3498  ;;  %v2074_v11 = vadd.f32 1.0, %v3497_v21 }
0x1480   :  { %v2073_v58 = vadd.f32 1.0, %v3499_v23  ;;  %3502 = vrcp.f32 %v2133_v38  ;;  %v2112_v23 = vrot.slane %v4411_v16, 2 }
0x1481   :  { %3504 = vrcp.f32 %v2074_v11 }
0x1482   :  { %3506 = vrcp.f32 %v2073_v58 }
0x1488   :  { %v3501_v50 = vpop.eup %3500 }
0x148a   :  { %v3503_v27 = vpop.eup %3502 }
0x148b   :  { %v4432_v15 = vpop.eup %3504 }
0x148c   :  { %v4436_v17 = vpop.eup %3506 }
0x14e0   :  { %v2157_v48 = vpop.permute.xlu1 %2156 }
0x14e1   :  { %v2162_v46 = vmul.f32 %v3501_v50, %v2157_v48 }
0x14e2   :  { %v2159_v33 = vpop.permute.xlu0 %2158 }
0x14e3   :  { %v2163_v22 = vmul.f32 %v3503_v27, %v2159_v33  ;;  %2166 = vrot.lane.b32.xlu1 %v2162_v46, %s3560_s6  ;;  %v2531_v27 = vld [vmem:[%s4741_s7 + $0x8] sm:$0xff] }
0x14e4   :  { %v2082_v1 = vpop.permute.xlu1 %2081 }
0x14e5   :  { %v2086_v45 = vmul.f32 %v4432_v15, %v2082_v1  ;;  %2168 = vrot.lane.b32.xlu0 %v2163_v22, %s3560_s6  ;;  %v2142_v22 = vadd.f32 %v4417_v14, %v3828_v40 }
0x14e6   :  { %v2080_v32 = vpop.permute.xlu0 %2079 }
0x14e7   :  { %v2085_v2 = vmul.f32 %v4436_v17, %v2080_v32  ;;  %2091 = vrot.lane.b32.xlu1 %v2086_v45, %s3560_s6  ;;  %v3010_v1 = vmul.f32 -1.442695, %v2142_v22 }
0x14e9   :  { %2089 = vrot.lane.b32.xlu0 %v2085_v2, %s3560_s6 }
0x14eb   :  { %967 = vperm.xlu1 %3259, %v48_v55  }
0x14ed   :  { %694 = vperm.xlu0 %3258, %v48_v55  }
0x14ef   :  { %3260 = vset.pattern.permute.xlu1 %v3561_v30 }
0x14f0   :  { %424 = vperm.xlu1 %3260, %v48_v55  }
0x14f1   :  { %3261 = vset.pattern.permute.xlu0 %v3569_v6  ;;  %v2143_v6 = vadd.f32 %v2139_v0, %v3831_v44 }
0x14f2   :  { %1237 = vperm.xlu0 %3261, %v48_v55  }
0x14f3   :  { %v3011_v10 = vmul.f32 -1.442695, %v2143_v6 }
0x14f4   :  { %2190 = vrot.lane.b32.xlu1 %v2111_v53, %s3562_s1 }
0x14f5   :  { %3263 = vset.pattern.permute.xlu1 %v4753_v60  ;;  %3508 = vpow2.f32 %v3011_v10 }
0x14f6   :  { %3262 = vset.pattern.permute.xlu0 %v4754_v59 }
0x14f7   :  { %1242 = vperm.xlu0 %3262, %v48_v55  }
0x14f8   :  { %972 = vperm.xlu1 %3263, %v48_v55  }
0x14fb   :  { %2188 = vrot.lane.b32.xlu0 %v4411_v16, %s3562_s1  ;;  %v2533_v16 = vld [vmem:[%s4741_s7 + $0x18] sm:$0xff] }
0x14fc   :  { %3264 = vset.pattern.permute.xlu1 %v4755_v62  ;;  %3265 = vset.pattern.permute.xlu0 %v4756_v51  ;;  %v3194_v33 = vpack.c.bf16 %v2533_v16, %v2531_v27  ;;  %v2530_v62 = vld [vmem:[%s4741_s7] sm:$0xff]  ;;  %v2099_v51 = vsub.f32 1.0, %v4436_v17 }
0x14fd   :  { %699 = vperm.xlu1 %3264, %v48_v55  }
0x14fe   :  { %3195 = vmatprep.subr.bf16.mxu1 %v3194_v33 }
0x14ff   :  { %429 = vperm.xlu0 %3265, %v48_v55   ;;  %v3509_v18 = vpop.eup %3508 }
0x1500   :  { %v2151_v0 = vadd.f32 1.0, %v3509_v18 }
0x1501   :  { %3266 = vset.pattern.permute.xlu1 %v3561_v30 }
0x1503   :  { %2113 = vrot.lane.b32.xlu0 %v2111_v53, %s3563_s20 }
0x1504   :  { %3267 = vset.pattern.permute.xlu0 %v3561_v30 }
0x1555   :  { %v2167_v35 = vpop.permute.xlu1 %2166 }
0x1556   :  { %v2172_v9 = vadd.f32 %v2167_v35, %v3828_v40  ;;  %v2532_v40 = vld [vmem:[%s4741_s7 + $0x10] sm:$0xff] }
0x1557   :  { %v2169_v41 = vpop.permute.xlu0 %2168  ;;  %v3196_v6 = vpack.c.bf16 %v2532_v40, %v2530_v62 }
0x1558   :  { %3510 = vtanh.f32 %v2172_v9  ;;  %v2173_v26 = vadd.f32 %v2169_v41, %v3831_v44 }
0x1559   :  { %v2092_v43 = vpop.permute.xlu1 %2091  ;;  %3197 = vmatpush1.bf16.msra.mxu1 %v3196_v6  ;;  %v3570_v6 = vmov 1966171168  }
0x155a   :  { %v2096_v37 = vadd.f32 %v2092_v43, %v3800_v54 }
0x155b   :  { %v2090_v28 = vpop.permute.xlu0 %2089 }
0x155c   :  { %v2095_v8 = vadd.f32 %v2090_v28, %v3803_v57  ;;  %v2535_v28 = vld [vmem:[%s4741_s7 + $0x28] sm:$0xff] }
0x155e   :  { %3512 = vtanh.f32 %v2095_v8  ;;  %v2537_v8 = vld [vmem:[%s4741_s7 + $0x38] sm:$0xff] }
0x155f   :  { %3514 = vtanh.f32 %v2096_v37  ;;  %v3198_v18 = vpack.c.bf16 %v2537_v8, %v2535_v28 }
0x1560   :  { %3516 = vtanh.f32 %v2173_v26  ;;  %v2536_v26 = vld [vmem:[%s4741_s7 + $0x30] sm:$0xff] }
0x1561   :  { %3518 = vrcp.f32 %v2151_v0  ;;  %3199 = vmatprep.subr.bf16.mxu1 %v3198_v18 }
0x1562   :  { %v3511_v30 = vpop.eup %3510  ;;  %3520 = vpow2.f32 %v3010_v1 }
0x1563   :  { %2180 = vrot.lane.b32.xlu1 %v3511_v30, %s3562_s1  ;;  %v2534_v30 = vld [vmem:[%s4741_s7 + $0x20] sm:$0xff] }
0x1568   :  { %v3513_v19 = vpop.eup %3512 }
0x1569   :  { %2103 = vrot.lane.b32.xlu1 %v3513_v19, %s3562_s1  ;;  %v3515_v29 = vpop.eup %3514 }
0x156a   :  { %v4466_v31 = vpop.permute.xlu1 %967  ;;  %v3517_v20 = vpop.eup %3516 }
0x156b   :  { %v3519_v38 = vpop.eup %3518 }
0x156c   :  { %v4468_v57 = vpop.permute.xlu0 %694  ;;  %v3521_v45 = vpop.eup %3520  ;;  %v2177_v35 = vsub.f32 1.0, %v3519_v38 }
0x156d   :  { %v1985_v54 = vmul.f32 %v4399_v12, %v4468_v57  ;;  %2105 = vrot.lane.b32.xlu1 %v3515_v29, %s3562_s1  ;;  %v1740_v12 = vmul.f32 %v4325_v4, %v4466_v31  ;;  %v2150_v32 = vadd.f32 1.0, %v3521_v45  ;;  %v3200_v29 = vpack.c.bf16 %v2536_v26, %v2534_v30 }
0x156f   :  { %v4473_v44 = vpop.permute.xlu1 %424  ;;  %2219 = vrot.lane.b32.xlu0 %v1985_v54, %s3563_s20  ;;  %3522 = vrcp.f32 %v2150_v32  ;;  %v2100_v54 = vsub.f32 1.0, %v4432_v15  ;;  %3201 = vmatpush1.bf16.msra.mxu1 %v3200_v29  ;;  %v2545_v32 = vld [vmem:[%s4741_s7 + $0x78] sm:$0xff] }
0x1571   :  { %2182 = vrot.lane.b32.xlu1 %v3517_v20, %s3562_s1  ;;  %v4477_v21 = vpop.permute.xlu0 %1237 }
0x1572   :  { %v1491_v4 = vmul.f32 %v4241_v24, %v4477_v21  ;;  %v1240_v26 = vmul.f32 %v4477_v21, %v4161_v47 }
0x1573   :  { %v2191_v11 = vpop.permute.xlu1 %2190 }
0x1574   :  { %v2195_v58 = vmul.f32 %v3519_v38, %v2191_v11 }
0x1575   :  { %2115 = vrot.lane.b32.xlu1 %v2112_v23, %s3563_s20 }
0x1576   :  { %v4481_v50 = vpop.permute.xlu0 %1242 }
0x1577   :  { %v1245_v48 = vmul.f32 %v4481_v50, %v4152_v3  ;;  %v4487_v46 = vpop.permute.xlu1 %972 }
0x1578   :  { %v975_v3 = vmul.f32 %v4487_v46, %v4051_v13 }
0x1579   :  { %2224 = vrot.lane.b32.xlu1 %v1740_v12, %s3563_s20  ;;  %2234 = vrot.lane.b32.xlu0 %v1245_v48, %s3563_s20  ;;  %v3523_v13 = vpop.eup %3522  ;;  %v2539_v12 = vld [vmem:[%s4741_s7 + $0x48] sm:$0xff]  ;;  %v2541_v48 = vld [vmem:[%s4741_s7 + $0x58] sm:$0xff] }
0x157a   :  { %v2189_v55 = vpop.permute.xlu0 %2188  ;;  %v2176_v14 = vsub.f32 1.0, %v3523_v13  ;;  %v3202_v33 = vpack.c.bf16 %v2541_v48, %v2539_v12 }
0x157b   :  { %v2194_v0 = vmul.f32 %v3523_v13, %v2189_v55  ;;  %v2542_v13 = vld [vmem:[%s4741_s7 + $0x60] sm:$0xff] }
0x157c   :  { %v4505_v2 = vpop.permute.xlu1 %699  ;;  %3203 = vmatprep.subr.bf16.mxu1 %v3202_v33 }
0x157d   :  { %2229 = vrot.lane.b32.xlu1 %v1491_v4, %s3563_s20  ;;  %2239 = vrot.lane.b32.xlu0 %v975_v3, %s3563_s20  ;;  %v2540_v4 = vld [vmem:[%s4741_s7 + $0x50] sm:$0xff] }
0x157e   :  { %v4507_v60 = vpop.permute.xlu0 %429 }
0x1582   :  { %v2114_v10 = vpop.permute.xlu0 %2113 }
0x1583   :  { %v2119_v19 = vmul.f32 %v4436_v17, %v2114_v10  ;;  %v2255_v10 = vunpack.c.l.s4 %v3570_v6 }
0x15d5   :  { %v2181_v24 = vpop.permute.xlu1 %2180 }
0x15d6   :  { %v2186_v9 = vmul.f32 %v2181_v24, %v2176_v14  ;;  %v432_v14 = vmul.f32 %v4507_v60, %v3858_v52 }
0x15d8   :  { %v2196_v38 = vadd.f32 %v2194_v0, %v2186_v9  ;;  %v2256_v9 = vunpack.c.0.s8 %v2255_v10 }
0x15da   :  { %v4569_v52 = vsub.s32 %v2256_v9, %v3759_v34 }
0x15db   :  { %v2104_v53 = vpop.permute.xlu1 %2103 }
0x15dc   :  { %v2109_v41 = vmul.f32 %v2104_v53, %v2099_v51  ;;  %v702_v51 = vmul.f32 %v4505_v2, %v3950_v56  ;;  %v970_v56 = vmul.f32 %v4466_v31, %v4060_v42 }
0x15de   :  { %v2121_v23 = vadd.f32 %v2119_v19, %v2109_v41 }
0x15df   :  { %v2106_v59 = vpop.permute.xlu1 %2105 }
0x15e0   :  { %v2110_v27 = vmul.f32 %v2106_v59, %v2100_v54  ;;  %v2200_v55 = vrot.slane %v2121_v23, 7  ;;  %v2544_v59 = vld [vmem:[%s4741_s7 + $0x70] sm:$0xff]  ;;  %v1984_v23 = vmul.f32 %v4404_v49, %v4505_v2 }
0x15e1   :  { %v3208_v62 = vpack.c.bf16 %v2544_v59, %v2542_v13 }
0x15e3   :  { %v2183_v43 = vpop.permute.xlu1 %2182 }
0x15e4   :  { %v2187_v37 = vmul.f32 %v2183_v43, %v2177_v35  ;;  %v2220_v35 = vpop.permute.xlu0 %2219  ;;  %v697_v43 = vmul.f32 %v4468_v57, %v3961_v25  ;;  %v1739_v25 = vmul.f32 %v4330_v63, %v4487_v46  ;;  %v427_v63 = vmul.f32 %v4473_v44, %v3864_v61 }
0x15e6   :  { %v2197_v20 = vadd.f32 %v2195_v58, %v2187_v37  ;;  %v2538_v58 = vld [vmem:[%s4741_s7 + $0x40] sm:$0xff]  ;;  %v2222_v8 = vsel %vm420_vm2, %v697_v43, %v2220_v35  ;;  %v1490_v37 = vmul.f32 %v4246_v5, %v4481_v50 }
0x15e7   :  { %v2116_v11 = vpop.permute.xlu1 %2115  ;;  %v3204_v3 = vpack.c.bf16 %v2540_v4, %v2538_v58  ;;  %v2285_v18 = vrot.slane %v2222_v8, %v4569_v52 }
0x15e8   :  { %v2209_v16 = vrot.slane %v2197_v20, 7  ;;  %v2120_v17 = vmul.f32 %v4432_v15, %v2116_v11  ;;  %v2543_v15 = vld [vmem:[%s4741_s7 + $0x68] sm:$0xff] }
0x15e9   :  { %3205 = vmatpush1.bf16.msra.mxu1 %v3204_v3  ;;  %v3206_v53 = vpack.c.bf16 %v2545_v32, %v2543_v15  ;;  %v2286_v42 = vcombine.high %v2285_v18, %v2285_v18  ;;  %v2293_v54 = vrot.slane %v2285_v18, %v4569_v52 }
0x15ea   :  { %v2210_v22 = vsel %vm385_vm1, %v2209_v16, %v2196_v38  ;;  %v2122_v1 = vadd.f32 %v2120_v17, %v2110_v27 }
0x15eb   :  { %v2212_v45 = vmul.f32 %v2210_v22, %v4473_v44  ;;  %3207 = vmatprep.subr.bf16.mxu1 %v3206_v53  ;;  %v2225_v41 = vpop.permute.xlu1 %2224  ;;  %v2235_v28 = vpop.permute.xlu0 %2234  ;;  %v2300_v46 = vrot.slane %v2286_v42, %v4569_v52  ;;  %v2442_v11 = vrot.slane %v2293_v54, %v3762_v36 }
0x15ec   :  { %v2201_v24 = vrot.slane %v2122_v1, 6  ;;  %v2227_v57 = vsel %vm420_vm2, %v970_v56, %v2225_v41  ;;  %v2237_v19 = vsel %vm420_vm2, %v1490_v37, %v2235_v28 }
0x15ed   :  { %2214 = vrot.lane.b32.xlu0 %v2212_v45, %s3563_s20  ;;  %3209 = vmatpush1.bf16.msra.mxu1 %v3208_v62  ;;  %v2308_v5 = vrot.slane %v2227_v57, %v4569_v52  ;;  %v2354_v50 = vrot.slane %v2237_v19, %v4569_v52  ;;  %v2446_v44 = vrot.slane %v2300_v46, %v3762_v36 }
0x15ee   :  { %v2202_v40 = vsel %vm385_vm1, %v2201_v24, %v2200_v55 }
0x15ef   :  { %2203 = vrot.lane.b32.xlu1 %v2202_v40, %s3562_s1  ;;  %v2230_v30 = vpop.permute.xlu1 %2229  ;;  %v2240_v0 = vpop.permute.xlu0 %2239  ;;  %v2309_v20 = vcombine.high %v2308_v5, %v2308_v5  ;;  %v2355_v38 = vcombine.high %v2354_v50, %v2354_v50  ;;  %v2316_v27 = vrot.slane %v2308_v5, %v4569_v52  ;;  %v2362_v16 = vrot.slane %v2354_v50, %v4569_v52 }
0x15f0   :  { %v2232_v29 = vsel %vm420_vm2, %v1240_v26, %v2230_v30  ;;  %v2242_v31 = vsel %vm420_vm2, %v1739_v25, %v2240_v0 }
0x15f1   :  { %2249 = vrot.lane.b32.xlu0 %v432_v14, %s3563_s20  ;;  %v2331_v47 = vrot.slane %v2232_v29, %v4569_v52  ;;  %v2377_v21 = vrot.slane %v2242_v31, %v4569_v52  ;;  %v2323_v49 = vrot.slane %v2309_v20, %v4569_v52  ;;  %v2369_v2 = vrot.slane %v2355_v38, %v4569_v52 }
0x15f2   :  { %v2452_v55 = vrot.slane %v2316_v27, %v3762_v36  ;;  %v2472_v24 = vrot.slane %v2362_v16, %v3762_v36 }
0x15f3   :  { %2244 = vrot.lane.b32.xlu1 %v702_v51, %s3563_s20  ;;  %v2332_v12 = vcombine.high %v2331_v47, %v2331_v47  ;;  %v2378_v17 = vcombine.high %v2377_v21, %v2377_v21  ;;  %v2339_v33 = vrot.slane %v2331_v47, %v4569_v52  ;;  %v2385_v1 = vrot.slane %v2377_v21, %v4569_v52 }
0x15f4   :  { %v2456_v51 = vrot.slane %v2323_v49, %v3762_v36  ;;  %v2476_v6 = vrot.slane %v2369_v2, %v3762_v36 }
0x15f5   :  { %v2346_v22 = vrot.slane %v2332_v12, %v4569_v52  ;;  %v2392_v53 = vrot.slane %v2378_v17, %v4569_v52  ;;  %v2462_v59 = vrot.slane %v2339_v33, %v3762_v36  ;;  %v2482_v41 = vrot.slane %v2385_v1, %v3762_v36 }
0x15f6   :  { %v4757_v1 = vlaneseq }
0x15f7   :  { %v2466_v9 = vrot.slane %v2346_v22, %v3762_v36  ;;  %v2486_v8 = vrot.slane %v2392_v53, %v3762_v36 }
0x165f   :  { %v2215_v48 = vpop.permute.xlu0 %2214 }
0x1660   :  { %v2217_v61 = vsel %vm420_vm2, %v427_v63, %v2215_v48 }
0x1661   :  { %v2260_v58 = vrot.slane %v2217_v61, %v4569_v52  ;;  %v2204_v4 = vpop.permute.xlu1 %2203  ;;  %v2643_v61 = vsub.s32 7, %v3759_v34 }
0x1662   :  { %v2206_v3 = vmul.f32 %v2204_v4, %v4507_v60 }
0x1663   :  { %v2261_v45 = vcombine.high %v2260_v58, %v2260_v58  ;;  %v2268_v15 = vrot.slane %v2260_v58, %v4569_v52  ;;  %v2250_v32 = vpop.permute.xlu0 %2249 }
0x1664   :  { %v2252_v13 = vsel %vm420_vm2, %v2206_v3, %v2250_v32 }
0x1665   :  { %v2275_v60 = vrot.slane %v2261_v45, %v4569_v52  ;;  %v2510_v62 = vsel %vm2509_vm4, %v2268_v15, %v2442_v11  ;;  %v2423_v40 = vrot.slane %v2252_v13, %v4569_v52  ;;  %v2245_v14 = vpop.permute.xlu1 %2244  ;;  %v2670_v45 = vand.u32 127, %v4757_v1 }
0x1666   :  { %v2513_v10 = vsel %vm2512_vm5, %v2510_v62, %v2452_v55  ;;  %v2247_v35 = vsel %vm420_vm2, %v1984_v23, %v2245_v14 }
0x1667   :  { %v2511_v43 = vsel %vm2509_vm4, %v2275_v60, %v2446_v44  ;;  %v2516_v28 = vsel %vm2515_vm6, %v2513_v10, %v2462_v59  ;;  %v2400_v37 = vrot.slane %v2247_v35, %v4569_v52  ;;  %v2424_v30 = vcombine.high %v2423_v40, %v2423_v40 }
0x1668   :  { %v2514_v56 = vsel %vm2512_vm5, %v2511_v43, %v2456_v51  ;;  %v2519_v18 = vsel %vm2518_vm7, %v2516_v28, %v2472_v24  ;;  %v2431_v26 = vrot.slane %v2423_v40, %v4569_v52  ;;  %v2673_v32 = vsub.s32 %v2670_v45, %v3759_v34 }
0x1669   :  { %v2522_v0 = vsel %vm2521_vm8, %v2519_v18, %v2482_v41  ;;  %v2517_v25 = vsel %vm2515_vm6, %v2514_v56, %v2466_v9  ;;  %v2401_v57 = vcombine.high %v2400_v37, %v2400_v37  ;;  %v2408_v19 = vrot.slane %v2400_v37, %v4569_v52 }
0x166a   :  { %v2520_v29 = vsel %vm2518_vm7, %v2517_v25, %v2476_v6  ;;  %v2438_v50 = vrot.slane %v2424_v30, %v4569_v52  ;;  %v2502_v54 = vrot.slane %v2431_v26, %v3762_v36 }
0x166b   :  { %v2523_v42 = vsel %vm2521_vm8, %v2520_v29, %v2486_v8  ;;  %v2415_v31 = vrot.slane %v2401_v57, %v4569_v52  ;;  %v2492_v5 = vrot.slane %v2408_v19, %v3762_v36  ;;  %v4646_v52 = vld [vmem:[%s4742_s8] sm:$0x3] }
0x166c   :  { %v2506_v20 = vrot.slane %v2438_v50, %v3762_v36  ;;  %v2551_v23 = vrot.slane %v4646_v52, %v3762_v36  ;;  %v2766_v50 = vld [vmem:[%s4743_s9 + $0x10] sm:$0xff] }
0x166d   :  { %v2496_v47 = vrot.slane %v2415_v31, %v3762_v36  ;;  %v2525_v21 = vsel %vm2524_vm9, %v2522_v0, %v2492_v5  ;;  %v2765_v31 = vld [vmem:[%s4743_s9 + $0x8] sm:$0xff] }
0x166e   :  { %v2528_v63 = vsel %vm2527_vm10, %v2525_v21, %v2502_v54  ;;  %v2767_v54 = vld [vmem:[%s4743_s9 + $0x18] sm:$0xff]  ;;  %v2768_v21 = vld [vmem:[%s4743_s9 + $0x20] sm:$0xff] }
0x166f   :  { %3012 = vmatmul.mubr.msk.f32.vlgmr.msra.gmra.mrb[8].mxu1 %vm177_vm3, %v2528_v63  ;;  %v2526_v46 = vsel %vm2524_vm9, %v2523_v42, %v2496_v47  ;;  %v2764_v42 = vld [vmem:[%s4743_s9] sm:$0xff]  ;;  %v3214_v47 = vpack.c.bf16 %v2767_v54, %v2766_v50  ;;  %v2769_v63 = vld [vmem:[%s4743_s9 + $0x28] sm:$0xff] }
0x1670   :  { %2634 = vmatprep.mubr.f32.mxu1 %v3558_v7  ;;  %v2529_v38 = vsel %vm2527_vm10, %v2526_v46, %v2506_v20  ;;  %v3211_v5 = vpack.c.bf16 %v2765_v31, %v2764_v42  ;;  %v3217_v46 = vpack.c.bf16 %v2769_v63, %v2768_v21  ;;  %v2770_v20 = vld [vmem:[%s4743_s9 + $0x30] sm:$0xff] }
0x1673   :  { %3013 = vmatmul.mubr.msk.f32.gmra.mrb[10].mxu1 %vm177_vm3, %v2529_v38  ;;  %v2771_v38 = vld [vmem:[%s4743_s9 + $0x38] sm:$0xff] }
0x1674   :  { %3059 = vmatprep.mubr.msk.f32.mxu1 %vm3572_vm12, %v3558_v7 }
0x1742   :  { %v2630_v11 = vpop.f32.mrb[8].mxu1 }
0x1743   :  { %v2631_v12 = vadd.f32 %v2630_v11, %v2551_v23  ;;  %v4650_v48 = vpop.f32.mrb[9].mxu1  ;;  %v2555_v11 = vrot.slane %v4646_v52, %v3770_v39 }
0x1745   :  { %2651 = vrot.lane.b32.xlu1 %v2631_v12, %s3560_s6  ;;  %v2644_v44 = vrot.slane %v2631_v12, %v2643_v61  ;;  %v2633_v12 = vadd.f32 %v4650_v48, %v2555_v11 }
0x1746   :  { %v2636_v27 = vpop.f32.mrb[10].mxu1 }
0x1747   :  { %v2637_v16 = vadd.f32 %v2636_v27, %v2551_v23  ;;  %v4653_v17 = vpop.f32.mrb[11].mxu1  ;;  %v3220_v23 = vpack.c.bf16 %v2771_v38, %v2770_v20 }
0x1749   :  { %2653 = vrot.lane.b32.xlu0 %v2637_v16, %s3560_s6  ;;  %v2648_v49 = vrot.slane %v2637_v16, %v2643_v61  ;;  %v2639_v61 = vadd.f32 %v4653_v17, %v2555_v11 }
0x17b7   :  { %v2652_v33 = vpop.permute.xlu1 %2651 }
0x17b8   :  { %v2657_v58 = vmul.f32 %v2652_v33, %v2644_v44 }
0x17ba   :  { %v2659_v4 = vsel %vm177_vm3, %v2657_v58, 0.0 }
0x17bb   :  { %2660 = vadd.xlane.f32.xlu1 %v2659_v4  ;;  %v2654_v2 = vpop.permute.xlu0 %2653 }
0x17bc   :  { %v2658_v3 = vmul.f32 %v2654_v2, %v2648_v49 }
0x17be   :  { %v2662_v22 = vsel %vm177_vm3, %v2658_v3, 0.0 }
0x17bf   :  { %2663 = vadd.xlane.f32.xlu0 %v2662_v22 }
0x1848   :  { %v2661_v15 = vpop.xlane.xlu1 %2660 }
0x1849   :  { %v2665_v55 = vmul.f32 0.125, %v2661_v15 }
0x184b   :  { %v2674_v13 = vrot.slane %v2665_v55, %v2673_v32 }
0x184c   :  { %v2664_v24 = vpop.xlane.xlu0 %2663 }
0x184d   :  { %v2666_v53 = vmul.f32 0.125, %v2664_v24  ;;  %v2856_v24 = vld [vmem:[%s4745_s11 + $0x8] sm:$0xff] }
0x184f   :  { %v2678_v59 = vrot.slane %v2666_v53, %v2673_v32 }
0x1851   :  { %v2679_v60 = vsel %vm385_vm1, %v2678_v59, %v2674_v13  ;;  %v2858_v59 = vld [vmem:[%s4745_s11 + $0x18] sm:$0xff] }
0x1852   :  { %v2682_v62 = vsel %vm2681_vm11, %v2679_v60, -inf }
0x1853   :  { %2683 = vmax.xlane.f32.xlu0 %v2682_v62  ;;  %v3014_v62 = vld [vmem:[%s4744_s10] ss:$0 sm:$0xff] }
0x18e0   :  { %v2684_v40 = vpop.xlane.xlu0 %2683 }
0x18e1   :  { %v2689_v14 = vrot.slane %v2684_v40, %v3762_v36  ;;  %v2693_v51 = vrot.slane %v2684_v40, %v3770_v39 }
0x18e3   :  { %v2696_v6 = vsub.f32 %v2665_v55, %v2689_v14  ;;  %v2697_v10 = vsub.f32 %v2666_v53, %v2693_v51  ;;  %v2855_v55 = vld [vmem:[%s4745_s11] sm:$0xff]  ;;  %v2857_v53 = vld [vmem:[%s4745_s11 + $0x10] sm:$0xff]  ;;  %s3573_s11 = smov [#allocation2]  }
0x18e4   :  { %v3223_v13 = vpack.c.bf16 %v2856_v24, %v2855_v55  ;;  %v3226_v60 = vpack.c.bf16 %v2858_v59, %v2857_v53  ;;  %s2947_s6 = sshll.u32 %s3573_s11, 4  ;;  %s2948_s6 = int_to_ptr.vmem [resolvable:$true] %s2947_s6 }
0x18e5   :  { %v2698_v35 = vmul.f32 1.442695, %v2696_v6  ;;  %v2700_v34 = vmul.f32 1.442695, %v2697_v10  ;;  %v3016_v10 = vld [vmem:[%s4746_s12] ss:$0 sm:$0xff]  ;;  %p3539_p1 = scmp.lt.s32.totalorder %s2948_s6, %s2948_s6 }
0x18e6   :  { %s3534_s10 = scalar_lea.vmem %s2948_s6, 32 }
0x18e7   :  { %3524 = vpow2.f32 %v2698_v35  ;;  %p3535_p0 = scmp.ne.s32.totalorder %s2948_s6, %s3534_s10  ;;  %p3540_p2 = scmp.lt.s32.totalorder %s3534_s10, %s3534_s10 }
0x18e8   :  { %3526 = vpow2.f32 %v2700_v34 }
0x18e9   :  { %p3541_p3 = por %p3540_p2, %p3539_p1 }
0x18eb   :  { %p3542_p4 = pnand %p3541_p3, %p3535_p0 }
0x18f1   :  { %v3525_v9 = vpop.eup %3524 }
0x18f2   :  { %v3527_v41 = vpop.eup %3526  ;;  %2705 = vperm.xlu1 %3266, %v3525_v9  }
0x18f3   :  { %2708 = vperm.xlu0 %3267, %v3527_v41  }
0x1971   :  { %v2706_v43 = vpop.permute.xlu1 %2705 }
0x1972   :  { %v2709_v28 = vpop.permute.xlu0 %2708  ;;  %v2713_v8 = vrot.slane %v2706_v43, %v2673_v32 }
0x1973   :  { %v2717_v56 = vrot.slane %v2709_v28, %v2673_v32 }
0x1975   :  { %v2718_v37 = vsel %vm385_vm1, %v2717_v56, %v2713_v8 }
0x1976   :  { %v2720_v18 = vsel %vm2681_vm11, %v2718_v37, 0.0 }
0x1977   :  { %2721 = vadd.xlane.f32.xlu1 %v2720_v18 }
0x1a04   :  { %v2722_v30 = vpop.xlane.xlu1 %2721 }
0x1a05   :  { %v2727_v26 = vrot.slane %v2722_v30, %v3762_v36  ;;  %v2731_v0 = vrot.slane %v2722_v30, %v3770_v39  ;;  %v3571_v36 = vmov 0.0|0.0  }
0x1a06   :  { %3210 = vmatprep.subr.bf16.mxu0 %v3571_v36  ;;  %3222 = vmatprep.subr.bf16.mxu1 %v3571_v36 }
0x1a07   :  { %3528 = vrcp.f32 %v2727_v26  ;;  %3212 = vmatpush3.bf16.msra.mxu0 %v3211_v5  ;;  %3224 = vmatpush3.bf16.msra.mxu1 %v3223_v13 }
0x1a08   :  { %3530 = vrcp.f32 %v2731_v0  ;;  %3213 = vmatprep.subr.bf16.mxu0 %v3571_v36  ;;  %3225 = vmatprep.subr.bf16.mxu1 %v3571_v36 }
0x1a0b   :  { %3215 = vmatpush3.bf16.msra.mxu0 %v3214_v47  ;;  %3227 = vmatpush3.bf16.msra.mxu1 %v3226_v60 }
0x1a0c   :  { %3216 = vmatprep.subr.bf16.mxu0 %v3571_v36 }
0x1a0f   :  { %3218 = vmatpush3.bf16.msra.mxu0 %v3217_v46 }
0x1a10   :  { %3219 = vmatprep.subr.bf16.mxu0 %v3571_v36 }
0x1a11   :  { %v3529_v25 = vpop.eup %3528 }
0x1a12   :  { %v2735_v57 = vmul.f32 %v3529_v25, %v3525_v9  ;;  %v3531_v19 = vpop.eup %3530 }
0x1a13   :  { %v2737_v29 = vmul.f32 %v3531_v19, %v3527_v41  ;;  %3221 = vmatpush3.bf16.msra.mxu0 %v3220_v23 }
0x1a14   :  { %2740 = vperm.xlu0 %3267, %v2735_v57  }
0x1a18   :  { %2745 = vperm.xlu0 %3267, %v2737_v29  }
0x1a93   :  { %v2741_v27 = vpop.permute.xlu0 %2740 }
0x1a94   :  { %v2748_v16 = vmul.f32 %v2741_v27, %v2633_v12 }
0x1a96   :  { %v2750_v44 = vsel %vm177_vm3, %v2748_v16, 0.0 }
0x1a97   :  { %v2751_v33 = vrot.slane %v2750_v44, 4  ;;  %v2746_v58 = vpop.permute.xlu0 %2745 }
0x1a98   :  { %v2749_v4 = vmul.f32 %v2746_v58, %v2639_v61 }
0x1a99   :  { %v2752_v49 = vadd.f32 %v2751_v33, %v2750_v44 }
0x1a9a   :  { %v2757_v2 = vsel %vm177_vm3, %v2749_v4, 0.0 }
0x1a9b   :  { %v2753_v3 = vrot.slane %v2752_v49, 2  ;;  %v2758_v22 = vrot.slane %v2757_v2, 4 }
0x1a9d   :  { %v2754_v7 = vadd.f32 %v2753_v3, %v2752_v49  ;;  %v2759_v1 = vadd.f32 %v2758_v22, %v2757_v2 }
0x1a9f   :  { %v2760_v45 = vrot.slane %v2759_v1, 2  ;;  %v2755_v39 = vrot.slane %v2754_v7, 1 }
0x1aa1   :  { %v2761_v52 = vadd.f32 %v2760_v45, %v2759_v1  ;;  %v2756_v15 = vadd.f32 %v2755_v39, %v2754_v7 }
0x1aa3   :  { %v2762_v48 = vrot.slane %v2761_v52, 1 }
0x1aa5   :  { %v2763_v32 = vadd.f32 %v2762_v48, %v2761_v52 }
0x1aa7   :  { %v2781_v17 = vsel %vm385_vm1, %v2763_v32, %v2756_v15 }
0x1aa8   :  { %3049 = vmatmul.mubr.msk.f32.vlgmr.msra.gmra.mrb[12].mxu0 %vm177_vm3, %v2781_v17 }
0x1b7b   :  { %v2850_v40 = vpop.f32.mrb[12].mxu0 }
0x1b7c   :  { %v2851_v14 = vadd.f32 %v3014_v62, %v2850_v40  ;;  %v3050_v51 = vpop.f32.mrb[13].mxu0 }
0x1b7e   :  { %3532 = vtanh.f32 %v2851_v14 }
0x1b88   :  { %v3533_v6 = vpop.eup %3532 }
0x1b89   :  { %3060 = vmatmul.mubr.msk.f32.vlgmr.msra.gmra.mrb[12].mxu1 %vm420_vm2, %v3533_v6 }
0x1c5c   :  { %v2935_v35 = vpop.f32.mrb[12].mxu1 }
0x1c5d   :  { %v2936_v34 = vadd.f32 %v3016_v10, %v2935_v35  ;;  %v3061_v9 = vpop.f32.mrb[13].mxu1 }
0x1c5f   :  { %2940 = vst.msk [vmem:[#allocation2] sm:$0x3] %vm2939_vm13, %v2936_v34 }
0x1c60   :  { %3545 = shalt.err (!%p3542_p4)
}
0x1c61   :  { %s3546_s16 = scalar_lea.hbm %s4747_s13, 32 }
0x1c62   :  { %p3547_p5 = scmp.ne.s32.totalorder %s4747_s13, %s3546_s16  ;;  %p3550_p6 = scmp.lt.u32.totalorder %s3546_s16, %s4747_s13 }
0x1c64   :  { %p3552_p7 = pnand %p3550_p6, %p3547_p5 }
0x1c66   :  { %3555 = shalt.err (!%p3552_p7)
}
0x1c67   :  { %2950 = dma.vmem_to_hbm [thread:$0]  %s2948_s6, 32, %s4747_s13, [#allocation3]  }
0x1c68   :  { %3556 = dma.done.wait [#allocation3], 32  }
0x1c69   :  { %3557 = vsyncadd [#allocation3], 4294967264 }
0x1c6a   :  { %2954 = vsyncpa [#allocation3], 1 }

</bundles_post_ra>
